<compile_context>
chip_gen: v7x
topology: tpu7x:2x2x1
jax: 0.10.0
libtpu: 0.0.40
codegen_flags: <defaults>
</compile_context>

<pallas_src>
import jax
import jax.numpy as jnp
import numpy as np
from jax.experimental import pallas as pl
from jax.experimental.pallas import tpu as pltpu

DILATIONS = (1, 3, 9)
MAX_LOOKBACK = 6 * max(DILATIONS)        # 54 flattened time steps of causal history


def _elu(v):
    # exp(min(v,0)) - 1 (kept; expm1 precision delta is far below bf16 noise).
    return jnp.where(v > 0, v, jnp.exp(jnp.minimum(v, 0.0)) - 1.0)


def _round_up(x, m):
    return (x + m - 1) // m * m


def _pad_last(a, target):
    pad = target - a.shape[-1]
    if pad == 0:
        return a
    return jnp.pad(a, [(0, 0)] * (a.ndim - 1) + [(0, pad)])


# ---------------- fused kernel: ELU -> causal ConvTranspose1d -> 3x ResidualUnit ----
def _decoder_block_kernel(x_ref, wcur_ref, wprev_ref, bt_ref,
                          w7_ref, b7_ref, w1_ref, b1_ref,
                          o_ref, hist_ref):
    T = x_ref.shape[1]
    stride = hist_ref.shape[0]
    Cp = hist_ref.shape[2]                 # lane-padded per-phase channel width
    PADR = hist_ref.shape[1] - T           # causal zero-pad rows (folded units)
    f32, bf16 = jnp.float32, jnp.bfloat16

    # Zero the causal padding rows once per grid step (never overwritten below).
    for p in range(stride):
        hist_ref[p, 0:PADR, :] = jnp.zeros((PADR, Cp), bf16)

    # ---- ELU + causal ConvTranspose1d: two accumulated MXU dots ----
    # y[t, p*Cp+co] = h[t] @ Wcur[..,p] + h[t-1] @ Wprev[..,p] + b[co]
    h = _elu(x_ref[0])                                          # (T, Cin) f32
    t_idx = jax.lax.broadcasted_iota(jnp.int32, h.shape, 0)
    h_prev = jnp.where(t_idx >= 1, pltpu.roll(h, 1, 0), 0.0)    # h shifted down 1 row
    y = (jnp.dot(h.astype(bf16), wcur_ref[...], preferred_element_type=f32)
         + jnp.dot(h_prev.astype(bf16), wprev_ref[...], preferred_element_type=f32)
         + bt_ref[...])                                         # (T, stride*Cp) f32

    # ---- three ResidualUnits, folded layout, 2 matmuls per unit ----
    for u, dil in enumerate(DILATIONS):
        r = _elu(y).astype(bf16)                                # (T, stride*Cp)
        for p in range(stride):                                 # per-phase history
            hist_ref[p, PADR:PADR + T, :] = r[:, p * Cp:(p + 1) * Cp]

        # Build the stacked 7-tap operand: phases on sublanes, taps on lanes.
        phase_ops = []
        for p in range(stride):                                 # static unroll
            taps = []
            for k in range(7):                                  # static unroll
                m = (6 - k) * dil                               # causal look-back
                pp = (p - m) % stride                           # source phase
                drow = (m - p + pp) // stride                   # source row shift
                taps.append(hist_ref[pp, PADR - drow:PADR - drow + T, :])  # (T, Cp)
            phase_ops.append(jnp.concatenate(taps, axis=-1))    # (T, 7*Cp) bf16
        sp = jnp.concatenate(phase_ops, axis=0)                 # (stride*T, 7*Cp)

        c = jnp.dot(sp, w7_ref[u], preferred_element_type=f32) + b7_ref[u]
        a = _elu(c).astype(bf16)                                # (stride*T, Cp)
        d1 = jnp.dot(a, w1_ref[u], preferred_element_type=f32) + b1_ref[u]
        y = y + jnp.concatenate(
            [d1[p * T:(p + 1) * T, :] for p in range(stride)], axis=-1)

    o_ref[0] = y


# ---------------- parameters (deterministic, PyTorch weight layouts) ----------------
def init_params(key, in_channels, out_channels, stride):
    K = 2 * stride
    ks = jax.random.split(key, 14)
    sc = 0.1
    params = {
        "wt": jax.random.normal(ks[0], (in_channels, out_channels, K), jnp.float32) * sc,
        "bt": jax.random.normal(ks[1], (out_channels,), jnp.float32) * sc,
        "units": [],
    }
    idx = 2
    for _ in range(3):
        w7 = jax.random.normal(ks[idx + 0], (out_channels, out_channels, 7), jnp.float32) * sc
        b7 = jax.random.normal(ks[idx + 1], (out_channels,), jnp.float32) * sc
        w1 = jax.random.normal(ks[idx + 2], (out_channels, out_channels, 1), jnp.float32) * sc
        b1 = jax.random.normal(ks[idx + 3], (out_channels,), jnp.float32) * sc
        params["units"].append((w7, b7, w1, b1))
        idx += 4
    return params


# ---------------- wrapper ----------------
def decoder_block_pallas(x_nct, params, stride):
    N, Cin, T = x_nct.shape
    wt = params["wt"]                                    # (Cin, Cout, 2*stride)
    Cout = wt.shape[1]
    Cp = _round_up(Cout, 128)                            # lane-dense phase width
    SCp = stride * Cp
    f32, bf16 = jnp.float32, jnp.bfloat16

    # Conv-transpose weights, phase-folded, channel-padded, bf16 operands.
    wt_k = _pad_last(jnp.transpose(wt, (2, 0, 1)), Cp)              # (2*stride, Cin, Cp)
    w_cur = jnp.transpose(wt_k[:stride], (1, 0, 2)).reshape(Cin, SCp).astype(bf16)
    w_prev = jnp.transpose(wt_k[stride:], (1, 0, 2)).reshape(Cin, SCp).astype(bf16)
    bt = jnp.tile(_pad_last(params["bt"].reshape(1, Cout), Cp), (1, stride))  # f32

    # Per-unit weights packed into 4 stacked arrays (leading axis = 3 units).
    w7_list, b7_list, w1_list, b1_list = [], [], [], []
    for (w7, b7, w1, b1) in params["units"]:
        w7k = jnp.transpose(w7, (2, 1, 0))               # (7, ci, co)
        w7k = jnp.pad(w7k, ((0, 0), (0, Cp - Cout), (0, Cp - Cout)))
        w7_list.append(w7k.reshape(7 * Cp, Cp).astype(bf16))
        b7_list.append(_pad_last(b7.reshape(1, Cout), Cp))
        w1m = jnp.pad(jnp.transpose(w1[:, :, 0]), ((0, Cp - Cout), (0, Cp - Cout)))
        w1_list.append(w1m.astype(bf16))
        b1_list.append(_pad_last(b1.reshape(1, Cout), Cp))
    w7_all = jnp.stack(w7_list)                          # (3, 7*Cp, Cp) bf16
    b7_all = jnp.stack(b7_list)                          # (3, 1, Cp)    f32
    w1_all = jnp.stack(w1_list)                          # (3, Cp, Cp)   bf16
    b1_all = jnp.stack(b1_list)                          # (3, 1, Cp)    f32

    x_ntc = jnp.transpose(x_nct, (0, 2, 1))              # NCT -> NTC (glue)
    padr = _round_up(-(-MAX_LOOKBACK // stride), 16)     # causal pad rows (folded)

    # TODO(synk): the optional `output_size` arg of ConvTranspose1d.forward is not
    # supported (assumed None, as in DecoderBlock's Sequential usage).
    out_fold = pl.pallas_call(
        _decoder_block_kernel,
        out_shape=jax.ShapeDtypeStruct((N, T, SCp), jnp.float32),
        grid_spec=pltpu.PrefetchScalarGridSpec(
            num_scalar_prefetch=0,
            grid=(N,),
            in_specs=[
                pl.BlockSpec((1, T, Cin), lambda n: (n, 0, 0)),
                pl.BlockSpec((Cin, SCp), lambda n: (0, 0)),
                pl.BlockSpec((Cin, SCp), lambda n: (0, 0)),
                pl.BlockSpec((1, SCp), lambda n: (0, 0)),
                pl.BlockSpec((3, 7 * Cp, Cp), lambda n: (0, 0, 0)),
                pl.BlockSpec((3, 1, Cp), lambda n: (0, 0, 0)),
                pl.BlockSpec((3, Cp, Cp), lambda n: (0, 0, 0)),
                pl.BlockSpec((3, 1, Cp), lambda n: (0, 0, 0)),
            ],
            out_specs=pl.BlockSpec((1, T, SCp), lambda n: (n, 0, 0)),
            scratch_shapes=[
                pltpu.VMEM((stride, padr + T, Cp), jnp.bfloat16),  # causal history
            ],
        ),
        compiler_params=pltpu.CompilerParams(
            dimension_semantics=("parallel",),
            vmem_limit_bytes=32 * 1024 * 1024,
        ),
    )(x_ntc, w_cur, w_prev, bt, w7_all, b7_all, w1_all, b1_all)

    # Folded (N, T, stride*Cp) -> drop channel padding -> (N, T*stride, Cout).
    out = out_fold.reshape(N, T, stride, Cp)[:, :, :, :Cout]
    out = out.reshape(N, T * stride, Cout)
    return jnp.transpose(out, (0, 2, 1))                 # NTC -> NCT


# ---------------- pure-JAX reference (PyTorch semantics, NCT layout) ----------------
def _ref_decoder_block(x, params, stride):
    elu = jax.nn.elu
    wt, bt = params["wt"], params["bt"]
    N, Cin, T = x.shape
    _, Cout, K = wt.shape
    h = elu(x)
    Lfull = (T - 1) * stride + K
    y = jnp.zeros((N, Cout, Lfull), jnp.float32)
    for t in range(T):
        for k in range(K):
            y = y.at[:, :, t * stride + k].add(
                jnp.einsum('nc,cd->nd', h[:, :, t], wt[:, :, k]))
    y = y + bt[None, :, None]
    y = y[..., : Lfull - stride]                          # [..., :-causal_padding]

    for (w7, b7, w1, b1), dil in zip(params["units"], DILATIONS):
        r = elu(y)
        rp = jnp.pad(r, ((0, 0), (0, 0), (dil * 6, 0)))
        Tout = y.shape[2]
        c = jnp.zeros((N, Cout, Tout), jnp.float32) + b7[None, :, None]
        for k in range(7):
            c = c + jnp.einsum('nct,dc->ndt',
                               rp[:, :, k * dil: k * dil + Tout], w7[:, :, k])
        h2 = elu(c)
        y = y + jnp.einsum('nct,dc->ndt', h2, w1[:, :, 0]) + b1[None, :, None]
    return y


if __name__ == "__main__":
    in_channels, out_channels, stride = 16, 8, 2
    N, T = 2, 16

    key = jax.random.PRNGKey(0)
    kx, kp = jax.random.split(key)
    x = jax.random.normal(kx, (N, in_channels, T), jnp.float32)
    params = init_params(kp, in_channels, out_channels, stride)

    out = decoder_block_pallas(x, params, stride)
    out = jax.block_until_ready(out)

    ref = _ref_decoder_block(x, params, stride)
    assert out.shape == (N, out_channels, T * stride)
    # bf16 MXU operands (f32 accumulation) vs f32 reference -> looser tolerance.
    np.testing.assert_allclose(np.asarray(out), np.asarray(ref), rtol=2e-2, atol=2e-2)
    print("KERNEL_OK")
</pallas_src>

<mosaic_0001>
module attributes {stable_mosaic.version = 11 : i64} {
  func.func @_decoder_block_kernel(%arg0: i32, %arg1: memref<1x16x16xf32, #tpu.memory_space<vmem>>, %arg2: memref<16x256xbf16, #tpu.memory_space<vmem>>, %arg3: memref<16x256xbf16, #tpu.memory_space<vmem>>, %arg4: memref<1x256xf32, #tpu.memory_space<vmem>>, %arg5: memref<3x896x128xbf16, #tpu.memory_space<vmem>>, %arg6: memref<3x1x128xf32, #tpu.memory_space<vmem>>, %arg7: memref<3x128x128xbf16, #tpu.memory_space<vmem>>, %arg8: memref<3x1x128xf32, #tpu.memory_space<vmem>>, %arg9: memref<1x16x256xf32, #tpu.memory_space<vmem>>, %arg10: memref<2x48x128xbf16, #tpu.memory_space<vmem>>) attributes {dimension_semantics = [#tpu.dimension_semantics<parallel>], iteration_bounds = array<i64: 2>, scalar_prefetch = 0 : i64, scratch_operands = 1 : i64, tpu.core_type = #tpu.core_type<tc>, window_params = [{transform_indices = @transform_0, window_bounds = array<i64: 1, 16, 16>}, {pipeline_mode = #tpu.pipeline_mode<synchronous>, transform_indices = @transform_1, window_bounds = array<i64: 16, 256>}, {pipeline_mode = #tpu.pipeline_mode<synchronous>, transform_indices = @transform_2, window_bounds = array<i64: 16, 256>}, {pipeline_mode = #tpu.pipeline_mode<synchronous>, transform_indices = @transform_3, window_bounds = array<i64: 1, 256>}, {pipeline_mode = #tpu.pipeline_mode<synchronous>, transform_indices = @transform_4, window_bounds = array<i64: 3, 896, 128>}, {pipeline_mode = #tpu.pipeline_mode<synchronous>, transform_indices = @transform_5, window_bounds = array<i64: 3, 1, 128>}, {pipeline_mode = #tpu.pipeline_mode<synchronous>, transform_indices = @transform_6, window_bounds = array<i64: 3, 128, 128>}, {pipeline_mode = #tpu.pipeline_mode<synchronous>, transform_indices = @transform_7, window_bounds = array<i64: 3, 1, 128>}, {transform_indices = @transform_8, window_bounds = array<i64: 1, 16, 256>}]} {
    %cst = arith.constant 0.000000e+00 : bf16
    %0 = vector.broadcast %cst : bf16 to vector<32x128xbf16>
    %c0 = arith.constant 0 : index
    %c0_0 = arith.constant 0 : index
    %c0_1 = arith.constant 0 : index
    %1 = vector.load %arg10[%c0, %c0_0, %c0_1] : memref<2x48x128xbf16, #tpu.memory_space<vmem>>, vector<1x32x128xbf16>
    %2 = vector.shape_cast %1 : vector<1x32x128xbf16> to vector<32x128xbf16>
    %3 = vector.shape_cast %0 : vector<32x128xbf16> to vector<1x32x128xbf16>
    tpu.vector_store %arg10[%c0, %c0_0, %c0_1], %3 {strides = array<i32>} : memref<2x48x128xbf16, #tpu.memory_space<vmem>>, vector<1x32x128xbf16>,
    %cst_2 = arith.constant 0.000000e+00 : bf16
    %4 = vector.broadcast %cst_2 : bf16 to vector<32x128xbf16>
    %c1 = arith.constant 1 : index
    %c0_3 = arith.constant 0 : index
    %c0_4 = arith.constant 0 : index
    %5 = vector.load %arg10[%c1, %c0_3, %c0_4] : memref<2x48x128xbf16, #tpu.memory_space<vmem>>, vector<1x32x128xbf16>
    %6 = vector.shape_cast %5 : vector<1x32x128xbf16> to vector<32x128xbf16>
    %7 = vector.shape_cast %4 : vector<32x128xbf16> to vector<1x32x128xbf16>
    tpu.vector_store %arg10[%c1, %c0_3, %c0_4], %7 {strides = array<i32>} : memref<2x48x128xbf16, #tpu.memory_space<vmem>>, vector<1x32x128xbf16>,
    %c0_5 = arith.constant 0 : index
    %c0_6 = arith.constant 0 : index
    %c0_7 = arith.constant 0 : index
    %8 = vector.load %arg1[%c0_5, %c0_6, %c0_7] : memref<1x16x16xf32, #tpu.memory_space<vmem>>, vector<1x16x16xf32>
    %9 = vector.shape_cast %8 : vector<1x16x16xf32> to vector<16x16xf32>
    %cst_8 = arith.constant 0.000000e+00 : f32
    %10 = vector.broadcast %cst_8 : f32 to vector<16x16xf32>
    %11 = arith.cmpf ogt, %9, %10 : vector<16x16xf32>
    %cst_9 = arith.constant 0.000000e+00 : f32
    %12 = vector.broadcast %cst_9 : f32 to vector<16x16xf32>
    %13 = arith.minimumf %9, %12 : vector<16x16xf32>
    %14 = math.exp %13 : vector<16x16xf32>
    %cst_10 = arith.constant 1.000000e+00 : f32
    %15 = vector.broadcast %cst_10 : f32 to vector<16x16xf32>
    %16 = arith.subf %14, %15 : vector<16x16xf32>
    %17 = arith.select %11, %9, %16 : vector<16x16xi1>, vector<16x16xf32>
    %18 = tpu.iota {dimensions = array<i32: 0>} : vector<16x16xi32>
    %c1_i32 = arith.constant 1 : i32
    %19 = vector.broadcast %c1_i32 : i32 to vector<16x16xi32>
    %20 = arith.cmpi sge, %18, %19 : vector<16x16xi32>
    %c1_i32_11 = arith.constant 1 : i32
    %21 = tpu.dynamic_rotate %17 by %c1_i32_11 dim 0 : vector<16x16xf32>, i32 -> vector<16x16xf32>
    %cst_12 = arith.constant 0.000000e+00 : f32
    %22 = vector.broadcast %cst_12 : f32 to vector<16x16xf32>
    %23 = arith.select %20, %21, %22 : vector<16x16xi1>, vector<16x16xf32>
    %24 = arith.truncf %17 : vector<16x16xf32> to vector<16x16xbf16>
    %c0_13 = arith.constant 0 : index
    %c0_14 = arith.constant 0 : index
    %25 = vector.load %arg2[%c0_13, %c0_14] : memref<16x256xbf16, #tpu.memory_space<vmem>>, vector<16x256xbf16>
    %cst_15 = arith.constant dense<0.000000e+00> : vector<16x256xf32>
    %26 = tpu.matmul %24, %25, %cst_15 {dimension_numbers = #tpu.dot_dimension_numbers<[1], [0], [0], [1], [0, 0, 1, 1], [], []>} : vector<16x16xbf16>, vector<16x256xbf16>, vector<16x256xf32> -> vector<16x256xf32>
    %27 = arith.truncf %23 : vector<16x16xf32> to vector<16x16xbf16>
    %c0_16 = arith.constant 0 : index
    %c0_17 = arith.constant 0 : index
    %28 = vector.load %arg3[%c0_16, %c0_17] : memref<16x256xbf16, #tpu.memory_space<vmem>>, vector<16x256xbf16>
    %cst_18 = arith.constant dense<0.000000e+00> : vector<16x256xf32>
    %29 = tpu.matmul %27, %28, %cst_18 {dimension_numbers = #tpu.dot_dimension_numbers<[1], [0], [0], [1], [0, 0, 1, 1], [], []>} : vector<16x16xbf16>, vector<16x256xbf16>, vector<16x256xf32> -> vector<16x256xf32>
    %30 = arith.addf %26, %29 : vector<16x256xf32>
    %c0_19 = arith.constant 0 : index
    %c0_20 = arith.constant 0 : index
    %31 = vector.load %arg4[%c0_19, %c0_20] : memref<1x256xf32, #tpu.memory_space<vmem>>, vector<1x256xf32>
    %32 = vector.broadcast %31 : vector<1x256xf32> to vector<16x256xf32>
    %33 = arith.addf %30, %32 : vector<16x256xf32>
    %cst_21 = arith.constant 0.000000e+00 : f32
    %34 = vector.broadcast %cst_21 : f32 to vector<16x256xf32>
    %35 = arith.cmpf ogt, %33, %34 : vector<16x256xf32>
    %cst_22 = arith.constant 0.000000e+00 : f32
    %36 = vector.broadcast %cst_22 : f32 to vector<16x256xf32>
    %37 = arith.minimumf %33, %36 : vector<16x256xf32>
    %38 = math.exp %37 : vector<16x256xf32>
    %cst_23 = arith.constant 1.000000e+00 : f32
    %39 = vector.broadcast %cst_23 : f32 to vector<16x256xf32>
    %40 = arith.subf %38, %39 : vector<16x256xf32>
    %41 = arith.select %35, %33, %40 : vector<16x256xi1>, vector<16x256xf32>
    %42 = arith.truncf %41 : vector<16x256xf32> to vector<16x256xbf16>
    %43 = vector.extract_strided_slice %42 {offsets = [0, 0], sizes = [16, 128], strides = [1, 1]} : vector<16x256xbf16> to vector<16x128xbf16>
    %c0_24 = arith.constant 0 : index
    %c32 = arith.constant 32 : index
    %c0_25 = arith.constant 0 : index
    %44 = vector.load %arg10[%c0_24, %c32, %c0_25] : memref<2x48x128xbf16, #tpu.memory_space<vmem>>, vector<1x16x128xbf16>
    %45 = vector.shape_cast %44 : vector<1x16x128xbf16> to vector<16x128xbf16>
    %46 = vector.shape_cast %43 : vector<16x128xbf16> to vector<1x16x128xbf16>
    tpu.vector_store %arg10[%c0_24, %c32, %c0_25], %46 {strides = array<i32>} : memref<2x48x128xbf16, #tpu.memory_space<vmem>>, vector<1x16x128xbf16>,
    %47 = vector.extract_strided_slice %42 {offsets = [0, 128], sizes = [16, 128], strides = [1, 1]} : vector<16x256xbf16> to vector<16x128xbf16>
    %c1_26 = arith.constant 1 : index
    %c32_27 = arith.constant 32 : index
    %c0_28 = arith.constant 0 : index
    %48 = vector.load %arg10[%c1_26, %c32_27, %c0_28] : memref<2x48x128xbf16, #tpu.memory_space<vmem>>, vector<1x16x128xbf16>
    %49 = vector.shape_cast %48 : vector<1x16x128xbf16> to vector<16x128xbf16>
    %50 = vector.shape_cast %47 : vector<16x128xbf16> to vector<1x16x128xbf16>
    tpu.vector_store %arg10[%c1_26, %c32_27, %c0_28], %50 {strides = array<i32>} : memref<2x48x128xbf16, #tpu.memory_space<vmem>>, vector<1x16x128xbf16>,
    %c0_29 = arith.constant 0 : index
    %c29 = arith.constant 29 : index
    %c0_30 = arith.constant 0 : index
    %51 = vector.load %arg10[%c0_29, %c29, %c0_30] : memref<2x48x128xbf16, #tpu.memory_space<vmem>>, vector<1x16x128xbf16>
    %52 = vector.shape_cast %51 : vector<1x16x128xbf16> to vector<16x128xbf16>
    %c1_31 = arith.constant 1 : index
    %c29_32 = arith.constant 29 : index
    %c0_33 = arith.constant 0 : index
    %53 = vector.load %arg10[%c1_31, %c29_32, %c0_33] : memref<2x48x128xbf16, #tpu.memory_space<vmem>>, vector<1x16x128xbf16>
    %54 = vector.shape_cast %53 : vector<1x16x128xbf16> to vector<16x128xbf16>
    %c0_34 = arith.constant 0 : index
    %c30 = arith.constant 30 : index
    %c0_35 = arith.constant 0 : index
    %55 = vector.load %arg10[%c0_34, %c30, %c0_35] : memref<2x48x128xbf16, #tpu.memory_space<vmem>>, vector<1x16x128xbf16>
    %56 = vector.shape_cast %55 : vector<1x16x128xbf16> to vector<16x128xbf16>
    %c1_36 = arith.constant 1 : index
    %c30_37 = arith.constant 30 : index
    %c0_38 = arith.constant 0 : index
    %57 = vector.load %arg10[%c1_36, %c30_37, %c0_38] : memref<2x48x128xbf16, #tpu.memory_space<vmem>>, vector<1x16x128xbf16>
    %58 = vector.shape_cast %57 : vector<1x16x128xbf16> to vector<16x128xbf16>
    %c0_39 = arith.constant 0 : index
    %c31 = arith.constant 31 : index
    %c0_40 = arith.constant 0 : index
    %59 = vector.load %arg10[%c0_39, %c31, %c0_40] : memref<2x48x128xbf16, #tpu.memory_space<vmem>>, vector<1x16x128xbf16>
    %60 = vector.shape_cast %59 : vector<1x16x128xbf16> to vector<16x128xbf16>
    %c1_41 = arith.constant 1 : index
    %c31_42 = arith.constant 31 : index
    %c0_43 = arith.constant 0 : index
    %61 = vector.load %arg10[%c1_41, %c31_42, %c0_43] : memref<2x48x128xbf16, #tpu.memory_space<vmem>>, vector<1x16x128xbf16>
    %62 = vector.shape_cast %61 : vector<1x16x128xbf16> to vector<16x128xbf16>
    %c0_44 = arith.constant 0 : index
    %c32_45 = arith.constant 32 : index
    %c0_46 = arith.constant 0 : index
    %63 = vector.load %arg10[%c0_44, %c32_45, %c0_46] : memref<2x48x128xbf16, #tpu.memory_space<vmem>>, vector<1x16x128xbf16>
    %64 = vector.shape_cast %63 : vector<1x16x128xbf16> to vector<16x128xbf16>
    %65 = tpu.concatenate %52, %54, %56, %58, %60, %62, %64 in 1 : vector<16x128xbf16>, vector<16x128xbf16>, vector<16x128xbf16>, vector<16x128xbf16>, vector<16x128xbf16>, vector<16x128xbf16>, vector<16x128xbf16> -> vector<16x896xbf16>
    %c1_47 = arith.constant 1 : index
    %c29_48 = arith.constant 29 : index
    %c0_49 = arith.constant 0 : index
    %66 = vector.load %arg10[%c1_47, %c29_48, %c0_49] : memref<2x48x128xbf16, #tpu.memory_space<vmem>>, vector<1x16x128xbf16>
    %67 = vector.shape_cast %66 : vector<1x16x128xbf16> to vector<16x128xbf16>
    %c0_50 = arith.constant 0 : index
    %c30_51 = arith.constant 30 : index
    %c0_52 = arith.constant 0 : index
    %68 = vector.load %arg10[%c0_50, %c30_51, %c0_52] : memref<2x48x128xbf16, #tpu.memory_space<vmem>>, vector<1x16x128xbf16>
    %69 = vector.shape_cast %68 : vector<1x16x128xbf16> to vector<16x128xbf16>
    %c1_53 = arith.constant 1 : index
    %c30_54 = arith.constant 30 : index
    %c0_55 = arith.constant 0 : index
    %70 = vector.load %arg10[%c1_53, %c30_54, %c0_55] : memref<2x48x128xbf16, #tpu.memory_space<vmem>>, vector<1x16x128xbf16>
    %71 = vector.shape_cast %70 : vector<1x16x128xbf16> to vector<16x128xbf16>
    %c0_56 = arith.constant 0 : index
    %c31_57 = arith.constant 31 : index
    %c0_58 = arith.constant 0 : index
    %72 = vector.load %arg10[%c0_56, %c31_57, %c0_58] : memref<2x48x128xbf16, #tpu.memory_space<vmem>>, vector<1x16x128xbf16>
    %73 = vector.shape_cast %72 : vector<1x16x128xbf16> to vector<16x128xbf16>
    %c1_59 = arith.constant 1 : index
    %c31_60 = arith.constant 31 : index
    %c0_61 = arith.constant 0 : index
    %74 = vector.load %arg10[%c1_59, %c31_60, %c0_61] : memref<2x48x128xbf16, #tpu.memory_space<vmem>>, vector<1x16x128xbf16>
    %75 = vector.shape_cast %74 : vector<1x16x128xbf16> to vector<16x128xbf16>
    %c0_62 = arith.constant 0 : index
    %c32_63 = arith.constant 32 : index
    %c0_64 = arith.constant 0 : index
    %76 = vector.load %arg10[%c0_62, %c32_63, %c0_64] : memref<2x48x128xbf16, #tpu.memory_space<vmem>>, vector<1x16x128xbf16>
    %77 = vector.shape_cast %76 : vector<1x16x128xbf16> to vector<16x128xbf16>
    %c1_65 = arith.constant 1 : index
    %c32_66 = arith.constant 32 : index
    %c0_67 = arith.constant 0 : index
    %78 = vector.load %arg10[%c1_65, %c32_66, %c0_67] : memref<2x48x128xbf16, #tpu.memory_space<vmem>>, vector<1x16x128xbf16>
    %79 = vector.shape_cast %78 : vector<1x16x128xbf16> to vector<16x128xbf16>
    %80 = tpu.concatenate %67, %69, %71, %73, %75, %77, %79 in 1 : vector<16x128xbf16>, vector<16x128xbf16>, vector<16x128xbf16>, vector<16x128xbf16>, vector<16x128xbf16>, vector<16x128xbf16>, vector<16x128xbf16> -> vector<16x896xbf16>
    %81 = tpu.concatenate %65, %80 in 0 : vector<16x896xbf16>, vector<16x896xbf16> -> vector<32x896xbf16>
    %c0_68 = arith.constant 0 : index
    %c0_69 = arith.constant 0 : index
    %c0_70 = arith.constant 0 : index
    %82 = vector.load %arg5[%c0_68, %c0_69, %c0_70] : memref<3x896x128xbf16, #tpu.memory_space<vmem>>, vector<1x896x128xbf16>
    %83 = vector.shape_cast %82 : vector<1x896x128xbf16> to vector<896x128xbf16>
    %cst_71 = arith.constant dense<0.000000e+00> : vector<32x128xf32>
    %84 = tpu.matmul %81, %83, %cst_71 {dimension_numbers = #tpu.dot_dimension_numbers<[1], [0], [0], [1], [0, 0, 1, 1], [], []>} : vector<32x896xbf16>, vector<896x128xbf16>, vector<32x128xf32> -> vector<32x128xf32>
    %c0_72 = arith.constant 0 : index
    %c0_73 = arith.constant 0 : index
    %c0_74 = arith.constant 0 : index
    %85 = vector.load %arg6[%c0_72, %c0_73, %c0_74] : memref<3x1x128xf32, #tpu.memory_space<vmem>>, vector<1x1x128xf32>
    %86 = vector.shape_cast %85 : vector<1x1x128xf32> to vector<1x128xf32>
    %87 = vector.broadcast %86 : vector<1x128xf32> to vector<32x128xf32>
    %88 = arith.addf %84, %87 : vector<32x128xf32>
    %cst_75 = arith.constant 0.000000e+00 : f32
    %89 = vector.broadcast %cst_75 : f32 to vector<32x128xf32>
    %90 = arith.cmpf ogt, %88, %89 : vector<32x128xf32>
    %cst_76 = arith.constant 0.000000e+00 : f32
    %91 = vector.broadcast %cst_76 : f32 to vector<32x128xf32>
    %92 = arith.minimumf %88, %91 : vector<32x128xf32>
    %93 = math.exp %92 : vector<32x128xf32>
    %cst_77 = arith.constant 1.000000e+00 : f32
    %94 = vector.broadcast %cst_77 : f32 to vector<32x128xf32>
    %95 = arith.subf %93, %94 : vector<32x128xf32>
    %96 = arith.select %90, %88, %95 : vector<32x128xi1>, vector<32x128xf32>
    %97 = arith.truncf %96 : vector<32x128xf32> to vector<32x128xbf16>
    %c0_78 = arith.constant 0 : index
    %c0_79 = arith.constant 0 : index
    %c0_80 = arith.constant 0 : index
    %98 = vector.load %arg7[%c0_78, %c0_79, %c0_80] : memref<3x128x128xbf16, #tpu.memory_space<vmem>>, vector<1x128x128xbf16>
    %99 = vector.shape_cast %98 : vector<1x128x128xbf16> to vector<128x128xbf16>
    %cst_81 = arith.constant dense<0.000000e+00> : vector<32x128xf32>
    %100 = tpu.matmul %97, %99, %cst_81 {dimension_numbers = #tpu.dot_dimension_numbers<[1], [0], [0], [1], [0, 0, 1, 1], [], []>} : vector<32x128xbf16>, vector<128x128xbf16>, vector<32x128xf32> -> vector<32x128xf32>
    %c0_82 = arith.constant 0 : index
    %c0_83 = arith.constant 0 : index
    %c0_84 = arith.constant 0 : index
    %101 = vector.load %arg8[%c0_82, %c0_83, %c0_84] : memref<3x1x128xf32, #tpu.memory_space<vmem>>, vector<1x1x128xf32>
    %102 = vector.shape_cast %101 : vector<1x1x128xf32> to vector<1x128xf32>
    %103 = vector.broadcast %102 : vector<1x128xf32> to vector<32x128xf32>
    %104 = arith.addf %100, %103 : vector<32x128xf32>
    %105 = vector.extract_strided_slice %104 {offsets = [0, 0], sizes = [16, 128], strides = [1, 1]} : vector<32x128xf32> to vector<16x128xf32>
    %106 = vector.extract_strided_slice %104 {offsets = [16, 0], sizes = [16, 128], strides = [1, 1]} : vector<32x128xf32> to vector<16x128xf32>
    %107 = tpu.concatenate %105, %106 in 1 : vector<16x128xf32>, vector<16x128xf32> -> vector<16x256xf32>
    %108 = arith.addf %33, %107 : vector<16x256xf32>
    %cst_85 = arith.constant 0.000000e+00 : f32
    %109 = vector.broadcast %cst_85 : f32 to vector<16x256xf32>
    %110 = arith.cmpf ogt, %108, %109 : vector<16x256xf32>
    %cst_86 = arith.constant 0.000000e+00 : f32
    %111 = vector.broadcast %cst_86 : f32 to vector<16x256xf32>
    %112 = arith.minimumf %108, %111 : vector<16x256xf32>
    %113 = math.exp %112 : vector<16x256xf32>
    %cst_87 = arith.constant 1.000000e+00 : f32
    %114 = vector.broadcast %cst_87 : f32 to vector<16x256xf32>
    %115 = arith.subf %113, %114 : vector<16x256xf32>
    %116 = arith.select %110, %108, %115 : vector<16x256xi1>, vector<16x256xf32>
    %117 = arith.truncf %116 : vector<16x256xf32> to vector<16x256xbf16>
    %118 = vector.extract_strided_slice %117 {offsets = [0, 0], sizes = [16, 128], strides = [1, 1]} : vector<16x256xbf16> to vector<16x128xbf16>
    %c0_88 = arith.constant 0 : index
    %c32_89 = arith.constant 32 : index
    %c0_90 = arith.constant 0 : index
    %119 = vector.load %arg10[%c0_88, %c32_89, %c0_90] : memref<2x48x128xbf16, #tpu.memory_space<vmem>>, vector<1x16x128xbf16>
    %120 = vector.shape_cast %119 : vector<1x16x128xbf16> to vector<16x128xbf16>
    %121 = vector.shape_cast %118 : vector<16x128xbf16> to vector<1x16x128xbf16>
    tpu.vector_store %arg10[%c0_88, %c32_89, %c0_90], %121 {strides = array<i32>} : memref<2x48x128xbf16, #tpu.memory_space<vmem>>, vector<1x16x128xbf16>,
    %122 = vector.extract_strided_slice %117 {offsets = [0, 128], sizes = [16, 128], strides = [1, 1]} : vector<16x256xbf16> to vector<16x128xbf16>
    %c1_91 = arith.constant 1 : index
    %c32_92 = arith.constant 32 : index
    %c0_93 = arith.constant 0 : index
    %123 = vector.load %arg10[%c1_91, %c32_92, %c0_93] : memref<2x48x128xbf16, #tpu.memory_space<vmem>>, vector<1x16x128xbf16>
    %124 = vector.shape_cast %123 : vector<1x16x128xbf16> to vector<16x128xbf16>
    %125 = vector.shape_cast %122 : vector<16x128xbf16> to vector<1x16x128xbf16>
    tpu.vector_store %arg10[%c1_91, %c32_92, %c0_93], %125 {strides = array<i32>} : memref<2x48x128xbf16, #tpu.memory_space<vmem>>, vector<1x16x128xbf16>,
    %c0_94 = arith.constant 0 : index
    %c23 = arith.constant 23 : index
    %c0_95 = arith.constant 0 : index
    %126 = vector.load %arg10[%c0_94, %c23, %c0_95] : memref<2x48x128xbf16, #tpu.memory_space<vmem>>, vector<1x16x128xbf16>
    %127 = vector.shape_cast %126 : vector<1x16x128xbf16> to vector<16x128xbf16>
    %c1_96 = arith.constant 1 : index
    %c24 = arith.constant 24 : index
    %c0_97 = arith.constant 0 : index
    %128 = vector.load %arg10[%c1_96, %c24, %c0_97] : memref<2x48x128xbf16, #tpu.memory_space<vmem>>, vector<1x16x128xbf16>
    %129 = vector.shape_cast %128 : vector<1x16x128xbf16> to vector<16x128xbf16>
    %c0_98 = arith.constant 0 : index
    %c26 = arith.constant 26 : index
    %c0_99 = arith.constant 0 : index
    %130 = vector.load %arg10[%c0_98, %c26, %c0_99] : memref<2x48x128xbf16, #tpu.memory_space<vmem>>, vector<1x16x128xbf16>
    %131 = vector.shape_cast %130 : vector<1x16x128xbf16> to vector<16x128xbf16>
    %c1_100 = arith.constant 1 : index
    %c27 = arith.constant 27 : index
    %c0_101 = arith.constant 0 : index
    %132 = vector.load %arg10[%c1_100, %c27, %c0_101] : memref<2x48x128xbf16, #tpu.memory_space<vmem>>, vector<1x16x128xbf16>
    %133 = vector.shape_cast %132 : vector<1x16x128xbf16> to vector<16x128xbf16>
    %c0_102 = arith.constant 0 : index
    %c29_103 = arith.constant 29 : index
    %c0_104 = arith.constant 0 : index
    %134 = vector.load %arg10[%c0_102, %c29_103, %c0_104] : memref<2x48x128xbf16, #tpu.memory_space<vmem>>, vector<1x16x128xbf16>
    %135 = vector.shape_cast %134 : vector<1x16x128xbf16> to vector<16x128xbf16>
    %c1_105 = arith.constant 1 : index
    %c30_106 = arith.constant 30 : index
    %c0_107 = arith.constant 0 : index
    %136 = vector.load %arg10[%c1_105, %c30_106, %c0_107] : memref<2x48x128xbf16, #tpu.memory_space<vmem>>, vector<1x16x128xbf16>
    %137 = vector.shape_cast %136 : vector<1x16x128xbf16> to vector<16x128xbf16>
    %c0_108 = arith.constant 0 : index
    %c32_109 = arith.constant 32 : index
    %c0_110 = arith.constant 0 : index
    %138 = vector.load %arg10[%c0_108, %c32_109, %c0_110] : memref<2x48x128xbf16, #tpu.memory_space<vmem>>, vector<1x16x128xbf16>
    %139 = vector.shape_cast %138 : vector<1x16x128xbf16> to vector<16x128xbf16>
    %140 = tpu.concatenate %127, %129, %131, %133, %135, %137, %139 in 1 : vector<16x128xbf16>, vector<16x128xbf16>, vector<16x128xbf16>, vector<16x128xbf16>, vector<16x128xbf16>, vector<16x128xbf16>, vector<16x128xbf16> -> vector<16x896xbf16>
    %c1_111 = arith.constant 1 : index
    %c23_112 = arith.constant 23 : index
    %c0_113 = arith.constant 0 : index
    %141 = vector.load %arg10[%c1_111, %c23_112, %c0_113] : memref<2x48x128xbf16, #tpu.memory_space<vmem>>, vector<1x16x128xbf16>
    %142 = vector.shape_cast %141 : vector<1x16x128xbf16> to vector<16x128xbf16>
    %c0_114 = arith.constant 0 : index
    %c25 = arith.constant 25 : index
    %c0_115 = arith.constant 0 : index
    %143 = vector.load %arg10[%c0_114, %c25, %c0_115] : memref<2x48x128xbf16, #tpu.memory_space<vmem>>, vector<1x16x128xbf16>
    %144 = vector.shape_cast %143 : vector<1x16x128xbf16> to vector<16x128xbf16>
    %c1_116 = arith.constant 1 : index
    %c26_117 = arith.constant 26 : index
    %c0_118 = arith.constant 0 : index
    %145 = vector.load %arg10[%c1_116, %c26_117, %c0_118] : memref<2x48x128xbf16, #tpu.memory_space<vmem>>, vector<1x16x128xbf16>
    %146 = vector.shape_cast %145 : vector<1x16x128xbf16> to vector<16x128xbf16>
    %c0_119 = arith.constant 0 : index
    %c28 = arith.constant 28 : index
    %c0_120 = arith.constant 0 : index
    %147 = vector.load %arg10[%c0_119, %c28, %c0_120] : memref<2x48x128xbf16, #tpu.memory_space<vmem>>, vector<1x16x128xbf16>
    %148 = vector.shape_cast %147 : vector<1x16x128xbf16> to vector<16x128xbf16>
    %c1_121 = arith.constant 1 : index
    %c29_122 = arith.constant 29 : index
    %c0_123 = arith.constant 0 : index
    %149 = vector.load %arg10[%c1_121, %c29_122, %c0_123] : memref<2x48x128xbf16, #tpu.memory_space<vmem>>, vector<1x16x128xbf16>
    %150 = vector.shape_cast %149 : vector<1x16x128xbf16> to vector<16x128xbf16>
    %c0_124 = arith.constant 0 : index
    %c31_125 = arith.constant 31 : index
    %c0_126 = arith.constant 0 : index
    %151 = vector.load %arg10[%c0_124, %c31_125, %c0_126] : memref<2x48x128xbf16, #tpu.memory_space<vmem>>, vector<1x16x128xbf16>
    %152 = vector.shape_cast %151 : vector<1x16x128xbf16> to vector<16x128xbf16>
    %c1_127 = arith.constant 1 : index
    %c32_128 = arith.constant 32 : index
    %c0_129 = arith.constant 0 : index
    %153 = vector.load %arg10[%c1_127, %c32_128, %c0_129] : memref<2x48x128xbf16, #tpu.memory_space<vmem>>, vector<1x16x128xbf16>
    %154 = vector.shape_cast %153 : vector<1x16x128xbf16> to vector<16x128xbf16>
    %155 = tpu.concatenate %142, %144, %146, %148, %150, %152, %154 in 1 : vector<16x128xbf16>, vector<16x128xbf16>, vector<16x128xbf16>, vector<16x128xbf16>, vector<16x128xbf16>, vector<16x128xbf16>, vector<16x128xbf16> -> vector<16x896xbf16>
    %156 = tpu.concatenate %140, %155 in 0 : vector<16x896xbf16>, vector<16x896xbf16> -> vector<32x896xbf16>
    %c1_130 = arith.constant 1 : index
    %c0_131 = arith.constant 0 : index
    %c0_132 = arith.constant 0 : index
    %157 = vector.load %arg5[%c1_130, %c0_131, %c0_132] : memref<3x896x128xbf16, #tpu.memory_space<vmem>>, vector<1x896x128xbf16>
    %158 = vector.shape_cast %157 : vector<1x896x128xbf16> to vector<896x128xbf16>
    %cst_133 = arith.constant dense<0.000000e+00> : vector<32x128xf32>
    %159 = tpu.matmul %156, %158, %cst_133 {dimension_numbers = #tpu.dot_dimension_numbers<[1], [0], [0], [1], [0, 0, 1, 1], [], []>} : vector<32x896xbf16>, vector<896x128xbf16>, vector<32x128xf32> -> vector<32x128xf32>
    %c1_134 = arith.constant 1 : index
    %c0_135 = arith.constant 0 : index
    %c0_136 = arith.constant 0 : index
    %160 = vector.load %arg6[%c1_134, %c0_135, %c0_136] : memref<3x1x128xf32, #tpu.memory_space<vmem>>, vector<1x1x128xf32>
    %161 = vector.shape_cast %160 : vector<1x1x128xf32> to vector<1x128xf32>
    %162 = vector.broadcast %161 : vector<1x128xf32> to vector<32x128xf32>
    %163 = arith.addf %159, %162 : vector<32x128xf32>
    %cst_137 = arith.constant 0.000000e+00 : f32
    %164 = vector.broadcast %cst_137 : f32 to vector<32x128xf32>
    %165 = arith.cmpf ogt, %163, %164 : vector<32x128xf32>
    %cst_138 = arith.constant 0.000000e+00 : f32
    %166 = vector.broadcast %cst_138 : f32 to vector<32x128xf32>
    %167 = arith.minimumf %163, %166 : vector<32x128xf32>
    %168 = math.exp %167 : vector<32x128xf32>
    %cst_139 = arith.constant 1.000000e+00 : f32
    %169 = vector.broadcast %cst_139 : f32 to vector<32x128xf32>
    %170 = arith.subf %168, %169 : vector<32x128xf32>
    %171 = arith.select %165, %163, %170 : vector<32x128xi1>, vector<32x128xf32>
    %172 = arith.truncf %171 : vector<32x128xf32> to vector<32x128xbf16>
    %c1_140 = arith.constant 1 : index
    %c0_141 = arith.constant 0 : index
    %c0_142 = arith.constant 0 : index
    %173 = vector.load %arg7[%c1_140, %c0_141, %c0_142] : memref<3x128x128xbf16, #tpu.memory_space<vmem>>, vector<1x128x128xbf16>
    %174 = vector.shape_cast %173 : vector<1x128x128xbf16> to vector<128x128xbf16>
    %cst_143 = arith.constant dense<0.000000e+00> : vector<32x128xf32>
    %175 = tpu.matmul %172, %174, %cst_143 {dimension_numbers = #tpu.dot_dimension_numbers<[1], [0], [0], [1], [0, 0, 1, 1], [], []>} : vector<32x128xbf16>, vector<128x128xbf16>, vector<32x128xf32> -> vector<32x128xf32>
    %c1_144 = arith.constant 1 : index
    %c0_145 = arith.constant 0 : index
    %c0_146 = arith.constant 0 : index
    %176 = vector.load %arg8[%c1_144, %c0_145, %c0_146] : memref<3x1x128xf32, #tpu.memory_space<vmem>>, vector<1x1x128xf32>
    %177 = vector.shape_cast %176 : vector<1x1x128xf32> to vector<1x128xf32>
    %178 = vector.broadcast %177 : vector<1x128xf32> to vector<32x128xf32>
    %179 = arith.addf %175, %178 : vector<32x128xf32>
    %180 = vector.extract_strided_slice %179 {offsets = [0, 0], sizes = [16, 128], strides = [1, 1]} : vector<32x128xf32> to vector<16x128xf32>
    %181 = vector.extract_strided_slice %179 {offsets = [16, 0], sizes = [16, 128], strides = [1, 1]} : vector<32x128xf32> to vector<16x128xf32>
    %182 = tpu.concatenate %180, %181 in 1 : vector<16x128xf32>, vector<16x128xf32> -> vector<16x256xf32>
    %183 = arith.addf %108, %182 : vector<16x256xf32>
    %cst_147 = arith.constant 0.000000e+00 : f32
    %184 = vector.broadcast %cst_147 : f32 to vector<16x256xf32>
    %185 = arith.cmpf ogt, %183, %184 : vector<16x256xf32>
    %cst_148 = arith.constant 0.000000e+00 : f32
    %186 = vector.broadcast %cst_148 : f32 to vector<16x256xf32>
    %187 = arith.minimumf %183, %186 : vector<16x256xf32>
    %188 = math.exp %187 : vector<16x256xf32>
    %cst_149 = arith.constant 1.000000e+00 : f32
    %189 = vector.broadcast %cst_149 : f32 to vector<16x256xf32>
    %190 = arith.subf %188, %189 : vector<16x256xf32>
    %191 = arith.select %185, %183, %190 : vector<16x256xi1>, vector<16x256xf32>
    %192 = arith.truncf %191 : vector<16x256xf32> to vector<16x256xbf16>
    %193 = vector.extract_strided_slice %192 {offsets = [0, 0], sizes = [16, 128], strides = [1, 1]} : vector<16x256xbf16> to vector<16x128xbf16>
    %c0_150 = arith.constant 0 : index
    %c32_151 = arith.constant 32 : index
    %c0_152 = arith.constant 0 : index
    %194 = vector.load %arg10[%c0_150, %c32_151, %c0_152] : memref<2x48x128xbf16, #tpu.memory_space<vmem>>, vector<1x16x128xbf16>
    %195 = vector.shape_cast %194 : vector<1x16x128xbf16> to vector<16x128xbf16>
    %196 = vector.shape_cast %193 : vector<16x128xbf16> to vector<1x16x128xbf16>
    tpu.vector_store %arg10[%c0_150, %c32_151, %c0_152], %196 {strides = array<i32>} : memref<2x48x128xbf16, #tpu.memory_space<vmem>>, vector<1x16x128xbf16>,
    %197 = vector.extract_strided_slice %192 {offsets = [0, 128], sizes = [16, 128], strides = [1, 1]} : vector<16x256xbf16> to vector<16x128xbf16>
    %c1_153 = arith.constant 1 : index
    %c32_154 = arith.constant 32 : index
    %c0_155 = arith.constant 0 : index
    %198 = vector.load %arg10[%c1_153, %c32_154, %c0_155] : memref<2x48x128xbf16, #tpu.memory_space<vmem>>, vector<1x16x128xbf16>
    %199 = vector.shape_cast %198 : vector<1x16x128xbf16> to vector<16x128xbf16>
    %200 = vector.shape_cast %197 : vector<16x128xbf16> to vector<1x16x128xbf16>
    tpu.vector_store %arg10[%c1_153, %c32_154, %c0_155], %200 {strides = array<i32>} : memref<2x48x128xbf16, #tpu.memory_space<vmem>>, vector<1x16x128xbf16>,
    %c0_156 = arith.constant 0 : index
    %c5 = arith.constant 5 : index
    %c0_157 = arith.constant 0 : index
    %201 = vector.load %arg10[%c0_156, %c5, %c0_157] : memref<2x48x128xbf16, #tpu.memory_space<vmem>>, vector<1x16x128xbf16>
    %202 = vector.shape_cast %201 : vector<1x16x128xbf16> to vector<16x128xbf16>
    %c1_158 = arith.constant 1 : index
    %c9 = arith.constant 9 : index
    %c0_159 = arith.constant 0 : index
    %203 = vector.load %arg10[%c1_158, %c9, %c0_159] : memref<2x48x128xbf16, #tpu.memory_space<vmem>>, vector<1x16x128xbf16>
    %204 = vector.shape_cast %203 : vector<1x16x128xbf16> to vector<16x128xbf16>
    %c0_160 = arith.constant 0 : index
    %c14 = arith.constant 14 : index
    %c0_161 = arith.constant 0 : index
    %205 = vector.load %arg10[%c0_160, %c14, %c0_161] : memref<2x48x128xbf16, #tpu.memory_space<vmem>>, vector<1x16x128xbf16>
    %206 = vector.shape_cast %205 : vector<1x16x128xbf16> to vector<16x128xbf16>
    %c1_162 = arith.constant 1 : index
    %c18 = arith.constant 18 : index
    %c0_163 = arith.constant 0 : index
    %207 = vector.load %arg10[%c1_162, %c18, %c0_163] : memref<2x48x128xbf16, #tpu.memory_space<vmem>>, vector<1x16x128xbf16>
    %208 = vector.shape_cast %207 : vector<1x16x128xbf16> to vector<16x128xbf16>
    %c0_164 = arith.constant 0 : index
    %c23_165 = arith.constant 23 : index
    %c0_166 = arith.constant 0 : index
    %209 = vector.load %arg10[%c0_164, %c23_165, %c0_166] : memref<2x48x128xbf16, #tpu.memory_space<vmem>>, vector<1x16x128xbf16>
    %210 = vector.shape_cast %209 : vector<1x16x128xbf16> to vector<16x128xbf16>
    %c1_167 = arith.constant 1 : index
    %c27_168 = arith.constant 27 : index
    %c0_169 = arith.constant 0 : index
    %211 = vector.load %arg10[%c1_167, %c27_168, %c0_169] : memref<2x48x128xbf16, #tpu.memory_space<vmem>>, vector<1x16x128xbf16>
    %212 = vector.shape_cast %211 : vector<1x16x128xbf16> to vector<16x128xbf16>
    %c0_170 = arith.constant 0 : index
    %c32_171 = arith.constant 32 : index
    %c0_172 = arith.constant 0 : index
    %213 = vector.load %arg10[%c0_170, %c32_171, %c0_172] : memref<2x48x128xbf16, #tpu.memory_space<vmem>>, vector<1x16x128xbf16>
    %214 = vector.shape_cast %213 : vector<1x16x128xbf16> to vector<16x128xbf16>
    %215 = tpu.concatenate %202, %204, %206, %208, %210, %212, %214 in 1 : vector<16x128xbf16>, vector<16x128xbf16>, vector<16x128xbf16>, vector<16x128xbf16>, vector<16x128xbf16>, vector<16x128xbf16>, vector<16x128xbf16> -> vector<16x896xbf16>
    %c1_173 = arith.constant 1 : index
    %c5_174 = arith.constant 5 : index
    %c0_175 = arith.constant 0 : index
    %216 = vector.load %arg10[%c1_173, %c5_174, %c0_175] : memref<2x48x128xbf16, #tpu.memory_space<vmem>>, vector<1x16x128xbf16>
    %217 = vector.shape_cast %216 : vector<1x16x128xbf16> to vector<16x128xbf16>
    %c0_176 = arith.constant 0 : index
    %c10 = arith.constant 10 : index
    %c0_177 = arith.constant 0 : index
    %218 = vector.load %arg10[%c0_176, %c10, %c0_177] : memref<2x48x128xbf16, #tpu.memory_space<vmem>>, vector<1x16x128xbf16>
    %219 = vector.shape_cast %218 : vector<1x16x128xbf16> to vector<16x128xbf16>
    %c1_178 = arith.constant 1 : index
    %c14_179 = arith.constant 14 : index
    %c0_180 = arith.constant 0 : index
    %220 = vector.load %arg10[%c1_178, %c14_179, %c0_180] : memref<2x48x128xbf16, #tpu.memory_space<vmem>>, vector<1x16x128xbf16>
    %221 = vector.shape_cast %220 : vector<1x16x128xbf16> to vector<16x128xbf16>
    %c0_181 = arith.constant 0 : index
    %c19 = arith.constant 19 : index
    %c0_182 = arith.constant 0 : index
    %222 = vector.load %arg10[%c0_181, %c19, %c0_182] : memref<2x48x128xbf16, #tpu.memory_space<vmem>>, vector<1x16x128xbf16>
    %223 = vector.shape_cast %222 : vector<1x16x128xbf16> to vector<16x128xbf16>
    %c1_183 = arith.constant 1 : index
    %c23_184 = arith.constant 23 : index
    %c0_185 = arith.constant 0 : index
    %224 = vector.load %arg10[%c1_183, %c23_184, %c0_185] : memref<2x48x128xbf16, #tpu.memory_space<vmem>>, vector<1x16x128xbf16>
    %225 = vector.shape_cast %224 : vector<1x16x128xbf16> to vector<16x128xbf16>
    %c0_186 = arith.constant 0 : index
    %c28_187 = arith.constant 28 : index
    %c0_188 = arith.constant 0 : index
    %226 = vector.load %arg10[%c0_186, %c28_187, %c0_188] : memref<2x48x128xbf16, #tpu.memory_space<vmem>>, vector<1x16x128xbf16>
    %227 = vector.shape_cast %226 : vector<1x16x128xbf16> to vector<16x128xbf16>
    %c1_189 = arith.constant 1 : index
    %c32_190 = arith.constant 32 : index
    %c0_191 = arith.constant 0 : index
    %228 = vector.load %arg10[%c1_189, %c32_190, %c0_191] : memref<2x48x128xbf16, #tpu.memory_space<vmem>>, vector<1x16x128xbf16>
    %229 = vector.shape_cast %228 : vector<1x16x128xbf16> to vector<16x128xbf16>
    %230 = tpu.concatenate %217, %219, %221, %223, %225, %227, %229 in 1 : vector<16x128xbf16>, vector<16x128xbf16>, vector<16x128xbf16>, vector<16x128xbf16>, vector<16x128xbf16>, vector<16x128xbf16>, vector<16x128xbf16> -> vector<16x896xbf16>
    %231 = tpu.concatenate %215, %230 in 0 : vector<16x896xbf16>, vector<16x896xbf16> -> vector<32x896xbf16>
    %c2 = arith.constant 2 : index
    %c0_192 = arith.constant 0 : index
    %c0_193 = arith.constant 0 : index
    %232 = vector.load %arg5[%c2, %c0_192, %c0_193] : memref<3x896x128xbf16, #tpu.memory_space<vmem>>, vector<1x896x128xbf16>
    %233 = vector.shape_cast %232 : vector<1x896x128xbf16> to vector<896x128xbf16>
    %cst_194 = arith.constant dense<0.000000e+00> : vector<32x128xf32>
    %234 = tpu.matmul %231, %233, %cst_194 {dimension_numbers = #tpu.dot_dimension_numbers<[1], [0], [0], [1], [0, 0, 1, 1], [], []>} : vector<32x896xbf16>, vector<896x128xbf16>, vector<32x128xf32> -> vector<32x128xf32>
    %c2_195 = arith.constant 2 : index
    %c0_196 = arith.constant 0 : index
    %c0_197 = arith.constant 0 : index
    %235 = vector.load %arg6[%c2_195, %c0_196, %c0_197] : memref<3x1x128xf32, #tpu.memory_space<vmem>>, vector<1x1x128xf32>
    %236 = vector.shape_cast %235 : vector<1x1x128xf32> to vector<1x128xf32>
    %237 = vector.broadcast %236 : vector<1x128xf32> to vector<32x128xf32>
    %238 = arith.addf %234, %237 : vector<32x128xf32>
    %cst_198 = arith.constant 0.000000e+00 : f32
    %239 = vector.broadcast %cst_198 : f32 to vector<32x128xf32>
    %240 = arith.cmpf ogt, %238, %239 : vector<32x128xf32>
    %cst_199 = arith.constant 0.000000e+00 : f32
    %241 = vector.broadcast %cst_199 : f32 to vector<32x128xf32>
    %242 = arith.minimumf %238, %241 : vector<32x128xf32>
    %243 = math.exp %242 : vector<32x128xf32>
    %cst_200 = arith.constant 1.000000e+00 : f32
    %244 = vector.broadcast %cst_200 : f32 to vector<32x128xf32>
    %245 = arith.subf %243, %244 : vector<32x128xf32>
    %246 = arith.select %240, %238, %245 : vector<32x128xi1>, vector<32x128xf32>
    %247 = arith.truncf %246 : vector<32x128xf32> to vector<32x128xbf16>
    %c2_201 = arith.constant 2 : index
    %c0_202 = arith.constant 0 : index
    %c0_203 = arith.constant 0 : index
    %248 = vector.load %arg7[%c2_201, %c0_202, %c0_203] : memref<3x128x128xbf16, #tpu.memory_space<vmem>>, vector<1x128x128xbf16>
    %249 = vector.shape_cast %248 : vector<1x128x128xbf16> to vector<128x128xbf16>
    %cst_204 = arith.constant dense<0.000000e+00> : vector<32x128xf32>
    %250 = tpu.matmul %247, %249, %cst_204 {dimension_numbers = #tpu.dot_dimension_numbers<[1], [0], [0], [1], [0, 0, 1, 1], [], []>} : vector<32x128xbf16>, vector<128x128xbf16>, vector<32x128xf32> -> vector<32x128xf32>
    %c2_205 = arith.constant 2 : index
    %c0_206 = arith.constant 0 : index
    %c0_207 = arith.constant 0 : index
    %251 = vector.load %arg8[%c2_205, %c0_206, %c0_207] : memref<3x1x128xf32, #tpu.memory_space<vmem>>, vector<1x1x128xf32>
    %252 = vector.shape_cast %251 : vector<1x1x128xf32> to vector<1x128xf32>
    %253 = vector.broadcast %252 : vector<1x128xf32> to vector<32x128xf32>
    %254 = arith.addf %250, %253 : vector<32x128xf32>
    %255 = vector.extract_strided_slice %254 {offsets = [0, 0], sizes = [16, 128], strides = [1, 1]} : vector<32x128xf32> to vector<16x128xf32>
    %256 = vector.extract_strided_slice %254 {offsets = [16, 0], sizes = [16, 128], strides = [1, 1]} : vector<32x128xf32> to vector<16x128xf32>
    %257 = tpu.concatenate %255, %256 in 1 : vector<16x128xf32>, vector<16x128xf32> -> vector<16x256xf32>
    %258 = arith.addf %183, %257 : vector<16x256xf32>
    %c0_208 = arith.constant 0 : index
    %c0_209 = arith.constant 0 : index
    %c0_210 = arith.constant 0 : index
    %259 = vector.load %arg9[%c0_208, %c0_209, %c0_210] : memref<1x16x256xf32, #tpu.memory_space<vmem>>, vector<1x16x256xf32>
    %260 = vector.shape_cast %259 : vector<1x16x256xf32> to vector<16x256xf32>
    %261 = vector.shape_cast %258 : vector<16x256xf32> to vector<1x16x256xf32>
    tpu.vector_store %arg9[%c0_208, %c0_209, %c0_210], %261 {strides = array<i32>} : memref<1x16x256xf32, #tpu.memory_space<vmem>>, vector<1x16x256xf32>,
    return
  }
  func.func @transform_0(%arg0: i32) -> (i32, i32, i32) {
    %c0_i32 = arith.constant 0 : i32
    %c0_i32_0 = arith.constant 0 : i32
    %c0_i32_1 = arith.constant 0 : i32
    return %arg0, %c0_i32, %c0_i32_0 : i32, i32, i32
  }
  func.func @transform_1(%arg0: i32) -> (i32, i32) {
    %c0_i32 = arith.constant 0 : i32
    %c0_i32_0 = arith.constant 0 : i32
    %c0_i32_1 = arith.constant 0 : i32
    return %c0_i32, %c0_i32_0 : i32, i32
  }
  func.func @transform_2(%arg0: i32) -> (i32, i32) {
    %c0_i32 = arith.constant 0 : i32
    %c0_i32_0 = arith.constant 0 : i32
    %c0_i32_1 = arith.constant 0 : i32
    return %c0_i32, %c0_i32_0 : i32, i32
  }
  func.func @transform_3(%arg0: i32) -> (i32, i32) {
    %c0_i32 = arith.constant 0 : i32
    %c0_i32_0 = arith.constant 0 : i32
    %c0_i32_1 = arith.constant 0 : i32
    return %c0_i32, %c0_i32_0 : i32, i32
  }
  func.func @transform_4(%arg0: i32) -> (i32, i32, i32) {
    %c0_i32 = arith.constant 0 : i32
    %c0_i32_0 = arith.constant 0 : i32
    %c0_i32_1 = arith.constant 0 : i32
    %c0_i32_2 = arith.constant 0 : i32
    return %c0_i32, %c0_i32_0, %c0_i32_1 : i32, i32, i32
  }
  func.func @transform_5(%arg0: i32) -> (i32, i32, i32) {
    %c0_i32 = arith.constant 0 : i32
    %c0_i32_0 = arith.constant 0 : i32
    %c0_i32_1 = arith.constant 0 : i32
    %c0_i32_2 = arith.constant 0 : i32
    return %c0_i32, %c0_i32_0, %c0_i32_1 : i32, i32, i32
  }
  func.func @transform_6(%arg0: i32) -> (i32, i32, i32) {
    %c0_i32 = arith.constant 0 : i32
    %c0_i32_0 = arith.constant 0 : i32
    %c0_i32_1 = arith.constant 0 : i32
    %c0_i32_2 = arith.constant 0 : i32
    return %c0_i32, %c0_i32_0, %c0_i32_1 : i32, i32, i32
  }
  func.func @transform_7(%arg0: i32) -> (i32, i32, i32) {
    %c0_i32 = arith.constant 0 : i32
    %c0_i32_0 = arith.constant 0 : i32
    %c0_i32_1 = arith.constant 0 : i32
    %c0_i32_2 = arith.constant 0 : i32
    return %c0_i32, %c0_i32_0, %c0_i32_1 : i32, i32, i32
  }
  func.func @transform_8(%arg0: i32) -> (i32, i32, i32) {
    %c0_i32 = arith.constant 0 : i32
    %c0_i32_0 = arith.constant 0 : i32
    %c0_i32_1 = arith.constant 0 : i32
    return %arg0, %c0_i32, %c0_i32_0 : i32, i32, i32
  }
}

</mosaic_0001>

<bundles_post_ra>
// kernel: tpu_custom_call.1
= control target key start
LH: loop header
LB: loop body
LE: loop exit
PB: predicated region body
PF: predicated region fallthrough
CT: control target
= control target key end

     0   :  { %s6102_s0 = inlined_call_operand.hbm [shape: f32[2,16,16], index: 0, kind: input, shape index: {}]   ;;  %s6103_s1 = inlined_call_operand.hbm [shape: bf16[16,256], index: 1, kind: input, shape index: {}]   ;;  %s6104_s2 = inlined_call_operand.hbm [shape: bf16[16,256], index: 2, kind: input, shape index: {}]   ;;  %s6105_s3 = inlined_call_operand.vmem [shape: f32[1,256], index: 3, kind: input, shape index: {}]   ;;  %s6106_s4 = inlined_call_operand.hbm [shape: bf16[3,896,128], index: 4, kind: input, shape index: {}]   ;;  %s6107_s5 = inlined_call_operand.vmem [shape: f32[3,1,128], index: 5, kind: input, shape index: {}]   ;;  %s6108_s6 = inlined_call_operand.hbm [shape: bf16[3,128,128], index: 6, kind: input, shape index: {}]   ;;  %s6109_s7 = inlined_call_operand.vmem [shape: f32[3,1,128], index: 7, kind: input, shape index: {}]   ;;  %s6110_s8 = inlined_call_operand.hbm [shape: f32[2,16,256], index: 8, kind: output, shape index: {}]  }
   0x1   :  { %6120 = sst [smem:[#allocation18_spill]] %s6103_s1 }
   0x2   :  { %13 = vsyncpa [#allocation4], 0 }
   0x3   :  { %15 = vsyncpa [#allocation4 + $0x1], 0 }
   0x4   :  { %16 = vsyncpa [#allocation7], 0 }
   0x5   :  { %17 = vsyncpa [#allocation10], 0 }
   0x6   :  { %18 = vsyncpa [#allocation5], 0 }
   0x7   :  { %20 = vsyncpa [#allocation5 + $0x1], 0  ;;  %s5443_s27 = smov 0   ;;  %s5445_s28 = smov 0  }
   0x8   :  { %s5447_s29 = smov 0   ;;  %s5449_s30 = smov 0  }
   0x9 LB: > { %s5464_s9 = sadd.s32 4294967295, %s5383_s30   ;;  %s4129_s10 = sadd.s32 4294967294, %s5383_s30   ;;  %s5383_s30 = sphi %s5449_s30, %s6146_s30   ;;  %s5379_s29 = sphi %s5447_s29, %s6145_s29   ;;  %s5375_s28 = sphi %s5445_s28, %s6144_s28   ;;  %s5371_s27 = sphi %s5443_s27, %s6143_s27  }
   0xa   : > { %p46_p0 = scmp.ne.s32.totalorder %s5375_s28, %s5371_s27  ;;  %p6111_p1 = scmp.eq.s32.totalorder %s5464_s9, 0 }
   0xb   : > { %p223_p3 = scmp.eq.s32.totalorder %s4129_s10, 1  ;;  %p4130_p5 = scmp.ge.s32.totalorder %s5383_s30, 1 }
   0xc   : > { %p5473_p4 = por %p6111_p1, %p46_p0  ;;  %p230_p7 = scmp.lt.s32.totalorder %s5383_s30, 3 }
   0xd   : > { %p5478_p6 = por %p223_p3, %p46_p0  ;;  %s5385_s14 = smov [#allocation6]  }
   0xe   : > { %s6121_s11 = scalar_select %p5473_p4, 1, 0 }
   0xf   : > { %s6122_s12 = scalar_select %p5478_p6, 1, 0 }
  0x10   : > { %p5483_p8 = pnand %p4130_p5, %p230_p7  ;;  %s242_s15 = sshll.u32 %s5385_s14, 4  ;;  %s5487_s15 = int_to_ptr.vmem [resolvable:$true] %s242_s15 }
  0x11   : > { %6123 = sst [smem:[#allocation17_spill]] %s6122_s12  ;;  %s5386_s17 = smov [#allocation9]  }
  0x12   : > { %s6124_s13 = scalar_select %p5483_p8, 1, 0 }
  0x13   : > { %p4843_p9 = pneg %p5483_p8  ;;  %s271_s18 = sshll.u32 %s5386_s17, 4  ;;  %s5498_s18 = int_to_ptr.vmem [resolvable:$true] %s271_s18 }
  0x14   : > { %s6126_s1 = sld [smem:[#allocation18_spill]] }
  0x15   : > { %p5494_p11 = pnand %p4843_p9, %p6111_p1 }
  0x17   : > { %p5508_p13 = pneg %p5494_p11 }
  0x1a   : > { %s5167_s21 = scalar_lea.hbm %s6126_s1, 256 }
  0x1b   : > { %p5168_p12 = scmp.ne.s32.totalorder %s6126_s1, %s5167_s21  ;;  %p5174_p5 = scmp.lt.u32.totalorder %s5167_s21, %s6126_s1 }
  0x1d   : > { %p5170_p0 = pnand %p5508_p13, %p5168_p12 }
  0x1f   : > { %p5171_p3 = pneg %p5170_p0 }
  0x21   : > { %p5176_p7 = pnand %p5174_p5, %p5171_p3 }
  0x23   : > { %5179 = shalt.err (!%p5176_p7)
}
  0x24   : > { %s5180_s10 = scalar_lea.vmem %s5487_s15, 256  ;;  %p5188_p2 = scmp.lt.s32.totalorder %s5487_s15, %s5487_s15 }
  0x25   : > { %p5181_p9 = scmp.ne.s32.totalorder %s5487_s15, %s5180_s10  ;;  %p5189_p6 = scmp.lt.s32.totalorder %s5180_s10, %s5180_s10 }
  0x27   : > { %p5183_p10 = pnand %p5181_p9, %p5508_p13  ;;  %p5190_p12 = por %p5189_p6, %p5188_p2 }
  0x29   : > { %p5184_p1 = pneg %p5183_p10 }
  0x2b   : > { %p5191_p0 = pnand %p5190_p12, %p5184_p1 }
  0x2d   : > { %5194 = shalt.err (!%p5191_p0)
}
  0x2e   : > { %s6113_s14 = smov 128   ;;  %s6115_s17 = smov 8  }
  0x2f   : > { %4846 = dma.hbm_to_vmem [thread:$0]  (!%p5494_p11), %s6126_s1, 256, %s5487_s15, [#allocation7], %s6113_s14, %s6113_s14, %s6115_s17  }
  0x30   : > { %s5195_s23 = scalar_lea.hbm %s6106_s4, 21504 }
  0x31   : > { %p5196_p1 = scmp.ne.s32.totalorder %s6106_s4, %s5195_s23  ;;  %p5202_p10 = scmp.lt.u32.totalorder %s5195_s23, %s6106_s4 }
  0x33   : > { %p5198_p2 = pnand %p5196_p1, %p5508_p13 }
  0x35   : > { %p5199_p6 = pneg %p5198_p2 }
  0x37   : > { %p5204_p3 = pnand %p5202_p10, %p5199_p6 }
  0x39   : > { %5207 = shalt.err (!%p5204_p3)
}
  0x3a   : > { %s5208_s15 = scalar_lea.vmem %s5498_s18, 21504  ;;  %p5216_p12 = scmp.lt.s32.totalorder %s5498_s18, %s5498_s18 }
  0x3b   : > { %p5209_p5 = scmp.ne.s32.totalorder %s5498_s18, %s5208_s15  ;;  %p5217_p0 = scmp.lt.s32.totalorder %s5208_s15, %s5208_s15 }
  0x3d   : > { %p5211_p7 = pnand %p5209_p5, %p5508_p13  ;;  %p5218_p1 = por %p5217_p0, %p5216_p12 }
  0x3f   : > { %p5212_p9 = pneg %p5211_p7 }
  0x41   : > { %p5219_p2 = pnand %p5218_p1, %p5212_p9 }
  0x43   : > { %5222 = shalt.err (!%p5219_p2)
}
  0x44   : > { %s6119_s19 = smov 64   ;;  %s5390_s12 = smov 4  }
  0x45   : > { %4852 = dma.hbm_to_vmem [thread:$0]  (!%p5494_p11), %s6106_s4, 21504, %s5498_s18, [#allocation10], %s6119_s19, %s6119_s19, %s5390_s12  }
  0x46   : > { %s5391_s22 = smov [#allocation8]   ;;  %s5392_s25 = smov [#allocation11]  }
  0x47   : > { %s255_s23 = sshll.u32 %s5391_s22, 4  ;;  %s287_s26 = sshll.u32 %s5392_s25, 4  ;;  %s256_s23 = int_to_ptr.vmem [resolvable:$true] %s255_s23  ;;  %s5558_s26 = int_to_ptr.vmem [resolvable:$true] %s287_s26 }
  0x48   : > { %s5223_s14 = scalar_lea.hbm %s6104_s2, 256 }
  0x49   : > { %p5224_p6 = scmp.ne.s32.totalorder %s6104_s2, %s5223_s14  ;;  %p5230_p5 = scmp.lt.u32.totalorder %s5223_s14, %s6104_s2 }
  0x4b   : > { %p5226_p10 = pnand %p5224_p6, %p5508_p13 }
  0x4d   : > { %p5227_p3 = pneg %p5226_p10 }
  0x4f   : > { %p5232_p7 = pnand %p5230_p5, %p5227_p3 }
  0x51   : > { %5235 = shalt.err (!%p5232_p7)
}
  0x52   : > { %s5236_s21 = scalar_lea.vmem %s256_s23, 256  ;;  %p5244_p1 = scmp.lt.s32.totalorder %s256_s23, %s256_s23 }
  0x53   : > { %p5237_p9 = scmp.ne.s32.totalorder %s256_s23, %s5236_s21  ;;  %p5245_p2 = scmp.lt.s32.totalorder %s5236_s21, %s5236_s21 }
  0x55   : > { %p5239_p12 = pnand %p5237_p9, %p5508_p13  ;;  %p5246_p4 = por %p5245_p2, %p5244_p1 }
  0x57   : > { %p5240_p0 = pneg %p5239_p12 }
  0x59   : > { %p5247_p8 = pnand %p5246_p4, %p5240_p0 }
  0x5b   : > { %5250 = shalt.err (!%p5247_p8)
}
  0x5c   : > { %s6128_s1 = smov 8   ;;  %s6129_s17 = smov 128  }
  0x5d   : > { %4849 = dma.hbm_to_vmem [thread:$0]  (!%p5494_p11), %s6104_s2, 256, %s256_s23, [#allocation7], %s6129_s17, %s6129_s17, %s6128_s1  }
  0x5e   : > { %s5251_s15 = scalar_lea.hbm %s6108_s6, 3072 }
  0x5f   : > { %p5252_p6 = scmp.ne.s32.totalorder %s6108_s6, %s5251_s15  ;;  %p5258_p10 = scmp.lt.u32.totalorder %s5251_s15, %s6108_s6 }
  0x61   : > { %p5254_p4 = pnand %p5252_p6, %p5508_p13 }
  0x63   : > { %p5255_p8 = pneg %p5254_p4 }
  0x65   : > { %p5260_p3 = pnand %p5258_p10, %p5255_p8 }
  0x67   : > { %5263 = shalt.err (!%p5260_p3)
}
  0x68   : > { %s5264_s23 = scalar_lea.vmem %s5558_s26, 3072  ;;  %p5272_p12 = scmp.lt.s32.totalorder %s5558_s26, %s5558_s26 }
  0x69   : > { %p5265_p5 = scmp.ne.s32.totalorder %s5558_s26, %s5264_s23  ;;  %p5273_p0 = scmp.lt.s32.totalorder %s5264_s23, %s5264_s23 }
  0x6b   : > { %p5267_p7 = pnand %p5265_p5, %p5508_p13  ;;  %p5274_p1 = por %p5273_p0, %p5272_p12 }
  0x6d   : > { %p5268_p9 = pneg %p5267_p7 }
  0x6f   : > { %p5275_p2 = pnand %p5274_p1, %p5268_p9 }
  0x71   : > { %5278 = shalt.err (!%p5275_p2)
}
  0x72   : > { %s6130_s19 = smov 64   ;;  %s5608_s16 = sadd.s32 1, %s5383_s30  }
  0x73   : > { %4855 = dma.hbm_to_vmem [thread:$0]  (!%p5494_p11), %s6108_s6, 3072, %s5558_s26, [#allocation10], %s6130_s19, %s6130_s19, %s5390_s12  }
  0x74   : > { %s30_s24 = ssub.s32 %s5383_s30, %s5608_s16  ;;  %s33_s25 = sadd.s32 1, %s5379_s29 }
  0x75   : > { %p31_p13 = scmp.eq.s32.totalorder %s30_s24, 0  ;;  %p40_p6 = scmp.ne.s32.totalorder %s5379_s29, %s5375_s28 }
  0x76   : > { %p41_p4 = scmp.eq.s32.totalorder %s5383_s30, 0  ;;  %p6131_p10 = scmp.eq.s32.totalorder %s5464_s9, 1 }
  0x77   : > { %s5617_s10 = scalar_select %p31_p13, %s5379_s29, %s33_s25  }
  0x78   : > { %p42_p8 = por %p41_p4, %p40_p6  ;;  %p5621_p3 = por %p6131_p10, %p40_p6 }
  0x79   : > { %p4868_p5 = scmp.lt.s32.totalorder %s5383_s30, 2  ;;  %s304_s20 = sand.u32 1, %s5379_s29  }
  0x7a   : > { %s4136_s18 = sshll.u32 %s304_s20, 4  ;;  %s4385_s12 = sshll.u32 %s5383_s30, 8 }
  0x7b   : > { %s5631_s23 = scalar_lea.hbm %s6102_s0, %s4385_s12  ;;  %s308_s19 = scalar_lea.vmem [#allocation3], %s4136_s18 }
  0x7c   : > { %s315_s22 = sshll.u32 %s308_s19, 4  ;;  %p5635_p11 = pnand %p4868_p5, %p42_p8  ;;  %s5633_s22 = int_to_ptr.vmem [resolvable:$true] %s315_s22 }
  0x7d   : > { %s5639_s24 = scalar_lea.sflag [#allocation4], %s304_s20  ;;  %s5279_s25 = scalar_lea.hbm %s5631_s23, 256 }
  0x7e   : > { %p5280_p7 = scmp.ne.s32.totalorder %s5631_s23, %s5279_s25  ;;  %p5281_p9 = pneg %p5635_p11 }
  0x7f   : > { %s5284_s26 = scalar_lea.hbm %s6102_s0, 512  ;;  %p5285_p1 = scmp.lt.u32.totalorder %s5631_s23, %s6102_s0 }
  0x80   : > { %p5282_p12 = pnand %p5281_p9, %p5280_p7  ;;  %p5286_p2 = scmp.lt.u32.totalorder %s5284_s26, %s5279_s25 }
  0x81   : > { %p5288_p6 = scmp.lt.u32.totalorder %s5279_s25, %s5631_s23 }
  0x82   : > { %p5283_p0 = pneg %p5282_p12  ;;  %p5287_p13 = por %p5286_p2, %p5285_p1 }
  0x84   : > { %p5289_p4 = por %p5288_p6, %p5287_p13 }
  0x86   : > { %p5290_p8 = pnand %p5289_p4, %p5283_p0 }
  0x88   : > { %5293 = shalt.err (!%p5290_p8)
}
  0x89   : > { %s5294_s20 = scalar_lea.vmem %s5633_s22, 256  ;;  %s5393_s18 = smov [#allocation3]  }
  0x8a   : > { %p5295_p10 = scmp.ne.s32.totalorder %s5633_s22, %s5294_s20  ;;  %s5299_s12 = sshll.u32 %s5393_s18, 4  ;;  %s5300_s12 = int_to_ptr.vmem [resolvable:$false] %s5299_s12 }
  0x8b   : > { %s5301_s21 = scalar_lea.vmem %s5300_s12, 512  ;;  %p5302_p12 = scmp.lt.s32.totalorder %s5633_s22, %s5300_s12 }
  0x8c   : > { %p5297_p5 = pnand %p5295_p10, %p5281_p9  ;;  %p5303_p1 = scmp.lt.s32.totalorder %s5301_s21, %s5294_s20 }
  0x8e   : > { %p5298_p7 = pneg %p5297_p5  ;;  %p5304_p2 = por %p5303_p1, %p5302_p12 }
  0x90   : > { %p5305_p13 = pnand %p5304_p2, %p5298_p7 }
  0x92   : > { %5308 = shalt.err (!%p5305_p13)
}
  0x93   : > { %4859 = dma.hbm_to_vmem [thread:$0]  (!%p5635_p11), %s5631_s23, 256, %s5633_s22, %s5639_s24, %s6129_s17, %s6129_s17, %s6128_s1  }
  0x94   : > { %p6134_p9 = scmp.ne.s32.totalorder %s6124_s13, 0 }
  0x95   : > { %s5673_s25 = sand.u32 (!%p6134_p9), 1, %s5375_s28   ;;  %p6135_p0 = scmp.ne.s32.totalorder (!%p6134_p9), %s6121_s11, 0 }
  0x96   : > { %327 = sbr.rel (%p6134_p9) target bundleno = 2050 (0x802), region = 52  ;;  %s4140_s26 = sshll.u32 (!%p6134_p9), %s5673_s25, 4 }
  0x97   : > { %s330_s19 = scalar_lea.sflag (!%p6134_p9), [#allocation4], %s5673_s25  ;;  %s333_s20 = scalar_lea.vmem (!%p6134_p9), [#allocation3], %s4140_s26 }
  0x9d   : > { %5354 = dma.done.wait (%p6135_p0), %s330_s19, 256  }
  0x9e   : > { %5356 = vsyncadd (%p6135_p0), %s330_s19, 4294967040  ;;  %p6136_p6 = scmp.eq.s32.totalorder %s5464_s9, 0 }
  0xa0   : > { %5358 = dma.done.wait (%p6136_p6), [#allocation7], 512   ;;  %p6137_p11 = pmov %p6136_p6 }
  0xa1   : > { %p6138_p4 = pmov %p6136_p6 }
  0xa2   : > { %5360 = vsyncadd (%p6137_p11), [#allocation7], 4294966784 }
  0xa3   : > { %5362 = dma.done.wait (%p6138_p4), [#allocation10], 24576   ;;  %p6139_p8 = pmov %p6138_p4 }
  0xa4   : > { %v5394_v0 = vmov 0   ;;  %v4917_v1 = vld [vmem:[#allocation8 + $0x4] ss:$8 sps:$4 sm:$0xff]   ;;  %v402_v2 = vlaneseq  ;;  %v4919_v3 = vld [vmem:[#allocation8] ss:$8 sps:$4 sm:$0xff]   ;;  %vm430_vm4 = vcmask 130048  }
  0xa5   : > { %5364 = vsyncadd (%p6139_p8), [#allocation10], 4294942720  ;;  %383 = vst [vmem:[#allocation2] sm:$0xff] %v5394_v0  ;;  %466 = vmatprep.mubr.bf16.mxu0 %v5394_v0  ;;  %434 = vmatprep.subr.bf16.mxu0 %v4917_v1  ;;  %v4922_v4 = vld [vmem:[#allocation6 + $0x4] ss:$8 sps:$4 sm:$0xff]   ;;  %v4929_v32 = vld [vmem:[#allocation9 + $0x50] sm:$0xff]  }
  0xa6   : > { %384 = vst [vmem:[#allocation2 + $0x8] sm:$0xff] %v5394_v0  ;;  %386 = vst [vmem:[#allocation2 + $0x18] sm:$0xff] %v5394_v0  ;;  %v388_v5 = vld [vmem:[%s333_s20] sm:$0xff]  ;;  %435 = vmatpush1.bf16.msra.mxu0 %v4919_v3  ;;  %v389_v6 = vld [vmem:[%s333_s20 + $0x8] sm:$0xff]  ;;  %v5689_v9 = vshrl.u32 %v402_v2, 7  ;;  %vm618_vm9 = vcmask 1046528  }
  0xa7   : > { %387 = vst [vmem:[#allocation2 + $0x20] sm:$0xff] %v5394_v0  ;;  %v392_v7 = vmin.f32 %v388_v5, 0.0  ;;  %490 = vmatprep.subr.bf16.mxu0 %v4922_v4  ;;  %v393_v8 = vmin.f32 %v389_v6, 0.0  ;;  %vm390_vm0 = vcmp.gt.f32.partialorder %v388_v5, 0.0  ;;  %vm391_vm1 = vcmp.gt.f32.partialorder %v389_v6, 0.0  ;;  %v4923_v26 = vld [vmem:[#allocation9 + $0x40] sm:$0xff]  }
  0xa8   : > { %vm409_vm2 = vcmp.lt.s32.totalorder %v5689_v9, 1  ;;  %vm405_vm3 = vcmp.ge.s32.totalorder %v5689_v9, 1  ;;  %v4920_v20 = vld [vmem:[#allocation6] ss:$8 sps:$4 sm:$0xff]   ;;  %4387 = vmatprep.subr.bf16.mxu1 %v4923_v26  ;;  %v4930_v33 = vld [vmem:[#allocation9 + $0x10] sm:$0xff]   ;;  %v4933_v36 = vld [vmem:[#allocation9 + $0x58] sm:$0xff]  }
  0xa9   : > { %v394_v10 = vmul.f32 1.442695, %v392_v7  ;;  %v396_v11 = vmul.f32 1.442695, %v393_v8  ;;  %v4924_v27 = vld [vmem:[#allocation9] sm:$0xff]   ;;  %v4925_v28 = vld [vmem:[#allocation9 + $0x48] sm:$0xff]  }
  0xaa   : > { %4388 = vmatpush3.bf16.msra.mxu1 %v4924_v27  ;;  %v4926_v29 = vld [vmem:[#allocation9 + $0x8] sm:$0xff]   ;;  %v4927_v30 = vld [vmem:[#allocation9 + $0xc0] sm:$0xff]   ;;  %v4934_v37 = vld [vmem:[#allocation9 + $0x18] sm:$0xff]   ;;  %v537_v60 = vsub.s32 0, %v5689_v9  ;;  %v541_v62 = vsub.s32 1, %v5689_v9  ;;  %s4145_s19 = sshll.u32 %s5673_s25, 5 }
  0xab   : > { %5115 = vpow2.f32 %v394_v10  ;;  %4389 = vmatprep.subr.bf16.mxu1 %v4925_v28  ;;  %v4928_v31 = vld [vmem:[#allocation9 + $0x80] sm:$0xff]   ;;  %v4931_v34 = vld [vmem:[#allocation9 + $0xc8] sm:$0xff]   ;;  %v4935_v38 = vld [vmem:[#allocation9 + $0xd0] sm:$0xff]   ;;  %vm643_vm10 = vsmask.f32 1280  ;;  %s381_s13 = scalar_lea.vmem [#allocation12], %s4145_s19 }
  0xac   : > { %5117 = vpow2.f32 %v396_v11  ;;  %v4932_v35 = vld [vmem:[#allocation9 + $0x88] sm:$0xff]   ;;  %v4936_v39 = vld [vmem:[#allocation9 + $0x90] sm:$0xff]   ;;  %v4937_v40 = vld [vmem:[#allocation9 + $0x60] sm:$0xff]   ;;  %vm585_vm11 = vsmask.f32 7424  ;;  %s4018_s1 = sshll.u32 %s381_s13, 4  ;;  %s6050_s1 = int_to_ptr.vmem [resolvable:$true] %s4018_s1 }
  0xad   : > { %v4938_v41 = vld [vmem:[#allocation9 + $0x20] sm:$0xff]   ;;  %v4939_v42 = vld [vmem:[#allocation9 + $0xd8] sm:$0xff]   ;;  %v4941_v44 = vld [vmem:[#allocation9 + $0x68] sm:$0xff]   ;;  %s4386_s17 = sshll.u32 %s5464_s9, 9  ;;  %s4005_s14 = scalar_lea.sflag [#allocation5], %s5673_s25 }
  0xae   : > { %4390 = vmatpush3.bf16.msra.mxu1 %v4926_v29  ;;  %v4940_v43 = vld [vmem:[#allocation9 + $0x98] sm:$0xff]   ;;  %v4942_v45 = vld [vmem:[#allocation9 + $0x28] sm:$0xff]   ;;  %v4943_v46 = vld [vmem:[#allocation9 + $0xe0] sm:$0xff]   ;;  %s6057_s9 = scalar_lea.hbm %s6110_s8, %s4386_s17  ;;  %s5309_s24 = scalar_lea.vmem %s6050_s1, 512 }
  0xaf   : > { %4391 = vmatprep.subr.bf16.mxu1 %v4929_v32  ;;  %v4945_v47 = vld [vmem:[#allocation9 + $0x70] sm:$0xff]   ;;  %v4944_v48 = vld [vmem:[#allocation9 + $0xa0] sm:$0xff]   ;;  %v4947_v49 = vld [vmem:[#allocation9 + $0xe8] sm:$0xff]   ;;  %p5310_p10 = scmp.ne.s32.totalorder %s6050_s1, %s5309_s24  ;;  %s5395_s18 = smov [#allocation12]  }
  0xb0   : > { %v4946_v50 = vld [vmem:[#allocation9 + $0x30] sm:$0xff]   ;;  %v4949_v51 = vld [vmem:[#allocation9 + $0x78] sm:$0xff]   ;;  %v4948_v52 = vld [vmem:[#allocation9 + $0xa8] sm:$0xff]   ;;  %s5313_s12 = sshll.u32 %s5395_s18, 4  ;;  %s5314_s12 = int_to_ptr.vmem [resolvable:$false] %s5313_s12 }
  0xb1   : > { %v4951_v53 = vld [vmem:[#allocation9 + $0xf0] sm:$0xff]   ;;  %v4950_v54 = vld [vmem:[#allocation9 + $0x38] sm:$0xff]   ;;  %v4953_v56 = vld [vmem:[#allocation9 + $0x140] sm:$0xff]   ;;  %p5311_p5 = pnand %p5310_p10, %p5621_p3  ;;  %s5315_s21 = scalar_lea.vmem %s5314_s12, 1024 }
  0xb2   : > { %4392 = vmatpush3.bf16.msra.mxu1 %v4930_v33  ;;  %v4952_v55 = vld [vmem:[#allocation9 + $0xb0] sm:$0xff]   ;;  %v4955_v57 = vld [vmem:[#allocation9 + $0xf8] sm:$0xff]   ;;  %v5693_v59 = vld [vmem:[#allocation9 + $0x180] sm:$0xff]   ;;  %p5316_p12 = scmp.lt.s32.totalorder %s6050_s1, %s5314_s12  ;;  %p5317_p1 = scmp.lt.s32.totalorder %s5315_s21, %s5309_s24 }
  0xb3   : > { %4393 = vmatprep.subr.bf16.mxu1 %v4933_v36  ;;  %v4956_v58 = vld [vmem:[#allocation9 + $0xb8] sm:$0xff]   ;;  %v533_v61 = vld [vmem:[%s6105_s3] sm:$0x3]  ;;  %v582_v26 = vld [vmem:[#allocation2 + $0x20] sm:$0x80]  ;;  %p5312_p7 = pneg %p5311_p5 }
  0xb4   : > { %v538_v63 = vrot.slane %v533_v61, %v537_v60  ;;  %v604_v32 = vshll.u32 %v582_v26, 16  ;;  %p5318_p2 = por %p5317_p1, %p5316_p12 }
  0xb5   : > { %v5116_v12 = vpop.eup %5115 }
  0xb6   : > { %v5118_v13 = vpop.eup %5117  ;;  %v4146_v14 = vadd.f32 -1.0, %v5116_v12  ;;  %4394 = vmatpush3.bf16.msra.mxu1 %v4934_v37  ;;  %p5319_p13 = pnand %p5318_p2, %p5312_p7 }
  0xb7   : > { %v4147_v15 = vadd.f32 -1.0, %v5118_v13  ;;  %4395 = vmatprep.subr.bf16.mxu1 %v4937_v40 }
  0xb8   : > { %v400_v16 = vsel %vm390_vm0, %v388_v5, %v4146_v14 }
  0xb9   : > { %v401_v17 = vsel %vm391_vm1, %v389_v6, %v4147_v15  ;;  %v407_v18 = vrot.slane %v400_v16, 7 }
  0xba   : > { %v408_v19 = vrot.slane %v401_v17, 7  ;;  %v414_v25 = vpack.c.bf16 %v401_v17, %v400_v16  ;;  %4396 = vmatpush3.bf16.msra.mxu1 %v4938_v41  ;;  %v581_v17 = vld [vmem:[#allocation2 + $0x8] sm:$0x80] }
  0xbb   : > { %4397 = vmatprep.subr.bf16.mxu1 %v4941_v44  ;;  %v619_v27 = vrot.slane %v581_v17, 1 }
  0xbc   : > { %v410_v21 = vsel %vm409_vm2, %v407_v18, %v408_v19  ;;  %v411_v22 = vsel %vm409_vm2, %v408_v19, %v407_v18  ;;  %v577_v19 = vld [vmem:[#allocation2 + $0x8] sm:$0xc0] }
  0xbd   : > { %v412_v23 = vsel %vm405_vm3, %v411_v22, 0.0  ;;  %v579_v22 = vld [vmem:[#allocation2 + $0x20] sm:$0xc0] }
  0xbe   : > { %v417_v24 = vpack.c.bf16 %v410_v21, %v412_v23  ;;  %4398 = vmatpush3.bf16.msra.mxu1 %v4942_v45  ;;  %v660_v40 = vshll.u32 %v579_v22, 16  ;;  %v624_v45 = vrot.slane %v582_v26, 1 }
  0xbf   : > { %4399 = vmatprep.subr.bf16.mxu1 %v4945_v47 }
  0xc0   : > { %4150 = vmatmul.mubr.msk.bf16.vlgmr.msra.gmra.mrb[0].mxu0 %vm430_vm4, %v417_v24 }
  0xc1   : > { %491 = vmatpush1.bf16.msra.mxu0 %v4920_v20  ;;  %522 = vmatprep.mubr.bf16.mxu0 %v5394_v0  ;;  %v542_v0 = vrot.slane %v533_v61, %v541_v62 }
  0xc2   : > { %4415 = vmatprep.subr.bf16.mxu0 %v4927_v30  ;;  %4400 = vmatpush3.bf16.msra.mxu1 %v4946_v50  ;;  %v645_v30 = vshrl.u32 %v577_v19, 16 }
  0xc3   : > { %4401 = vmatprep.subr.bf16.mxu1 %v4949_v51  ;;  %v662_v51 = vrot.slane %v660_v40, 7 }
  0xc6   : > { %4402 = vmatpush3.bf16.msra.mxu1 %v4950_v54 }
  0xc7   : > { %4443 = vmatprep.subr.bf16.mxu1 %v4953_v56 }
  0xcc   : > { %4153 = vmatmul.mubr.msk.bf16.vlgmr.msra.gmra.mrb[0].mxu0 %vm430_vm4, %v414_v25  ;;  %v589_v25 = vshll.u32 %v581_v17, 16  ;;  %vm1639_vm4 = vcmask 1045504  }
  0xcd   : > { %4416 = vmatpush3.bf16.msra.mxu0 %v4928_v31  ;;  %v648_v31 = vshll.u32 %v577_v19, 16 }
  0xce   : > { %4417 = vmatprep.subr.bf16.mxu0 %v4931_v34  ;;  %v657_v34 = vshrl.u32 %v579_v22, 16 }
  0xcf   : > { %v650_v47 = vrot.slane %v648_v31, 7 }
  0xd0   : > { %v659_v50 = vrot.slane %v657_v34, 6 }
  0xd1   : > { %4418 = vmatpush3.bf16.msra.mxu0 %v4932_v35 }
  0xd2   : > { %4419 = vmatprep.subr.bf16.mxu0 %v4935_v38 }
  0xd5   : > { %4420 = vmatpush3.bf16.msra.mxu0 %v4936_v39 }
  0xd6   : > { %4421 = vmatprep.subr.bf16.mxu0 %v4939_v42  ;;  %v587_v42 = vshrl.u32 %v581_v17, 16 }
  0xd9   : > { %4422 = vmatpush3.bf16.msra.mxu0 %v4940_v43  ;;  %v591_v43 = vrot.slane %v589_v25, 1 }
  0xda   : > { %4423 = vmatprep.subr.bf16.mxu0 %v4943_v46  ;;  %v647_v46 = vrot.slane %v645_v30, 6 }
  0xdb   : > { %v592_v61 = vor.u32 %v591_v43, %v587_v42 }
  0xdc   : > { %v651_v60 = vor.u32 %v650_v47, %v647_v46 }
  0xdd   : > { %4424 = vmatpush3.bf16.msra.mxu0 %v4944_v48  ;;  %v602_v48 = vshrl.u32 %v582_v26, 16 }
  0xde   : > { %4425 = vmatprep.subr.bf16.mxu0 %v4947_v49 }
  0xe1   : > { %4426 = vmatpush3.bf16.msra.mxu0 %v4948_v52  ;;  %v606_v52 = vrot.slane %v604_v32, 1 }
  0xe2   : > { %4427 = vmatprep.subr.bf16.mxu0 %v4951_v53 }
  0xe5   : > { %4428 = vmatpush3.bf16.msra.mxu0 %v4952_v55 }
  0xe6   : > { %4429 = vmatprep.subr.bf16.mxu0 %v4955_v57 }
  0xe9   : > { %4430 = vmatpush3.bf16.msra.mxu0 %v4956_v58 }
  0xea   : > { %4699 = vmatprep.subr.bf16.mxu0 %v5693_v59 }
 0x19f   : > { %v524_v1 = vpop.f32.mrb[0].mxu0 }
 0x1a0   : > { %v5701_v2 = vadd.f32 %v538_v63, %v524_v1  ;;  %v526_v3 = vpop.f32.mrb[1].mxu0  ;;  %v607_v1 = vor.u32 %v606_v52, %v602_v48 }
 0x1a1   : > { %v5703_v4 = vadd.f32 %v542_v0, %v526_v3  ;;  %v528_v5 = vpop.f32.mrb[2].mxu0 }
 0x1a2   : > { %v553_v6 = vmin.f32 %v5701_v2, 0.0  ;;  %v5706_v7 = vadd.f32 %v538_v63, %v528_v5  ;;  %v530_v8 = vpop.f32.mrb[3].mxu0  ;;  %vm549_vm5 = vcmp.gt.f32.partialorder %v5701_v2, 0.0 }
 0x1a3   : > { %v554_v10 = vmin.f32 %v5703_v4, 0.0  ;;  %v5709_v11 = vadd.f32 %v542_v0, %v530_v8  ;;  %vm550_vm7 = vcmp.gt.f32.partialorder %v5703_v4, 0.0  ;;  %v663_v0 = vor.u32 %v662_v51, %v659_v50 }
 0x1a4   : > { %v557_v12 = vmul.f32 1.442695, %v553_v6  ;;  %v555_v9 = vmin.f32 %v5706_v7, 0.0  ;;  %vm551_vm6 = vcmp.gt.f32.partialorder %v5706_v7, 0.0 }
 0x1a5   : > { %v559_v13 = vmul.f32 1.442695, %v554_v10  ;;  %v556_v14 = vmin.f32 %v5709_v11, 0.0  ;;  %vm552_vm8 = vcmp.gt.f32.partialorder %v5709_v11, 0.0 }
 0x1a6   : > { %5119 = vpow2.f32 %v557_v12  ;;  %v561_v15 = vmul.f32 1.442695, %v555_v9 }
 0x1a7   : > { %5121 = vpow2.f32 %v559_v13  ;;  %v563_v16 = vmul.f32 1.442695, %v556_v14 }
 0x1a8   : > { %5123 = vpow2.f32 %v561_v15 }
 0x1a9   : > { %5125 = vpow2.f32 %v563_v16 }
 0x1b0   : > { %v5120_v18 = vpop.eup %5119 }
 0x1b1   : > { %v5122_v20 = vpop.eup %5121  ;;  %v4154_v21 = vadd.f32 -1.0, %v5120_v18 }
 0x1b2   : > { %v5124_v23 = vpop.eup %5123  ;;  %v4155_v24 = vadd.f32 -1.0, %v5122_v20 }
 0x1b3   : > { %v5126_v28 = vpop.eup %5125  ;;  %v4156_v29 = vadd.f32 -1.0, %v5124_v23  ;;  %v569_v35 = vsel %vm549_vm5, %v5701_v2, %v4154_v21  ;;  %vm1649_vm5 = vsmask.f32 4352 }
 0x1b4   : > { %v4157_v33 = vadd.f32 -1.0, %v5126_v28  ;;  %v570_v37 = vsel %vm550_vm7, %v5703_v4, %v4155_v24  ;;  %vm1704_vm7 = vsmask.f32 5376 }
 0x1b5   : > { %v571_v36 = vsel %vm551_vm6, %v5706_v7, %v4156_v29  ;;  %vm1619_vm6 = vsmask.f32 6400 }
 0x1b6   : > { %v573_v38 = vpack.c.bf16 %v571_v36, %v569_v35  ;;  %v572_v39 = vsel %vm552_vm8, %v5709_v11, %v4157_v33  ;;  %vm1729_vm8 = vcmask 1043456  }
 0x1b7   : > { %v5721_v41 = vpack.c.bf16 %v572_v39, %v570_v37 }
 0x1b8   : > { %575 = vst [vmem:[#allocation2 + $0x10] sm:$0xff] %v573_v38  ;;  %v620_v44 = vrot.slane %v573_v38, 1  ;;  %v628_v56 = vshrl.u32 %v573_v38, 16  ;;  %v631_v3 = vshll.u32 %v573_v38, 16  ;;  %v4954_v38 = vld [vmem:[#allocation9 + $0x100] sm:$0xff]  }
 0x1b9   : > { %576 = vst [vmem:[#allocation2 + $0x28] sm:$0xff] %v5721_v41  ;;  %v5725_v49 = vrot.slane %v5721_v41, 1 }
 0x1ba   : > { %v621_v53 = vsel %vm618_vm9, %v619_v27, %v620_v44  ;;  %v711_v54 = vshrl.u32 %v620_v44, 16  ;;  %v714_v55 = vshll.u32 %v620_v44, 16  ;;  %v630_v12 = vrot.slane %v628_v56, 1  ;;  %v4957_v44 = vld [vmem:[#allocation9 + $0x148] sm:$0xff]  }
 0x1bb   : > { %v703_v57 = vshrl.u32 %v621_v53, 16  ;;  %v626_v58 = vsel %vm618_vm9, %v624_v45, %v5725_v49  ;;  %v706_v62 = vshll.u32 %v621_v53, 16  ;;  %v728_v63 = vshrl.u32 %v5725_v49, 16 }
 0x1bc   : > { %v5731_v6 = vrot.slane %v711_v54, 6  ;;  %v5733_v8 = vrot.slane %v714_v55, 7  ;;  %v720_v10 = vshrl.u32 %v626_v58, 16  ;;  %v723_v16 = vshll.u32 %v626_v58, 16 }
 0x1bd   : > { %v5735_v15 = vrot.slane %v703_v57, 6  ;;  %v5737_v19 = vrot.slane %v706_v62, 7  ;;  %v5739_v20 = vrot.slane %v728_v63, 6  ;;  %v731_v24 = vshll.u32 %v5725_v49, 16  ;;  %v4958_v57 = vld [vmem:[#allocation9 + $0x108] sm:$0xff]   ;;  %v4960_v63 = vld [vmem:[#allocation9 + $0x150] sm:$0xff]  }
 0x1be   : > { %v5742_v28 = vrot.slane %v720_v10, 6  ;;  %v633_v32 = vrot.slane %v631_v3, 2  ;;  %v725_v55 = vrot.slane %v723_v16, 7 }
 0x1bf   : > { %v578_v5 = vld [vmem:[#allocation2 + $0x10] sm:$0x7f]  ;;  %v709_v10 = vor.u32 %v5737_v19, %v5735_v15  ;;  %v4965_v19 = vld [vmem:[#allocation9 + $0x190] sm:$0xff]  }
 0x1c0   : > { %v580_v9 = vld [vmem:[#allocation2 + $0x28] sm:$0x7f]  ;;  %v594_v13 = vshll.u32 %v578_v5, 16  ;;  %v598_v14 = vshrl.u32 %v578_v5, 16  ;;  %v634_v3 = vor.u32 %v633_v32, %v630_v12  ;;  %v4972_v32 = vld [vmem:[#allocation9 + $0x170] sm:$0xff]  }
 0x1c1   : > { %v609_v17 = vshll.u32 %v580_v9, 16  ;;  %v613_v18 = vshrl.u32 %v580_v9, 16  ;;  %v717_v9 = vor.u32 %v5733_v8, %v5731_v6  ;;  %v4963_v12 = vld [vmem:[#allocation9 + $0x158] sm:$0xff]  }
 0x1c2   : > { %v596_v21 = vrot.slane %v594_v13, 1  ;;  %v652_v22 = vrot.slane %v598_v14, 6  ;;  %v653_v23 = vrot.slane %v594_v13, 7  ;;  %v726_v13 = vor.u32 %v725_v55, %v5742_v28  ;;  %v4964_v8 = vld [vmem:[#allocation9 + $0x118] sm:$0xff]   ;;  %v4970_v28 = vld [vmem:[#allocation9 + $0x128] sm:$0xff]  }
 0x1c3   : > { %v611_v25 = vrot.slane %v609_v17, 1  ;;  %v664_v26 = vrot.slane %v613_v18, 6  ;;  %v665_v27 = vrot.slane %v609_v17, 7  ;;  %v4961_v17 = vld [vmem:[#allocation9 + $0x110] sm:$0xff]   ;;  %v718_v15 = vsel %vm643_vm10, %v709_v10, %v717_v9 }
 0x1c4   : > { %v654_v29 = vor.u32 %v653_v23, %v652_v22  ;;  %v597_v30 = vsel %vm585_vm11, %v592_v61, %v596_v21  ;;  %v600_v31 = vor.u32 %v598_v14, %v596_v21  ;;  %v733_v61 = vrot.slane %v731_v24, 7 }
 0x1c5   : > { %v666_v33 = vor.u32 %v665_v27, %v664_v26  ;;  %v669_v34 = vshrl.u32 %v597_v30, 16  ;;  %v672_v35 = vshll.u32 %v597_v30, 16  ;;  %v612_v36 = vsel %vm585_vm11, %v607_v1, %v611_v25  ;;  %v4968_v26 = vld [vmem:[#allocation9 + $0x198] sm:$0xff]  }
 0x1c6   : > { %v655_v37 = vsel %vm643_vm10, %v651_v60, %v654_v29  ;;  %v677_v39 = vshrl.u32 %v600_v31, 16  ;;  %v680_v40 = vshll.u32 %v600_v31, 16  ;;  %v615_v42 = vor.u32 %v613_v18, %v611_v25  ;;  %v4962_v18 = vld [vmem:[#allocation9 + $0x188] sm:$0xff]   ;;  %v4967_v25 = vld [vmem:[#allocation9 + $0x120] sm:$0xff]  }
 0x1c7   : > { %v667_v43 = vsel %vm643_vm10, %v663_v0, %v666_v33  ;;  %v671_v45 = vrot.slane %v669_v34, 6  ;;  %v674_v46 = vrot.slane %v672_v35, 7  ;;  %v686_v47 = vshrl.u32 %v612_v36, 16  ;;  %v4971_v29 = vld [vmem:[#allocation9 + $0x1a0] sm:$0xff]   ;;  %v4973_v33 = vld [vmem:[#allocation9 + $0x130] sm:$0xff]   ;;  %v4974_v34 = vld [vmem:[#allocation9 + $0x1a8] sm:$0xff]  }
 0x1c8   : > { %1249 = vmatprep.mubr.bf16.mxu1 %v667_v43  ;;  %v679_v48 = vrot.slane %v677_v39, 6  ;;  %v682_v49 = vrot.slane %v680_v40, 7  ;;  %v689_v50 = vshll.u32 %v612_v36, 16  ;;  %v694_v51 = vshrl.u32 %v615_v42, 16  ;;  %v4977_v39 = vld [vmem:[#allocation9 + $0x1b0] sm:$0xff]  }
 0x1c9   : > { %1250 = vmatmul.mubr.bf16.vlgmr.msra.gmra.mrb[0].mxu1 %v655_v37  ;;  %v675_v52 = vor.u32 %v674_v46, %v671_v45  ;;  %v688_v53 = vrot.slane %v686_v47, 6  ;;  %v697_v54 = vshll.u32 %v615_v42, 16  ;;  %v734_v14 = vor.u32 %v733_v61, %v5739_v20  ;;  %v4966_v20 = vld [vmem:[#allocation9 + $0x160] sm:$0xff]   ;;  %v4975_v37 = vld [vmem:[#allocation9 + $0x178] sm:$0xff]  }
 0x1ca   : > { %4444 = vmatpush3.bf16.msra.mxu1 %v4954_v38  ;;  %v683_v56 = vor.u32 %v682_v49, %v679_v48  ;;  %v691_v58 = vrot.slane %v689_v50, 7  ;;  %v696_v60 = vrot.slane %v694_v51, 6  ;;  %v737_v21 = vshrl.u32 %v634_v3, 16  ;;  %v4976_v38 = vld [vmem:[#allocation9 + $0x138] sm:$0xff]   ;;  %v4979_v47 = vld [vmem:[#allocation11] sm:$0xff]   ;;  %v4980_v48 = vld [vmem:[#allocation11 + $0x8] sm:$0xff]  }
 0x1cb   : > { %4445 = vmatprep.subr.bf16.mxu1 %v4957_v44  ;;  %v699_v62 = vrot.slane %v697_v54, 7  ;;  %v740_v22 = vshll.u32 %v634_v3, 16  ;;  %v735_v6 = vsel %vm643_vm10, %v726_v13, %v734_v14  ;;  %v636_v30 = vshrl.u32 %v5721_v41, 16  ;;  %v4981_v49 = vld [vmem:[#allocation11 + $0x10] sm:$0xff]   ;;  %v4982_v50 = vld [vmem:[#allocation11 + $0x18] sm:$0xff]   ;;  %v4983_v51 = vld [vmem:[#allocation11 + $0x20] sm:$0xff]  }
 0x1cc   : > { %v684_v0 = vsel %vm643_vm10, %v675_v52, %v683_v56  ;;  %v692_v1 = vor.u32 %v691_v58, %v688_v53  ;;  %v739_v23 = vrot.slane %v737_v21, 6  ;;  %v639_v31 = vshll.u32 %v5721_v41, 16  ;;  %v4978_v41 = vld [vmem:[#allocation9 + $0x1b8] sm:$0xff]   ;;  %v4984_v52 = vld [vmem:[#allocation11 + $0x28] sm:$0xff]   ;;  %v4985_v53 = vld [vmem:[#allocation11 + $0x30] sm:$0xff]  }
 0x1cd   : > { %1257 = vmatprep.mubr.bf16.mxu1 %v684_v0  ;;  %v700_v5 = vor.u32 %v699_v62, %v696_v60  ;;  %v742_v24 = vrot.slane %v740_v22, 7  ;;  %v638_v35 = vrot.slane %v636_v30, 1  ;;  %v4986_v54 = vld [vmem:[#allocation11 + $0x38] sm:$0xff]   ;;  %v4158_v62 = vld [vmem:[%s6107_s5] ss:$0 sm:$0xff] }
 0x1ce   : > { %4446 = vmatpush3.bf16.msra.mxu1 %v4958_v57  ;;  %v641_v36 = vrot.slane %v639_v31, 2 }
 0x1cf   : > { %v701_v16 = vsel %vm643_vm10, %v692_v1, %v700_v5  ;;  %4447 = vmatprep.subr.bf16.mxu1 %v4960_v63  ;;  %v743_v27 = vor.u32 %v742_v24, %v739_v23 }
 0x1d0   : > { %1298 = vmatprep.mubr.bf16.mxu0 %v701_v16  ;;  %v642_v40 = vor.u32 %v641_v36, %v638_v35 }
 0x1d1   : > { %1299 = vmatmul.mubr.bf16.vlgmr.msra.gmra.mrb[4].mxu0 %v684_v0  ;;  %1258 = vmatmul.mubr.bf16.gmra.mrb[4].mxu1 %v667_v43 }
 0x1d2   : > { %4700 = vmatpush3.bf16.msra.mxu0 %v5693_v59  ;;  %1306 = vmatprep.mubr.bf16.mxu0 %v718_v15  ;;  %v4969_v59 = vld [vmem:[#allocation9 + $0x168] sm:$0xff]   ;;  %v753_v42 = vshrl.u32 %v642_v40, 16  ;;  %v756_v43 = vshll.u32 %v642_v40, 16 }
 0x1d3   : > { %4448 = vmatpush3.bf16.msra.mxu1 %v4961_v17  ;;  %1347 = vmatprep.mubr.bf16.mxu1 %v735_v6 }
 0x1d4   : > { %4701 = vmatprep.subr.bf16.mxu0 %v4962_v18  ;;  %4449 = vmatprep.subr.bf16.mxu1 %v4963_v12  ;;  %v755_v44 = vrot.slane %v753_v42, 6  ;;  %v758_v45 = vrot.slane %v756_v43, 7 }
 0x1d6   : > { %4702 = vmatpush3.bf16.msra.mxu0 %v4962_v18  ;;  %v759_v46 = vor.u32 %v758_v45, %v755_v44 }
 0x1d7   : > { %4450 = vmatpush3.bf16.msra.mxu1 %v4964_v8  ;;  %4703 = vmatprep.subr.bf16.mxu0 %v4965_v19 }
 0x1d8   : > { %4451 = vmatprep.subr.bf16.mxu1 %v4966_v20 }
 0x1d9   : > { %1307 = vmatmul.mubr.bf16.gmra.mrb[8].mxu0 %v701_v16 }
 0x1da   : > { %4704 = vmatpush3.bf16.msra.mxu0 %v4965_v19  ;;  %4715 = vmatprep.mubr.bf16.mxu0 %v743_v27 }
 0x1db   : > { %4452 = vmatpush3.bf16.msra.mxu1 %v4967_v25  ;;  %4705 = vmatprep.subr.bf16.mxu0 %v4968_v26 }
 0x1dc   : > { %4453 = vmatprep.subr.bf16.mxu1 %v4969_v59 }
 0x1de   : > { %4706 = vmatpush3.bf16.msra.mxu0 %v4968_v26 }
 0x1df   : > { %4454 = vmatpush3.bf16.msra.mxu1 %v4970_v28  ;;  %4707 = vmatprep.subr.bf16.mxu0 %v4971_v29 }
 0x1e0   : > { %4455 = vmatprep.subr.bf16.mxu1 %v4972_v32 }
 0x1e2   : > { %4708 = vmatpush3.bf16.msra.mxu0 %v4971_v29 }
 0x1e3   : > { %4456 = vmatpush3.bf16.msra.mxu1 %v4973_v33  ;;  %4709 = vmatprep.subr.bf16.mxu0 %v4974_v34 }
 0x1e4   : > { %4457 = vmatprep.subr.bf16.mxu1 %v4975_v37 }
 0x1e6   : > { %4710 = vmatpush3.bf16.msra.mxu0 %v4974_v34 }
 0x1e7   : > { %4458 = vmatpush3.bf16.msra.mxu1 %v4976_v38  ;;  %4711 = vmatprep.subr.bf16.mxu0 %v4977_v39 }
 0x1e8   : > { %4719 = vmatprep.subr.bf16.mxu1 %v4979_v47 }
 0x1ea   : > { %4712 = vmatpush3.bf16.msra.mxu0 %v4977_v39  ;;  %1348 = vmatmul.mubr.bf16.vlgmr.msra.gmra.mrb[8].mxu1 %v718_v15 }
 0x1eb   : > { %1355 = vmatprep.mubr.bf16.mxu1 %v743_v27  ;;  %4713 = vmatprep.subr.bf16.mxu0 %v4978_v41 }
 0x1ec   : > { %4720 = vmatpush3.bf16.msra.mxu1 %v4979_v47 }
 0x1ed   : > { %4721 = vmatprep.subr.bf16.mxu1 %v4980_v48 }
 0x1ee   : > { %4714 = vmatpush3.bf16.msra.mxu0 %v4978_v41 }
 0x1f0   : > { %4722 = vmatpush3.bf16.msra.mxu1 %v4980_v48 }
 0x1f1   : > { %4716 = vmatmul.mubr.bf16.vlgmr.msra.gmra.mrb[12].mxu0 %v759_v46  ;;  %4723 = vmatprep.subr.bf16.mxu1 %v4981_v49 }
 0x1f2   : > { %1356 = vmatmul.mubr.bf16.gmra.mrb[12].mxu1 %v735_v6 }
 0x1f4   : > { %4724 = vmatpush3.bf16.msra.mxu1 %v4981_v49 }
 0x1f5   : > { %4725 = vmatprep.subr.bf16.mxu1 %v4982_v50 }
 0x1f8   : > { %4726 = vmatpush3.bf16.msra.mxu1 %v4982_v50 }
 0x1f9   : > { %4727 = vmatprep.subr.bf16.mxu1 %v4983_v51 }
 0x1fc   : > { %4728 = vmatpush3.bf16.msra.mxu1 %v4983_v51 }
 0x1fd   : > { %4729 = vmatprep.subr.bf16.mxu1 %v4984_v52 }
 0x200   : > { %4730 = vmatpush3.bf16.msra.mxu1 %v4984_v52 }
 0x201   : > { %4731 = vmatprep.subr.bf16.mxu1 %v4985_v53 }
 0x204   : > { %4732 = vmatpush3.bf16.msra.mxu1 %v4985_v53 }
 0x205   : > { %4733 = vmatprep.subr.bf16.mxu1 %v4986_v54 }
 0x208   : > { %4734 = vmatpush3.bf16.msra.mxu1 %v4986_v54 }
 0x29c   : > { %v4403_v55 = vpop.f32.mrb[0].mxu1 }
 0x29d   : > { %v4404_v56 = vpop.f32.mrb[1].mxu1 }
 0x29e   : > { %v4405_v57 = vadd.f32 %v4404_v56, %v4403_v55  ;;  %v4406_v58 = vpop.f32.mrb[2].mxu1 }
 0x29f   : > { %v4407_v60 = vpop.f32.mrb[3].mxu1 }
 0x2a0   : > { %v4408_v61 = vadd.f32 %v4407_v60, %v4406_v58  ;;  %v1252_v5 = vadd.f32 %v4405_v57, %v4158_v62 }
 0x2a2   : > { %v1255_v18 = vadd.f32 %v4408_v61, %v4158_v62 }
 0x2a4   : > { %v4431_v63 = vpop.f32.mrb[4].mxu0  ;;  %v4409_v0 = vpop.f32.mrb[4].mxu1 }
 0x2a5   : > { %v4432_v1 = vpop.f32.mrb[5].mxu0  ;;  %v4410_v3 = vpop.f32.mrb[5].mxu1 }
 0x2a6   : > { %v4433_v10 = vadd.f32 %v4432_v1, %v4431_v63  ;;  %v4434_v9 = vpop.f32.mrb[6].mxu0  ;;  %v4411_v13 = vadd.f32 %v4410_v3, %v4409_v0  ;;  %v4412_v14 = vpop.f32.mrb[6].mxu1 }
 0x2a7   : > { %v4435_v16 = vpop.f32.mrb[7].mxu0  ;;  %v4413_v17 = vpop.f32.mrb[7].mxu1 }
 0x2a8   : > { %v1301_v12 = vadd.f32 %v4433_v10, %v1252_v5  ;;  %v4436_v21 = vadd.f32 %v4435_v16, %v4434_v9  ;;  %v4414_v22 = vadd.f32 %v4413_v17, %v4412_v14  ;;  %v1260_v19 = vadd.f32 %v4411_v13, %v4158_v62 }
 0x2aa   : > { %v1304_v15 = vadd.f32 %v4436_v21, %v1255_v18  ;;  %v1263_v25 = vadd.f32 %v4414_v22, %v4158_v62  ;;  %v4988_v21 = vld [vmem:[#allocation9 + $0x1c0] sm:$0xff]  }
 0x2ab   : > { %v4989_v22 = vld [vmem:[#allocation9 + $0x280] sm:$0xff]  }
 0x2ac   : > { %v4437_v6 = vpop.f32.mrb[8].mxu0  ;;  %4519 = vmatprep.subr.bf16.mxu1 %v4989_v22 }
 0x2ad   : > { %v4438_v8 = vpop.f32.mrb[9].mxu0 }
 0x2ae   : > { %v4439_v20 = vadd.f32 %v4438_v8, %v4437_v6  ;;  %v4440_v23 = vpop.f32.mrb[10].mxu0  ;;  %v4991_v6 = vld [vmem:[#allocation9 + $0x208] sm:$0xff]  }
 0x2af   : > { %v4441_v24 = vpop.f32.mrb[11].mxu0  ;;  %v4992_v8 = vld [vmem:[#allocation9 + $0x1c8] sm:$0xff]  }
 0x2b0   : > { %v1309_v26 = vadd.f32 %v4439_v20, %v1260_v19  ;;  %v4442_v27 = vadd.f32 %v4441_v24, %v4440_v23  ;;  %v4993_v19 = vld [vmem:[#allocation9 + $0x288] sm:$0xff]   ;;  %v4995_v23 = vld [vmem:[#allocation9 + $0x210] sm:$0xff]  }
 0x2b1   : > { %v4994_v20 = vld [vmem:[#allocation9 + $0x248] sm:$0xff]   ;;  %v4997_v24 = vld [vmem:[#allocation9 + $0x290] sm:$0xff]  }
 0x2b2   : > { %v1312_v59 = vadd.f32 %v4442_v27, %v1263_v25  ;;  %v4996_v25 = vld [vmem:[#allocation9 + $0x1d0] sm:$0xff]   ;;  %v4999_v27 = vld [vmem:[#allocation9 + $0x218] sm:$0xff]  }
 0x2bd   : > { %v4459_v28 = vpop.f32.mrb[8].mxu1 }
 0x2be   : > { %v4460_v29 = vpop.f32.mrb[9].mxu1 }
 0x2bf   : > { %v4461_v30 = vadd.f32 %v4460_v29, %v4459_v28  ;;  %v4462_v31 = vpop.f32.mrb[10].mxu1  ;;  %v5000_v28 = vld [vmem:[#allocation9 + $0x1d8] sm:$0xff]  }
 0x2c0   : > { %v4463_v32 = vpop.f32.mrb[11].mxu1  ;;  %v5002_v29 = vld [vmem:[#allocation9 + $0x258] sm:$0xff]  }
 0x2c1   : > { %v4464_v33 = vadd.f32 %v4463_v32, %v4462_v31  ;;  %v1350_v34 = vadd.f32 %v4461_v30, %v1301_v12  ;;  %v4987_v12 = vld [vmem:[#allocation9 + $0x200] sm:$0xff]  }
 0x2c2   : > { %4491 = vmatprep.subr.bf16.mxu0 %v4987_v12  ;;  %v5003_v30 = vld [vmem:[#allocation9 + $0x220] sm:$0xff]  }
 0x2c3   : > { %v1353_v35 = vadd.f32 %v4464_v33, %v1304_v15  ;;  %v4990_v15 = vld [vmem:[#allocation9 + $0x240] sm:$0xff]   ;;  %4492 = vmatpush3.bf16.msra.mxu0 %v4988_v21  ;;  %v1675_v21 = vld [vmem:[#allocation2 + $0x20] sm:$0xf8] }
 0x2c4   : > { %v4717_v36 = vpop.f32.mrb[12].mxu0  ;;  %4493 = vmatprep.subr.bf16.mxu0 %v4991_v6  ;;  %v5005_v31 = vld [vmem:[#allocation9 + $0x2a0] sm:$0xff]  }
 0x2c5   : > { %v1398_v37 = vpop.f32.mrb[13].mxu0  ;;  %v4465_v38 = vpop.f32.mrb[12].mxu1  ;;  %v5004_v32 = vld [vmem:[#allocation9 + $0x1e0] sm:$0xff]  }
 0x2c6   : > { %v1399_v39 = vadd.f32 %v1398_v37, %v1350_v34  ;;  %v4718_v40 = vpop.f32.mrb[14].mxu0  ;;  %v4466_v41 = vpop.f32.mrb[13].mxu1  ;;  %v5006_v33 = vld [vmem:[#allocation9 + $0x260] sm:$0xff]   ;;  %v5007_v34 = vld [vmem:[#allocation9 + $0x228] sm:$0xff]  }
 0x2c7   : > { %v4467_v42 = vadd.f32 %v4466_v41, %v4465_v38  ;;  %v1401_v43 = vpop.f32.mrb[15].mxu0  ;;  %v4468_v44 = vpop.f32.mrb[14].mxu1  ;;  %4494 = vmatpush3.bf16.msra.mxu0 %v4992_v8  ;;  %v5010_v37 = vld [vmem:[#allocation9 + $0x268] sm:$0xff]   ;;  %v5011_v38 = vld [vmem:[#allocation9 + $0x230] sm:$0xff]  }
 0x2c8   : > { %v1417_v45 = vmin.f32 %v1399_v39, 0.0  ;;  %v1402_v46 = vadd.f32 %v1401_v43, %v1353_v35  ;;  %v4469_v47 = vpop.f32.mrb[15].mxu1  ;;  %vm1413_vm12 = vcmp.gt.f32.partialorder %v1399_v39, 0.0  ;;  %4495 = vmatprep.subr.bf16.mxu0 %v4995_v23  ;;  %v5009_v35 = vld [vmem:[#allocation9 + $0x2a8] sm:$0xff]   ;;  %v5014_v41 = vld [vmem:[#allocation9 + $0x270] sm:$0xff]   ;;  %v5017_v43 = vld [vmem:[#allocation9 + $0x2b8] sm:$0xff]  }
 0x2c9   : > { %v1358_v48 = vadd.f32 %v4467_v42, %v1309_v26  ;;  %v4470_v49 = vadd.f32 %v4469_v47, %v4468_v44  ;;  %v4998_v26 = vld [vmem:[#allocation9 + $0x250] sm:$0xff]   ;;  %v5015_v42 = vld [vmem:[#allocation9 + $0x238] sm:$0xff]   ;;  %v5764_v47 = vld [vmem:[#allocation9 + $0x340] sm:$0xff]  }
 0x2ca   : > { %v1421_v50 = vmul.f32 1.442695, %v1417_v45  ;;  %v1418_v51 = vmin.f32 %v1402_v46, 0.0  ;;  %vm1414_vm13 = vcmp.gt.f32.partialorder %v1402_v46, 0.0  ;;  %v5016_v44 = vld [vmem:[#allocation9 + $0x1f8] sm:$0xff]  }
 0x2cb   : > { %v1407_v52 = vadd.f32 %v4717_v36, %v1358_v48  ;;  %v1361_v53 = vadd.f32 %v4470_v49, %v1312_v59  ;;  %v5001_v59 = vld [vmem:[#allocation9 + $0x298] sm:$0xff]   ;;  %4496 = vmatpush3.bf16.msra.mxu0 %v4996_v25  ;;  %v5008_v36 = vld [vmem:[#allocation9 + $0x1e8] sm:$0xff]   ;;  %v4219_v48 = vld [vmem:[%s6109_s7] ss:$0 sm:$0xff] }
 0x2cc   : > { %5127 = vpow2.f32 %v1421_v50  ;;  %v1423_v54 = vmul.f32 1.442695, %v1418_v51  ;;  %4497 = vmatprep.subr.bf16.mxu0 %v4999_v27  ;;  %v5018_v45 = vld [vmem:[#allocation9 + $0x278] sm:$0xff]  }
 0x2cd   : > { %v1419_v55 = vmin.f32 %v1407_v52, 0.0  ;;  %v1410_v56 = vadd.f32 %v4718_v40, %v1361_v53  ;;  %vm1415_vm14 = vcmp.gt.f32.partialorder %v1407_v52, 0.0  ;;  %v5012_v40 = vld [vmem:[#allocation9 + $0x1f0] sm:$0xff]  }
 0x2ce   : > { %5129 = vpow2.f32 %v1423_v54 }
 0x2cf   : > { %v1425_v57 = vmul.f32 1.442695, %v1419_v55  ;;  %v1420_v58 = vmin.f32 %v1410_v56, 0.0  ;;  %vm1416_vm15 = vcmp.gt.f32.partialorder %v1410_v56, 0.0  ;;  %4498 = vmatpush3.bf16.msra.mxu0 %v5000_v28  ;;  %v1601_v28 = vld [vmem:[#allocation2 + $0x20] sm:$0x80] }
 0x2d0   : > { %4499 = vmatprep.subr.bf16.mxu0 %v5003_v30 }
 0x2d1   : > { %5131 = vpow2.f32 %v1425_v57  ;;  %v1427_v60 = vmul.f32 1.442695, %v1420_v58 }
 0x2d3   : > { %5133 = vpow2.f32 %v1427_v60  ;;  %4500 = vmatpush3.bf16.msra.mxu0 %v5004_v32 }
 0x2d4   : > { %4501 = vmatprep.subr.bf16.mxu0 %v5007_v34  ;;  %v1863_v34 = vshll.u32 %v1675_v21, 16 }
 0x2d6   : > { %v5128_v61 = vpop.eup %5127 }
 0x2d7   : > { %v4215_v62 = vadd.f32 -1.0, %v5128_v61  ;;  %4502 = vmatpush3.bf16.msra.mxu0 %v5008_v36 }
 0x2d8   : > { %v5130_v63 = vpop.eup %5129  ;;  %4503 = vmatprep.subr.bf16.mxu0 %v5011_v38  ;;  %v1654_v38 = vshll.u32 %v1601_v28, 16 }
 0x2d9   : > { %v4216_v0 = vadd.f32 -1.0, %v5130_v63  ;;  %v1433_v3 = vsel %vm1413_vm12, %v1399_v39, %v4215_v62  ;;  %v5013_v39 = vld [vmem:[#allocation9 + $0x2b0] sm:$0xff]  }
 0x2db   : > { %v5132_v1 = vpop.eup %5131  ;;  %v1434_v5 = vsel %vm1414_vm13, %v1402_v46, %v4216_v0  ;;  %4504 = vmatpush3.bf16.msra.mxu0 %v5012_v40  ;;  %v5019_v46 = vld [vmem:[#allocation9 + $0x300] sm:$0xff]  }
 0x2dc   : > { %v4217_v10 = vadd.f32 -1.0, %v5132_v1  ;;  %v1437_v9 = vpack.c.bf16 %v1434_v5, %v1433_v3  ;;  %4505 = vmatprep.subr.bf16.mxu0 %v5015_v42 }
 0x2dd   : > { %v5134_v13 = vpop.eup %5133 }
 0x2de   : > { %v4218_v14 = vadd.f32 -1.0, %v5134_v13  ;;  %4735 = vmatprep.mubr.bf16.mxu1 %v1437_v9  ;;  %v1435_v16 = vsel %vm1415_vm14, %v1407_v52, %v4217_v10  ;;  %v5786_v10 = vld [vmem:[#allocation2 + $0x20] sm:$0xf0]  ;;  %v1595_v9 = vld [vmem:[#allocation2 + $0x8] sm:$0xe0] }
 0x2df   : > { %4506 = vmatpush3.bf16.msra.mxu0 %v5016_v44  ;;  %v1621_v8 = vshrl.u32 %v1595_v9, 16 }
 0x2e0   : > { %v1436_v17 = vsel %vm1416_vm15, %v1410_v56, %v4218_v14  ;;  %4547 = vmatprep.subr.bf16.mxu0 %v5019_v46  ;;  %v5788_v14 = vld [vmem:[#allocation2 + $0x20] sm:$0xe0] }
 0x2e1   : > { %v1438_v18 = vpack.c.bf16 %v1436_v17, %v1435_v16  ;;  %v1691_v36 = vshll.u32 %v5788_v14, 16 }
 0x2e3   : > { %4736 = vmatmul.mubr.bf16.vlgmr.msra.gmra.mrb[16].mxu1 %v1438_v18  ;;  %v1607_v18 = vshll.u32 %v5786_v10, 16 }
 0x2e4   : > { %4520 = vmatpush3.bf16.msra.mxu1 %v4990_v15 }
 0x2e5   : > { %4521 = vmatprep.subr.bf16.mxu1 %v4993_v19  ;;  %v1624_v19 = vshll.u32 %v1595_v9, 16  ;;  %v1609_v40 = vrot.slane %v1607_v18, 1 }
 0x2e7   : > { %v5815_v44 = vrot.slane %v1624_v19, 2 }
 0x2e8   : > { %4522 = vmatpush3.bf16.msra.mxu1 %v4994_v20 }
 0x2e9   : > { %4523 = vmatprep.subr.bf16.mxu1 %v4997_v24 }
 0x2ec   : > { %4524 = vmatpush3.bf16.msra.mxu1 %v4998_v26  ;;  %v1688_v26 = vshrl.u32 %v5788_v14, 16 }
 0x2ed   : > { %4525 = vmatprep.subr.bf16.mxu1 %v5001_v59  ;;  %v1860_v59 = vshrl.u32 %v1675_v21, 16 }
 0x2f0   : > { %4526 = vmatpush3.bf16.msra.mxu1 %v5002_v29 }
 0x2f1   : > { %4527 = vmatprep.subr.bf16.mxu1 %v5005_v31 }
 0x2f4   : > { %4528 = vmatpush3.bf16.msra.mxu1 %v5006_v33 }
 0x2f5   : > { %4529 = vmatprep.subr.bf16.mxu1 %v5009_v35 }
 0x2f8   : > { %4530 = vmatpush3.bf16.msra.mxu1 %v5010_v37  ;;  %v1651_v37 = vshrl.u32 %v1601_v28, 16 }
 0x2f9   : > { %4531 = vmatprep.subr.bf16.mxu1 %v5013_v39  ;;  %v1605_v39 = vshrl.u32 %v5786_v10, 16 }
 0x2fc   : > { %4532 = vmatpush3.bf16.msra.mxu1 %v5014_v41 }
 0x2fd   : > { %4533 = vmatprep.subr.bf16.mxu1 %v5017_v43  ;;  %v5813_v43 = vrot.slane %v1621_v8, 1 }
 0x300   : > { %4534 = vmatpush3.bf16.msra.mxu1 %v5018_v45 }
 0x301   : > { %4739 = vmatprep.subr.bf16.mxu1 %v5764_v47 }
 0x3b6   : > { %v4737_v49 = vpop.f32.mrb[16].mxu1 }
 0x3b7   : > { %v1553_v50 = vadd.f32 %v4737_v49, %v4219_v48  ;;  %v1544_v51 = vpop.f32.mrb[17].mxu1 }
 0x3b8   : > { %v1545_v52 = vadd.f32 %v4219_v48, %v1544_v51  ;;  %v4738_v53 = vpop.f32.mrb[18].mxu1  ;;  %v5823_v51 = vrot.slane %v1860_v59, 3 }
 0x3b9   : > { %v5771_v54 = vadd.f32 %v1553_v50, %v5703_v4  ;;  %v1556_v55 = vadd.f32 %v4738_v53, %v4219_v48  ;;  %v1547_v56 = vpop.f32.mrb[19].mxu1  ;;  %v5827_v53 = vrot.slane %v1863_v34, 4 }
 0x3ba   : > { %v5774_v57 = vadd.f32 %v1545_v52, %v5701_v2  ;;  %v1548_v58 = vadd.f32 %v4219_v48, %v1547_v56  ;;  %v5817_v48 = vld [vmem:[#allocation2 + $0x8] sm:$0xf0]  ;;  %v5825_v52 = vrot.slane %v1688_v26, 1  ;;  %v5831_v56 = vrot.slane %v1651_v37, 3 }
 0x3bb   : > { %v1568_v60 = vmin.f32 %v5771_v54, 0.0  ;;  %v5778_v61 = vadd.f32 %v1556_v55, %v5709_v11  ;;  %v1591_v11 = vld [vmem:[#allocation2 + $0x8] sm:$0xf8]  ;;  %vm1564_vm0 = vcmp.gt.f32.partialorder %v5771_v54, 0.0  ;;  %v5829_v55 = vrot.slane %v1691_v36, 2 }
 0x3bc   : > { %v1567_v62 = vmin.f32 %v5774_v57, 0.0  ;;  %v5782_v63 = vadd.f32 %v1548_v58, %v5706_v7  ;;  %v5790_v7 = vld [vmem:[#allocation2 + $0x8] sm:$0xc0]  ;;  %v1742_v12 = vshrl.u32 %v1591_v11, 16  ;;  %v1745_v6 = vshll.u32 %v1591_v11, 16 }
 0x3bd   : > { %v1573_v0 = vmul.f32 1.442695, %v1568_v60  ;;  %v1570_v4 = vmin.f32 %v5778_v61, 0.0  ;;  %v1706_v24 = vshrl.u32 %v5790_v7, 16  ;;  %v1709_v25 = vshll.u32 %v5790_v7, 16 }
 0x3be   : > { %v1571_v1 = vmul.f32 1.442695, %v1567_v62  ;;  %v1569_v3 = vmin.f32 %v5782_v63, 0.0  ;;  %vm1566_vm1 = vcmp.gt.f32.partialorder %v5778_v61, 0.0  ;;  %vm1563_vm2 = vcmp.gt.f32.partialorder %v5774_v57, 0.0 }
 0x3bf   : > { %5135 = vpow2.f32 %v1573_v0  ;;  %v1577_v2 = vmul.f32 1.442695, %v1570_v4  ;;  %vm1565_vm3 = vcmp.gt.f32.partialorder %v5782_v63, 0.0  ;;  %v5809_v41 = vrot.slane %v1742_v12, 3  ;;  %v5835_v60 = vld [vmem:[#allocation2 + $0x8] sm:$0x80] }
 0x3c0   : > { %5137 = vpow2.f32 %v1571_v1  ;;  %v1575_v5 = vmul.f32 1.442695, %v1569_v3  ;;  %v5811_v42 = vrot.slane %v1745_v6, 4  ;;  %v5819_v49 = vrot.slane %v1706_v24, 2 }
 0x3c1   : > { %5139 = vpow2.f32 %v1577_v2  ;;  %v5821_v50 = vrot.slane %v1709_v25, 3  ;;  %v5833_v58 = vrot.slane %v1654_v38, 4  ;;  %v1640_v4 = vrot.slane %v5788_v14, 2 }
 0x3c2   : > { %5141 = vpow2.f32 %v1575_v5  ;;  %v1610_v1 = vor.u32 %v1609_v40, %v1605_v39  ;;  %v1684_v3 = vrot.slane %v5817_v48, 1  ;;  %v1748_v2 = vor.u32 %v5811_v42, %v5809_v41 }
 0x3c3   : > { %v1627_v5 = vor.u32 %v5815_v44, %v5813_v43  ;;  %v1646_v10 = vrot.slane %v5790_v7, 3  ;;  %v1730_v11 = vrot.slane %v5835_v60, 4  ;;  %v1712_v14 = vor.u32 %v5821_v50, %v5819_v49  ;;  %v1679_v60 = vld [vmem:[#allocation2 + $0x20] sm:$0xc0] }
 0x3c4   : > { %v1694_v18 = vor.u32 %v5829_v55, %v5825_v52  ;;  %v1657_v12 = vor.u32 %v5833_v58, %v5831_v56  ;;  %v5035_v56 = vld [vmem:[#allocation9 + $0x2e8] sm:$0xff]   ;;  %v5037_v7 = vld [vmem:[#allocation9 + $0x330] sm:$0xff]  }
 0x3c9   : > { %v5136_v13 = vpop.eup %5135 }
 0x3ca   : > { %v5138_v16 = vpop.eup %5137  ;;  %v4229_v17 = vadd.f32 -1.0, %v5136_v13 }
 0x3cb   : > { %v5140_v22 = vpop.eup %5139  ;;  %v4228_v15 = vadd.f32 -1.0, %v5138_v16  ;;  %v1866_v16 = vor.u32 %v5827_v53, %v5823_v51  ;;  %v5028_v51 = vld [vmem:[#allocation9 + $0x318] sm:$0xff]  }
 0x3cc   : > { %v5142_v20 = vpop.eup %5141  ;;  %v4231_v23 = vadd.f32 -1.0, %v5140_v22  ;;  %v1584_v29 = vsel %vm1564_vm0, %v5771_v54, %v4229_v17  ;;  %vm2823_vm0 = vsmask.f32 3328 }
 0x3cd   : > { %v4230_v27 = vadd.f32 -1.0, %v5142_v20  ;;  %v1583_v31 = vsel %vm1563_vm2, %v5774_v57, %v4228_v15 }
 0x3ce   : > { %v1586_v30 = vsel %vm1566_vm1, %v5778_v61, %v4231_v23 }
 0x3cf   : > { %v5803_v32 = vpack.c.bf16 %v1586_v30, %v1584_v29  ;;  %v1585_v33 = vsel %vm1565_vm3, %v5782_v63, %v4230_v27 }
 0x3d0   : > { %v1587_v35 = vpack.c.bf16 %v1585_v33, %v1583_v31 }
 0x3d1   : > { %1590 = vst [vmem:[#allocation2 + $0x28] sm:$0xff] %v5803_v32 }
 0x3d2   : > { %1589 = vst [vmem:[#allocation2 + $0x10] sm:$0xff] %v1587_v35  ;;  %v1668_v45 = vshrl.u32 %v1587_v35, 16  ;;  %v1671_v46 = vshll.u32 %v1587_v35, 16  ;;  %v5860_v8 = vrot.slane %v1587_v35, 4 }
 0x3d4   : > { %v1670_v62 = vrot.slane %v1668_v45, 4  ;;  %v1673_v0 = vrot.slane %v1671_v46, 5 }
 0x3d6   : > { %v5858_v6 = vor.u32 %v1673_v0, %v1670_v62 }
 0x3d8   : > { %v1598_v9 = vld [vmem:[#allocation2 + $0x28] sm:$0x3f] }
 0x3d9   : > { %v5845_v13 = vld [vmem:[#allocation2 + $0x28] sm:$0xf]  ;;  %v1641_v21 = vrot.slane %v1598_v9, 2  ;;  %v1592_v15 = vld [vmem:[#allocation2 + $0x10] sm:$0xf] }
 0x3da   : > { %v5851_v17 = vld [vmem:[#allocation2 + $0x28] sm:$0x1f]  ;;  %v1612_v22 = vshll.u32 %v5845_v13, 16  ;;  %v1616_v19 = vshrl.u32 %v5845_v13, 16  ;;  %v1750_v20 = vshrl.u32 %v1592_v15, 16  ;;  %v1753_v23 = vshll.u32 %v1592_v15, 16 }
 0x3db   : > { %v1696_v24 = vshrl.u32 %v5851_v17, 16  ;;  %v1642_v25 = vsel %vm1639_vm4, %v1640_v4, %v1641_v21  ;;  %v1801_v26 = vshrl.u32 %v1641_v21, 16  ;;  %v1804_v27 = vshll.u32 %v1641_v21, 16  ;;  %v1596_v37 = vld [vmem:[#allocation2 + $0x10] sm:$0x1f] }
 0x3dc   : > { %v1614_v59 = vrot.slane %v1612_v22, 1  ;;  %v1793_v28 = vshrl.u32 %v1642_v25, 16  ;;  %v1796_v29 = vshll.u32 %v1642_v25, 16  ;;  %v1752_v30 = vrot.slane %v1750_v20, 3 }
 0x3dd   : > { %v1755_v31 = vrot.slane %v1753_v23, 4  ;;  %v1803_v33 = vrot.slane %v1801_v26, 3  ;;  %v1806_v34 = vrot.slane %v1804_v27, 4  ;;  %v1685_v9 = vrot.slane %v1596_v37, 1  ;;  %v1678_v23 = vld [vmem:[#allocation2 + $0x10] sm:$0x3f] }
 0x3de   : > { %v1615_v35 = vsel %vm585_vm11, %v1610_v1, %v1614_v59  ;;  %v1618_v36 = vor.u32 %v1616_v19, %v1614_v59  ;;  %v1795_v38 = vrot.slane %v1793_v28, 3  ;;  %v1798_v39 = vrot.slane %v1796_v29, 4 }
 0x3df   : > { %v1759_v40 = vshrl.u32 %v1615_v35, 16  ;;  %v1762_v41 = vshll.u32 %v1615_v35, 16  ;;  %v1807_v42 = vor.u32 %v1806_v34, %v1803_v33  ;;  %v1756_v48 = vor.u32 %v1755_v31, %v1752_v30  ;;  %v5020_v33 = vld [vmem:[#allocation9 + $0x2c0] sm:$0xff]  }
 0x3e0   : > { %v1767_v45 = vshrl.u32 %v1618_v36, 16  ;;  %v1770_v46 = vshll.u32 %v1618_v36, 16  ;;  %v1799_v62 = vor.u32 %v1798_v39, %v1795_v38  ;;  %v1629_v1 = vshrl.u32 %v1596_v37, 16 }
 0x3e1   : > { %v1761_v0 = vrot.slane %v1759_v40, 3  ;;  %v1764_v4 = vrot.slane %v1762_v41, 4  ;;  %v1757_v20 = vsel %vm1649_vm5, %v1748_v2, %v1756_v48  ;;  %v1686_v27 = vsel %vm618_vm9, %v1684_v3, %v1685_v9 }
 0x3e2   : > { %v1769_v21 = vrot.slane %v1767_v45, 3  ;;  %v1772_v15 = vrot.slane %v1770_v46, 4  ;;  %v1808_v25 = vsel %vm1649_vm5, %v1799_v62, %v1807_v42  ;;  %v1880_v59 = vshrl.u32 %v1685_v9, 16  ;;  %v5022_v42 = vld [vmem:[#allocation9 + $0x308] sm:$0xff]   ;;  %v5872_v45 = vld [vmem:[#allocation2 + $0x28] sm:$0x7f] }
 0x3e3   : > { %v1765_v26 = vor.u32 %v1764_v4, %v1761_v0  ;;  %2510 = vmatprep.mubr.bf16.mxu1 %v1808_v25  ;;  %v1872_v29 = vshrl.u32 %v1686_v27, 16  ;;  %v1875_v30 = vshll.u32 %v1686_v27, 16  ;;  %v1883_v31 = vshll.u32 %v1685_v9, 16 }
 0x3e4   : > { %v1773_v28 = vor.u32 %v1772_v15, %v1769_v21  ;;  %v1882_v34 = vrot.slane %v1880_v59, 3  ;;  %v1631_v35 = vrot.slane %v1629_v1, 1  ;;  %v1632_v36 = vshll.u32 %v1596_v37, 16  ;;  %v5023_v1 = vld [vmem:[#allocation9 + $0x2c8] sm:$0xff]  }
 0x3e5   : > { %v1714_v38 = vshrl.u32 %v1678_v23, 16  ;;  %v1874_v39 = vrot.slane %v1872_v29, 3  ;;  %v1877_v40 = vrot.slane %v1875_v30, 4  ;;  %v1885_v41 = vrot.slane %v1883_v31, 4 }
 0x3e6   : > { %v1774_v2 = vsel %vm1649_vm5, %v1765_v26, %v1773_v28  ;;  %v1634_v3 = vrot.slane %v1632_v36, 2  ;;  %v1717_v48 = vshll.u32 %v1678_v23, 16  ;;  %v1867_v62 = vrot.slane %v1616_v19, 3  ;;  %v5025_v23 = vld [vmem:[#allocation9 + $0x310] sm:$0xff]  }
 0x3e7   : > { %2461 = vmatprep.mubr.bf16.mxu0 %v1774_v2  ;;  %v1716_v46 = vrot.slane %v1714_v38, 2  ;;  %v1878_v0 = vor.u32 %v1877_v40, %v1874_v39  ;;  %v1886_v4 = vor.u32 %v1885_v41, %v1882_v34  ;;  %v1868_v37 = vrot.slane %v1612_v22, 4 }
 0x3e8   : > { %2462 = vmatmul.mubr.bf16.vlgmr.msra.gmra.mrb[16].mxu0 %v1757_v20  ;;  %v1698_v9 = vrot.slane %v1696_v24, 1  ;;  %v1635_v21 = vor.u32 %v1634_v3, %v1631_v35  ;;  %v1719_v15 = vrot.slane %v1717_v48, 3  ;;  %v1699_v25 = vshll.u32 %v5851_v17, 16 }
 0x3e9   : > { %4548 = vmatpush3.bf16.msra.mxu0 %v5020_v33  ;;  %v1659_v26 = vshrl.u32 %v5872_v45, 16  ;;  %v1887_v27 = vsel %vm1649_vm5, %v1878_v0, %v1886_v4  ;;  %v1869_v19 = vor.u32 %v1868_v37, %v1867_v62  ;;  %v1662_v20 = vshll.u32 %v5872_v45, 16  ;;  %v5029_v0 = vld [vmem:[#allocation9 + $0x2d8] sm:$0xff]  }
 0x3ea   : > { %4549 = vmatprep.subr.bf16.mxu0 %v5022_v42  ;;  %v1844_v59 = vshrl.u32 %v5858_v6, 16  ;;  %2469 = vmatprep.mubr.bf16.mxu0 %v1887_v27  ;;  %v1636_v13 = vsel %vm1619_vm6, %v1627_v5, %v1635_v21  ;;  %v1784_v22 = vshrl.u32 %v1635_v21, 16  ;;  %v1787_v24 = vshll.u32 %v1635_v21, 16  ;;  %v5026_v5 = vld [vmem:[#allocation9 + $0x2d0] sm:$0xff]  }
 0x3eb   : > { %v1720_v17 = vor.u32 %v1719_v15, %v1716_v46  ;;  %v1776_v28 = vshrl.u32 %v1636_v13, 16  ;;  %v1779_v29 = vshll.u32 %v1636_v13, 16  ;;  %v1870_v30 = vsel %vm1649_vm5, %v1866_v16, %v1869_v19  ;;  %v5031_v15 = vld [vmem:[#allocation9 + $0x320] sm:$0xff]  }
 0x3ec   : > { %v1701_v31 = vrot.slane %v1699_v25, 2  ;;  %vm1645_vm11 = vcmask 1044480   ;;  %v1786_v33 = vrot.slane %v1784_v22, 3  ;;  %v1789_v34 = vrot.slane %v1787_v24, 4  ;;  %v5027_v22 = vld [vmem:[#allocation9 + $0x350] sm:$0xff]  }
 0x3ed   : > { %v1721_v43 = vsel %vm1704_vm7, %v1712_v14, %v1720_v17  ;;  %v1914_v44 = vshrl.u32 %v1720_v17, 16  ;;  %4550 = vmatpush3.bf16.msra.mxu0 %v5023_v1  ;;  %v1778_v35 = vrot.slane %v1776_v28, 3  ;;  %v1781_v36 = vrot.slane %v1779_v29, 4  ;;  %v5024_v14 = vld [vmem:[#allocation9 + $0x348] sm:$0xff]   ;;  %v1600_v1 = vld [vmem:[#allocation2 + $0x10] sm:$0x7f] }
 0x3ee   : > { %v1906_v38 = vshrl.u32 %v1721_v43, 16  ;;  %v1909_v2 = vshll.u32 %v1721_v43, 16  ;;  %4551 = vmatprep.subr.bf16.mxu0 %v5025_v23  ;;  %v1790_v53 = vor.u32 %v1789_v34, %v1786_v33  ;;  %v1917_v39 = vshll.u32 %v1720_v17, 16  ;;  %v5032_v28 = vld [vmem:[#allocation9 + $0x2e0] sm:$0xff]  }
 0x3ef   : > { %v1916_v16 = vrot.slane %v1914_v44, 3  ;;  %v1702_v40 = vor.u32 %v1701_v31, %v1698_v9  ;;  %v1782_v41 = vor.u32 %v1781_v36, %v1778_v35  ;;  %v1661_v49 = vrot.slane %v1659_v26, 3 }
 0x3f0   : > { %v1908_v42 = vrot.slane %v1906_v38, 3  ;;  %v1911_v3 = vrot.slane %v1909_v2, 4  ;;  %2470 = vmatmul.mubr.bf16.gmra.mrb[20].mxu0 %v1870_v30  ;;  %v1919_v50 = vrot.slane %v1917_v39, 4  ;;  %v1664_v23 = vrot.slane %v1662_v20, 4  ;;  %v5034_v20 = vld [vmem:[#allocation9 + $0x328] sm:$0xff]   ;;  %v5030_v38 = vld [vmem:[#allocation9 + $0x358] sm:$0xff]  }
 0x3f1   : > { %4552 = vmatpush3.bf16.msra.mxu0 %v5026_v5  ;;  %v1703_v46 = vsel %vm1619_vm6, %v1694_v18, %v1702_v40  ;;  %v1897_v48 = vshrl.u32 %v1702_v40, 16  ;;  %v1900_v62 = vshll.u32 %v1702_v40, 16  ;;  %v1791_v4 = vsel %vm1649_vm5, %v1782_v41, %v1790_v53 }
 0x3f2   : > { %v1912_v37 = vor.u32 %v1911_v3, %v1908_v42  ;;  %v1889_v9 = vshrl.u32 %v1703_v46, 16  ;;  %v1892_v21 = vshll.u32 %v1703_v46, 16  ;;  %4553 = vmatprep.subr.bf16.mxu0 %v5028_v51  ;;  %2511 = vmatmul.mubr.bf16.vlgmr.msra.gmra.mrb[20].mxu1 %v1791_v4  ;;  %v1920_v25 = vor.u32 %v1919_v50, %v1916_v16  ;;  %v5038_v46 = vld [vmem:[#allocation9 + $0x2f0] sm:$0xff]  }
 0x3f3   : > { %v1899_v26 = vrot.slane %v1897_v48, 3  ;;  %v1902_v27 = vrot.slane %v1900_v62, 4  ;;  %4740 = vmatpush3.bf16.msra.mxu1 %v5764_v47  ;;  %v1846_v18 = vrot.slane %v1844_v59, 3  ;;  %v1847_v19 = vshll.u32 %v5858_v6, 16 }
 0x3f4   : > { %v1891_v52 = vrot.slane %v1889_v9, 3  ;;  %v1894_v55 = vrot.slane %v1892_v21, 4  ;;  %v1921_v13 = vsel %vm1649_vm5, %v1912_v37, %v1920_v25  ;;  %4741 = vmatprep.subr.bf16.mxu1 %v5024_v14  ;;  %v1665_v17 = vor.u32 %v1664_v23, %v1661_v49  ;;  %v5040_v37 = vld [vmem:[#allocation9 + $0x338] sm:$0xff]  }
 0x3f5   : > { %v1903_v24 = vor.u32 %v1902_v27, %v1899_v26  ;;  %4554 = vmatpush3.bf16.msra.mxu0 %v5029_v0  ;;  %v1647_v29 = vrot.slane %v1600_v1, 3  ;;  %2518 = vmatprep.mubr.bf16.mxu1 %v1921_v13  ;;  %v1849_v31 = vrot.slane %v1847_v19, 4  ;;  %v1732_v47 = vsel %vm1729_vm8, %v1730_v11, %v5860_v8  ;;  %v5036_v27 = vld [vmem:[#allocation9 + $0x368] sm:$0xff]   ;;  %v5041_v23 = vld [vmem:[#allocation9 + $0x2f8] sm:$0xff]  }
 0x3f6   : > { %v1895_v30 = vor.u32 %v1894_v55, %v1891_v52  ;;  %4555 = vmatprep.subr.bf16.mxu0 %v5031_v15  ;;  %v1666_v6 = vsel %vm1649_vm5, %v1657_v12, %v1665_v17  ;;  %v1835_v59 = vshrl.u32 %v1665_v17, 16  ;;  %v1838_v33 = vshll.u32 %v1665_v17, 16 }
 0x3f7   : > { %v1648_v34 = vsel %vm1645_vm11, %v1646_v10, %v1647_v29  ;;  %4742 = vmatpush3.bf16.msra.mxu1 %v5024_v14  ;;  %v1827_v44 = vshrl.u32 %v1666_v6, 16  ;;  %v1830_v5 = vshll.u32 %v1666_v6, 16  ;;  %v1850_v35 = vor.u32 %v1849_v31, %v1846_v18  ;;  %v5033_v14 = vld [vmem:[#allocation9 + $0x360] sm:$0xff]  }
 0x3f8   : > { %v1904_v43 = vsel %vm1649_vm5, %v1895_v30, %v1903_v24  ;;  %4743 = vmatprep.subr.bf16.mxu1 %v5027_v22  ;;  %v1837_v11 = vrot.slane %v1835_v59, 3  ;;  %v1840_v36 = vrot.slane %v1838_v33, 4  ;;  %v1810_v58 = vshrl.u32 %v1648_v34, 16 }
 0x3f9   : > { %4556 = vmatpush3.bf16.msra.mxu0 %v5032_v28  ;;  %v1813_v12 = vshll.u32 %v1648_v34, 16  ;;  %v1829_v2 = vrot.slane %v1827_v44, 3  ;;  %v1832_v51 = vrot.slane %v1830_v5, 4  ;;  %v1818_v10 = vshrl.u32 %v1647_v29, 16  ;;  %v5042_v34 = vld [vmem:[#allocation9 + $0x378] sm:$0xff]  }
 0x3fa   : > { %4557 = vmatprep.subr.bf16.mxu0 %v5034_v20  ;;  %v1821_v53 = vshll.u32 %v1647_v29, 16  ;;  %2519 = vmatmul.mubr.bf16.gmra.mrb[24].mxu1 %v1904_v43  ;;  %v1841_v16 = vor.u32 %v1840_v36, %v1837_v11  ;;  %v1940_v39 = vshrl.u32 %v1732_v47, 16  ;;  %v1948_v40 = vshrl.u32 %v5860_v8, 16  ;;  %v5039_v29 = vld [vmem:[#allocation9 + $0x370] sm:$0xff]  }
 0x3fb   : > { %v1724_v41 = vrot.slane %v1679_v60, 3  ;;  %v1833_v42 = vor.u32 %v1832_v51, %v1829_v2  ;;  %4744 = vmatpush3.bf16.msra.mxu1 %v5027_v22  ;;  %4755 = vmatprep.mubr.bf16.mxu1 %v1850_v35  ;;  %v1943_v3 = vshll.u32 %v1732_v47, 16  ;;  %v1951_v49 = vshll.u32 %v5860_v8, 16  ;;  %v5051_v2 = vld [vmem:[#allocation9 + $0x3c0] sm:$0xff]  }
 0x3fc   : > { %v1725_v50 = vrot.slane %v5872_v45, 3  ;;  %4745 = vmatprep.subr.bf16.mxu1 %v5030_v38  ;;  %v1812_v48 = vrot.slane %v1810_v58, 3  ;;  %v1734_v62 = vshrl.u32 %v5803_v32, 16  ;;  %v1737_v0 = vshll.u32 %v5803_v32, 16  ;;  %v5044_v58 = vld [vmem:[#allocation11 + $0x48] sm:$0xff]   ;;  %v5052_v51 = vld [vmem:[#allocation9 + $0x380] sm:$0xff]  }
 0x3fd   : > { %4558 = vmatpush3.bf16.msra.mxu0 %v5035_v56  ;;  %v1842_v4 = vsel %vm1649_vm5, %v1833_v42, %v1841_v16  ;;  %v1815_v9 = vrot.slane %v1813_v12, 4  ;;  %v1820_v21 = vrot.slane %v1818_v10, 3  ;;  %v1823_v15 = vrot.slane %v1821_v53, 4  ;;  %v5043_v56 = vld [vmem:[#allocation11 + $0x40] sm:$0xff]   ;;  %v5045_v12 = vld [vmem:[#allocation11 + $0x50] sm:$0xff]   ;;  %v5046_v10 = vld [vmem:[#allocation11 + $0x58] sm:$0xff]  }
 0x3fe   : > { %4559 = vmatprep.subr.bf16.mxu0 %v5037_v7  ;;  %2559 = vmatprep.mubr.bf16.mxu0 %v1842_v4  ;;  %v1950_v8 = vrot.slane %v1948_v40, 3  ;;  %v1942_v45 = vrot.slane %v1940_v39, 3  ;;  %v1945_v1 = vrot.slane %v1943_v3, 4  ;;  %v1953_v25 = vrot.slane %v1951_v49, 4  ;;  %v5053_v7 = vld [vmem:[#allocation9 + $0x3c8] sm:$0xff]   ;;  %v5055_v16 = vld [vmem:[#allocation9 + $0x3d0] sm:$0xff]  }
 0x3ff   : > { %4746 = vmatpush3.bf16.msra.mxu1 %v5030_v38  ;;  %v1726_v26 = vsel %vm1645_vm11, %v1724_v41, %v1725_v50  ;;  %v1736_v32 = vrot.slane %v1734_v62, 4  ;;  %v1739_v52 = vrot.slane %v1737_v0, 5  ;;  %v1816_v55 = vor.u32 %v1815_v9, %v1812_v48  ;;  %v5054_v53 = vld [vmem:[#allocation9 + $0x388] sm:$0xff]   ;;  %v5047_v39 = vld [vmem:[#allocation11 + $0x60] sm:$0xff]   ;;  %v5056_v40 = vld [vmem:[#allocation9 + $0x390] sm:$0xff]  }
 0x400   : > { %4747 = vmatprep.subr.bf16.mxu1 %v5033_v14  ;;  %v1824_v18 = vor.u32 %v1823_v15, %v1820_v21  ;;  %v1923_v19 = vshrl.u32 %v1726_v26, 16  ;;  %v1926_v13 = vshll.u32 %v1726_v26, 16  ;;  %v1931_v22 = vshrl.u32 %v1725_v50, 16  ;;  %v5057_v41 = vld [vmem:[#allocation9 + $0x3d8] sm:$0xff]   ;;  %v5048_v42 = vld [vmem:[#allocation11 + $0x68] sm:$0xff]   ;;  %v5059_v49 = vld [vmem:[#allocation9 + $0x3e0] sm:$0xff]  }
 0x401   : > { %4560 = vmatpush3.bf16.msra.mxu0 %v5038_v46  ;;  %v1934_v24 = vshll.u32 %v1725_v50, 16  ;;  %v1946_v17 = vor.u32 %v1945_v1, %v1942_v45  ;;  %v1954_v28 = vor.u32 %v1953_v25, %v1950_v8  ;;  %v1740_v30 = vor.u32 %v1739_v52, %v1736_v32  ;;  %v5058_v3 = vld [vmem:[#allocation9 + $0x398] sm:$0xff]   ;;  %v5049_v50 = vld [vmem:[#allocation11 + $0x70] sm:$0xff]  }
 0x402   : > { %4561 = vmatprep.subr.bf16.mxu0 %v5040_v37  ;;  %v1825_v31 = vsel %vm1649_vm5, %v1816_v55, %v1824_v18  ;;  %v1925_v20 = vrot.slane %v1923_v19, 3  ;;  %v1928_v47 = vrot.slane %v1926_v13, 4  ;;  %v1933_v6 = vrot.slane %v1931_v22, 3  ;;  %v5050_v46 = vld [vmem:[#allocation11 + $0x78] sm:$0xff]   ;;  %v4233_v21 = vld [vmem:[%s6107_s5 + $0x1] ss:$0 sm:$0xff] }
 0x403   : > { %4748 = vmatpush3.bf16.msra.mxu1 %v5033_v14  ;;  %v1936_v59 = vrot.slane %v1934_v24, 4  ;;  %v1955_v33 = vsel %vm1649_vm5, %v1946_v17, %v1954_v28  ;;  %v1957_v43 = vshrl.u32 %v1740_v30, 16  ;;  %v1960_v44 = vshll.u32 %v1740_v30, 16  ;;  %v5060_v14 = vld [vmem:[#allocation9 + $0x3a0] sm:$0xff]  }
 0x404   : > { %4749 = vmatprep.subr.bf16.mxu1 %v5036_v27  ;;  %v1929_v5 = vor.u32 %v1928_v47, %v1925_v20  ;;  %vm2925_vm6 = vcmask 1040384  }
 0x405   : > { %4562 = vmatpush3.bf16.msra.mxu0 %v5041_v23  ;;  %v1937_v35 = vor.u32 %v1936_v59, %v1933_v6  ;;  %v1959_v60 = vrot.slane %v1957_v43, 3  ;;  %v1962_v11 = vrot.slane %v1960_v44, 4 }
 0x406   : > { %4759 = vmatprep.subr.bf16.mxu0 %v5043_v56 }
 0x407   : > { %4750 = vmatpush3.bf16.msra.mxu1 %v5036_v27  ;;  %v1938_v36 = vsel %vm1649_vm5, %v1929_v5, %v1937_v35  ;;  %v1963_v38 = vor.u32 %v1962_v11, %v1959_v60 }
 0x408   : > { %2560 = vmatmul.mubr.bf16.vlgmr.msra.gmra.mrb[24].mxu0 %v1825_v31  ;;  %4751 = vmatprep.subr.bf16.mxu1 %v5039_v29 }
 0x409   : > { %2567 = vmatprep.mubr.bf16.mxu0 %v1955_v33  ;;  %4760 = vmatpush3.bf16.msra.mxu0 %v5043_v56 }
 0x40a   : > { %4761 = vmatprep.subr.bf16.mxu0 %v5044_v58 }
 0x40b   : > { %4752 = vmatpush3.bf16.msra.mxu1 %v5039_v29 }
 0x40c   : > { %4753 = vmatprep.subr.bf16.mxu1 %v5042_v34 }
 0x40d   : > { %4762 = vmatpush3.bf16.msra.mxu0 %v5044_v58 }
 0x40e   : > { %4763 = vmatprep.subr.bf16.mxu0 %v5045_v12 }
 0x40f   : > { %4754 = vmatpush3.bf16.msra.mxu1 %v5042_v34 }
 0x410   : > { %2568 = vmatmul.mubr.bf16.gmra.mrb[28].mxu0 %v1938_v36  ;;  %4595 = vmatprep.subr.bf16.mxu1 %v5051_v2 }
 0x411   : > { %4764 = vmatpush3.bf16.msra.mxu0 %v5045_v12 }
 0x412   : > { %4756 = vmatmul.mubr.bf16.vlgmr.msra.gmra.mrb[28].mxu1 %v1963_v38  ;;  %4765 = vmatprep.subr.bf16.mxu0 %v5046_v10 }
 0x413   : > { %4596 = vmatpush3.bf16.msra.mxu1 %v5052_v51 }
 0x414   : > { %4597 = vmatprep.subr.bf16.mxu1 %v5053_v7 }
 0x415   : > { %4766 = vmatpush3.bf16.msra.mxu0 %v5046_v10 }
 0x416   : > { %4767 = vmatprep.subr.bf16.mxu0 %v5047_v39 }
 0x417   : > { %4598 = vmatpush3.bf16.msra.mxu1 %v5054_v53 }
 0x418   : > { %4599 = vmatprep.subr.bf16.mxu1 %v5055_v16 }
 0x419   : > { %4768 = vmatpush3.bf16.msra.mxu0 %v5047_v39 }
 0x41a   : > { %4769 = vmatprep.subr.bf16.mxu0 %v5048_v42 }
 0x41b   : > { %4600 = vmatpush3.bf16.msra.mxu1 %v5056_v40 }
 0x41c   : > { %4601 = vmatprep.subr.bf16.mxu1 %v5057_v41 }
 0x41d   : > { %4770 = vmatpush3.bf16.msra.mxu0 %v5048_v42 }
 0x41e   : > { %4771 = vmatprep.subr.bf16.mxu0 %v5049_v50 }
 0x41f   : > { %4602 = vmatpush3.bf16.msra.mxu1 %v5058_v3 }
 0x420   : > { %4603 = vmatprep.subr.bf16.mxu1 %v5059_v49 }
 0x421   : > { %4772 = vmatpush3.bf16.msra.mxu0 %v5049_v50 }
 0x422   : > { %4773 = vmatprep.subr.bf16.mxu0 %v5050_v46 }
 0x423   : > { %4604 = vmatpush3.bf16.msra.mxu1 %v5060_v14 }
 0x425   : > { %4774 = vmatpush3.bf16.msra.mxu0 %v5050_v46 }
 0x4bb   : > { %v4507_v48 = vpop.f32.mrb[16].mxu0 }
 0x4bc   : > { %v4508_v62 = vpop.f32.mrb[17].mxu0 }
 0x4bd   : > { %v4509_v0 = vadd.f32 %v4508_v62, %v4507_v48  ;;  %v4510_v4 = vpop.f32.mrb[18].mxu0 }
 0x4be   : > { %v4511_v37 = vpop.f32.mrb[19].mxu0 }
 0x4bf   : > { %v4512_v9 = vadd.f32 %v4511_v37, %v4510_v4  ;;  %v2464_v25 = vadd.f32 %v4509_v0, %v4233_v21 }
 0x4c1   : > { %v2467_v55 = vadd.f32 %v4512_v9, %v4233_v21 }
 0x4c3   : > { %v4513_v15 = vpop.f32.mrb[20].mxu0 }
 0x4c4   : > { %v4514_v8 = vpop.f32.mrb[21].mxu0 }
 0x4c5   : > { %v4515_v45 = vadd.f32 %v4514_v8, %v4513_v15  ;;  %v4516_v1 = vpop.f32.mrb[22].mxu0  ;;  %v4535_v26 = vpop.f32.mrb[20].mxu1 }
 0x4c6   : > { %v4517_v27 = vpop.f32.mrb[23].mxu0  ;;  %v4536_v23 = vpop.f32.mrb[21].mxu1 }
 0x4c7   : > { %v4518_v32 = vadd.f32 %v4517_v27, %v4516_v1  ;;  %v4537_v52 = vadd.f32 %v4536_v23, %v4535_v26  ;;  %v4538_v18 = vpop.f32.mrb[22].mxu1  ;;  %v2472_v17 = vadd.f32 %v4515_v45, %v4233_v21 }
 0x4c8   : > { %v4539_v19 = vpop.f32.mrb[23].mxu1 }
 0x4c9   : > { %v2513_v13 = vadd.f32 %v4537_v52, %v2464_v25  ;;  %v4540_v22 = vadd.f32 %v4539_v19, %v4538_v18  ;;  %v2475_v31 = vadd.f32 %v4518_v32, %v4233_v21  ;;  %v5061_v19 = vld [vmem:[#allocation9 + $0x3e8] sm:$0xff]  }
 0x4ca   : > { %4605 = vmatprep.subr.bf16.mxu1 %v5061_v19  ;;  %v5082_v19 = vld [vmem:[#allocation9 + $0x418] sm:$0xff]  }
 0x4cb   : > { %v2516_v24 = vadd.f32 %v4540_v22, %v2467_v55  ;;  %v5063_v22 = vld [vmem:[#allocation9 + $0x3f0] sm:$0xff]  }
 0x4cd   : > { %v4541_v28 = vpop.f32.mrb[24].mxu1 }
 0x4ce   : > { %v4542_v29 = vpop.f32.mrb[25].mxu1 }
 0x4cf   : > { %v4543_v30 = vadd.f32 %v4542_v29, %v4541_v28  ;;  %v4544_v20 = vpop.f32.mrb[26].mxu1  ;;  %v2808_v28 = vld [vmem:[#allocation2 + $0x20] sm:$0x1f] }
 0x4d0   : > { %v4545_v47 = vpop.f32.mrb[27].mxu1 }
 0x4d1   : > { %v2521_v6 = vadd.f32 %v4543_v30, %v2472_v17  ;;  %v4546_v59 = vadd.f32 %v4545_v47, %v4544_v20  ;;  %v5064_v17 = vld [vmem:[#allocation9 + $0x3b0] sm:$0xff]   ;;  %v2821_v20 = vrot.slane %v2808_v28, 2  ;;  %v2806_v47 = vld [vmem:[#allocation2 + $0x8] sm:$0x7] }
 0x4d2   : > { %v2805_v30 = vld [vmem:[#allocation2] sm:$0xfc] }
 0x4d3   : > { %v2524_v33 = vadd.f32 %v4546_v59, %v2475_v31  ;;  %v5065_v31 = vld [vmem:[#allocation9 + $0x3f8] sm:$0xff]   ;;  %v2963_v59 = vshll.u32 %v2805_v30, 16 }
 0x4db   : > { %v4563_v34 = vpop.f32.mrb[24].mxu0 }
 0x4dc   : > { %v4564_v43 = vpop.f32.mrb[25].mxu0 }
 0x4dd   : > { %v4565_v44 = vadd.f32 %v4564_v43, %v4563_v34  ;;  %v4566_v5 = vpop.f32.mrb[26].mxu0  ;;  %v2971_v34 = vshll.u32 %v2806_v47, 16  ;;  %v5069_v43 = vld [vmem:[#allocation9 + $0x440] sm:$0xff]  }
 0x4de   : > { %v4567_v35 = vpop.f32.mrb[27].mxu0  ;;  %4623 = vmatprep.subr.bf16.mxu0 %v5069_v43 }
 0x4df   : > { %v2562_v60 = vadd.f32 %v4565_v44, %v2513_v13  ;;  %v4568_v11 = vadd.f32 %v4567_v35, %v4566_v5  ;;  %v5062_v13 = vld [vmem:[#allocation9 + $0x3a8] sm:$0xff]   ;;  %v5070_v44 = vld [vmem:[#allocation9 + $0x400] sm:$0xff]   ;;  %v2985_v35 = vshrl.u32 %v2821_v20, 16 }
 0x4e0   : > { %4606 = vmatpush3.bf16.msra.mxu1 %v5062_v13 }
 0x4e1   : > { %v2565_v36 = vadd.f32 %v4568_v11, %v2516_v24  ;;  %v2807_v24 = vld [vmem:[#allocation2 + $0x18] sm:$0xf0]  ;;  %4607 = vmatprep.subr.bf16.mxu1 %v5063_v22 }
 0x4e2   : > { %v2820_v29 = vrot.slane %v2807_v24, 2  ;;  %v5075_v24 = vld [vmem:[#allocation9 + $0x4d0] sm:$0xff]  }
 0x4e3   : > { %v4569_v38 = vpop.f32.mrb[28].mxu0 }
 0x4e4   : > { %v4570_v56 = vpop.f32.mrb[29].mxu0  ;;  %v2822_v5 = vsel %vm1639_vm4, %v2820_v29, %v2821_v20  ;;  %4608 = vmatpush3.bf16.msra.mxu1 %v5064_v17  ;;  %v5085_v17 = vld [vmem:[#allocation9 + $0x460] sm:$0xff]  }
 0x4e5   : > { %v4571_v58 = vadd.f32 %v4570_v56, %v4569_v38  ;;  %v4572_v12 = vpop.f32.mrb[30].mxu0  ;;  %v4757_v2 = vpop.f32.mrb[28].mxu1  ;;  %v5066_v38 = vld [vmem:[#allocation9 + $0x3b8] sm:$0xff]   ;;  %v2977_v56 = vshrl.u32 %v2822_v5, 16  ;;  %4609 = vmatprep.subr.bf16.mxu1 %v5065_v31 }
 0x4e6   : > { %v4573_v51 = vpop.f32.mrb[31].mxu0  ;;  %v2610_v7 = vpop.f32.mrb[29].mxu1 }
 0x4e7   : > { %v2570_v10 = vadd.f32 %v4571_v58, %v2521_v6  ;;  %v4574_v53 = vadd.f32 %v4573_v51, %v4572_v12  ;;  %v2611_v16 = vadd.f32 %v2610_v7, %v2562_v60  ;;  %v4758_v39 = vpop.f32.mrb[30].mxu1  ;;  %v2960_v6 = vshrl.u32 %v2805_v30, 16 }
 0x4e8   : > { %v2613_v40 = vpop.f32.mrb[31].mxu1  ;;  %v2988_v60 = vshll.u32 %v2821_v20, 16  ;;  %v2980_v58 = vshll.u32 %v2822_v5, 16  ;;  %v2965_v12 = vrot.slane %v2963_v59, 3  ;;  %v2987_v51 = vrot.slane %v2985_v35, 2  ;;  %4610 = vmatpush3.bf16.msra.mxu1 %v5066_v38  ;;  %v5086_v59 = vld [vmem:[#allocation9 + $0x420] sm:$0xff]  }
 0x4e9   : > { %v2619_v41 = vadd.f32 %v4757_v2, %v2570_v10  ;;  %v2573_v42 = vadd.f32 %v4574_v53, %v2524_v33  ;;  %v2629_v3 = vmin.f32 %v2611_v16, 0.0  ;;  %v2614_v49 = vadd.f32 %v2613_v40, %v2565_v36  ;;  %v5073_v36 = vld [vmem:[#allocation9 + $0x448] sm:$0xff]   ;;  %v5067_v10 = vld [vmem:[#allocation9 + $0x4c0] sm:$0xff]  }
 0x4ea   : > { %vm2625_vm12 = vcmp.gt.f32.partialorder %v2611_v16, 0.0  ;;  %v2968_v33 = vshrl.u32 %v2806_v47, 16  ;;  %v2962_v11 = vrot.slane %v2960_v6, 2  ;;  %v2990_v7 = vrot.slane %v2988_v60, 3  ;;  %4651 = vmatprep.subr.bf16.mxu1 %v5067_v10  ;;  %v5076_v6 = vld [vmem:[#allocation9 + $0x490] sm:$0xff]   ;;  %v5089_v60 = vld [vmem:[#allocation9 + $0x468] sm:$0xff]  }
 0x4eb   : > { %v2631_v50 = vmin.f32 %v2619_v41, 0.0  ;;  %v2622_v14 = vadd.f32 %v4758_v39, %v2573_v42  ;;  %v2633_v46 = vmul.f32 1.442695, %v2629_v3  ;;  %v2630_v48 = vmin.f32 %v2614_v49, 0.0  ;;  %v5077_v42 = vld [vmem:[#allocation9 + $0x450] sm:$0xff]  }
 0x4ec   : > { %vm2626_vm13 = vcmp.gt.f32.partialorder %v2614_v49, 0.0  ;;  %vm2627_vm14 = vcmp.gt.f32.partialorder %v2619_v41, 0.0  ;;  %v2970_v2 = vrot.slane %v2968_v33, 2  ;;  %v2973_v53 = vrot.slane %v2971_v34, 3 }
 0x4ed   : > { %v2637_v62 = vmul.f32 1.442695, %v2631_v50  ;;  %v2632_v0 = vmin.f32 %v2622_v14, 0.0  ;;  %5143 = vpow2.f32 %v2633_v46  ;;  %v2635_v4 = vmul.f32 1.442695, %v2630_v48  ;;  %v5071_v46 = vld [vmem:[#allocation9 + $0x4c8] sm:$0xff]  }
 0x4ee   : > { %vm2628_vm15 = vcmp.gt.f32.partialorder %v2622_v14, 0.0  ;;  %v2979_v39 = vrot.slane %v2977_v56, 2  ;;  %v2982_v40 = vrot.slane %v2980_v58, 3  ;;  %v2991_v3 = vor.u32 %v2990_v7, %v2987_v51  ;;  %v5083_v7 = vld [vmem:[#allocation9 + $0x4e0] sm:$0xff]  }
 0x4ef   : > { %5145 = vpow2.f32 %v2637_v62  ;;  %v2639_v37 = vmul.f32 1.442695, %v2632_v0  ;;  %v5078_v62 = vld [vmem:[#allocation9 + $0x410] sm:$0xff]  }
 0x4f0   : > { %5147 = vpow2.f32 %v2635_v4  ;;  %v2983_v50 = vor.u32 %v2982_v40, %v2979_v39  ;;  %v2878_v0 = vld [vmem:[#allocation2] sm:$0xe0]  ;;  %v2879_v4 = vld [vmem:[#allocation2 + $0x8] sm:$0x1f] }
 0x4f1   : > { %5149 = vpow2.f32 %v2639_v37  ;;  %v5093_v40 = vld [vmem:[#allocation9 + $0x470] sm:$0xff]  }
 0x4f2   : > { %v2992_v37 = vsel %vm1704_vm7, %v2983_v50, %v2991_v3  ;;  %v5094_v3 = vld [vmem:[#allocation9 + $0x430] sm:$0xff]   ;;  %v5088_v50 = vld [vmem:[#allocation9 + $0x4a8] sm:$0xff]  }
 0x4f3   : > { %3684 = vmatprep.mubr.bf16.mxu1 %v2992_v37  ;;  %v4295_v37 = vld [vmem:[%s6109_s7 + $0x1] ss:$0 sm:$0xff] }
 0x4f7   : > { %v5144_v9 = vpop.eup %5143 }
 0x4f8   : > { %v4290_v15 = vadd.f32 -1.0, %v5144_v9  ;;  %v5081_v9 = vld [vmem:[#allocation9 + $0x458] sm:$0xff]  }
 0x4f9   : > { %v5146_v21 = vpop.eup %5145 }
 0x4fa   : > { %v5148_v8 = vpop.eup %5147  ;;  %v4292_v45 = vadd.f32 -1.0, %v5146_v21  ;;  %v2645_v27 = vsel %vm2625_vm12, %v2611_v16, %v4290_v15  ;;  %v5074_v16 = vld [vmem:[#allocation9 + $0x408] sm:$0xff]   ;;  %v2890_v21 = vshrl.u32 %v2878_v0, 16  ;;  %v2893_v15 = vshll.u32 %v2878_v0, 16  ;;  %v5095_v0 = vld [vmem:[#allocation9 + $0x4f8] sm:$0xff]  }
 0x4fb   : > { %v5150_v1 = vpop.eup %5149  ;;  %v4291_v25 = vadd.f32 -1.0, %v5148_v8  ;;  %v2898_v8 = vshrl.u32 %v2879_v4, 16 }
 0x4fc   : > { %v4293_v26 = vadd.f32 -1.0, %v5150_v1  ;;  %v2647_v32 = vsel %vm2627_vm14, %v2619_v41, %v4292_v45  ;;  %v2966_v41 = vor.u32 %v2965_v12, %v2962_v11  ;;  %v2876_v45 = vld [vmem:[#allocation2 + $0x18] sm:$0xfc]  ;;  %v2901_v1 = vshll.u32 %v2879_v4, 16  ;;  %v5096_v4 = vld [vmem:[#allocation9 + $0x4b8] sm:$0xff]  }
 0x4fd   : > { %v2646_v23 = vsel %vm2626_vm13, %v2614_v49, %v4291_v25  ;;  %v2974_v49 = vor.u32 %v2973_v53, %v2970_v2  ;;  %v2877_v25 = vld [vmem:[#allocation2 + $0x20] sm:$0x7]  ;;  %v5080_v2 = vld [vmem:[#allocation9 + $0x498] sm:$0xff]  }
 0x4fe   : > { %v2648_v52 = vsel %vm2628_vm15, %v2622_v14, %v4293_v26  ;;  %v2649_v55 = vpack.c.bf16 %v2646_v23, %v2645_v27  ;;  %v5068_v14 = vld [vmem:[#allocation9 + $0x480] sm:$0xff]   ;;  %v3078_v26 = vshrl.u32 %v2876_v45, 16  ;;  %v3081_v27 = vshll.u32 %v2876_v45, 16 }
 0x4ff   : > { %v2650_v18 = vpack.c.bf16 %v2648_v52, %v2647_v32  ;;  %v2975_v48 = vsel %vm1704_vm7, %v2966_v41, %v2974_v49  ;;  %v2892_v23 = vrot.slane %v2890_v21, 2  ;;  %v2895_v32 = vrot.slane %v2893_v15, 3  ;;  %v5084_v41 = vld [vmem:[#allocation9 + $0x4a0] sm:$0xff]   ;;  %v5097_v49 = vld [vmem:[#allocation9 + $0x478] sm:$0xff]  }
 0x500   : > { %4775 = vmatprep.mubr.bf16.mxu0 %v2649_v55  ;;  %3685 = vmatmul.mubr.bf16.vlgmr.msra.gmra.mrb[32].mxu1 %v2975_v48  ;;  %v2900_v52 = vrot.slane %v2898_v8, 2  ;;  %v3086_v55 = vshrl.u32 %v2877_v25, 16  ;;  %v2903_v13 = vrot.slane %v2901_v1, 3  ;;  %v3089_v22 = vshll.u32 %v2877_v25, 16  ;;  %v5932_v48 = vld [vmem:[#allocation9 + $0x500] sm:$0xff]  }
 0x501   : > { %4776 = vmatmul.mubr.bf16.vlgmr.msra.gmra.mrb[32].mxu0 %v2650_v18  ;;  %4652 = vmatpush3.bf16.msra.mxu1 %v5068_v14  ;;  %v5072_v18 = vld [vmem:[#allocation9 + $0x488] sm:$0xff]   ;;  %v2896_v28 = vor.u32 %v2895_v32, %v2892_v23  ;;  %v3080_v29 = vrot.slane %v3078_v26, 2  ;;  %v3083_v31 = vrot.slane %v3081_v27, 3  ;;  %v5091_v14 = vld [vmem:[#allocation9 + $0x4f0] sm:$0xff]   ;;  %v2810_v25 = vld [vmem:[#allocation2 + $0x8] sm:$0x7f] }
 0x502   : > { %4624 = vmatpush3.bf16.msra.mxu0 %v5070_v44  ;;  %4653 = vmatprep.subr.bf16.mxu1 %v5071_v46  ;;  %v2904_v30 = vor.u32 %v2903_v13, %v2900_v52  ;;  %v3088_v20 = vrot.slane %v3086_v55, 2  ;;  %v3091_v47 = vrot.slane %v3089_v22, 3  ;;  %v5079_v44 = vld [vmem:[#allocation9 + $0x4d8] sm:$0xff]   ;;  %v2809_v8 = vld [vmem:[#allocation2] sm:$0x80] }
 0x503   : > { %4625 = vmatprep.subr.bf16.mxu0 %v5073_v36  ;;  %v3084_v38 = vor.u32 %v3083_v31, %v3080_v29  ;;  %v5098_v46 = vld [vmem:[#allocation9 + $0x438] sm:$0xff]   ;;  %v2811_v55 = vld [vmem:[#allocation2 + $0x20] sm:$0xfe] }
 0x504   : > { %v2905_v33 = vsel %vm1704_vm7, %v2896_v28, %v2904_v30  ;;  %v3103_v34 = vshrl.u32 %v2904_v30, 16  ;;  %v3106_v43 = vshll.u32 %v2904_v30, 16  ;;  %v3092_v56 = vor.u32 %v3091_v47, %v3088_v20 }
 0x505   : > { %4654 = vmatpush3.bf16.msra.mxu1 %v5072_v18  ;;  %v3095_v5 = vshrl.u32 %v2905_v33, 16  ;;  %v3098_v35 = vshll.u32 %v2905_v33, 16  ;;  %v2825_v18 = vshrl.u32 %v2809_v8, 16  ;;  %v2842_v30 = vshrl.u32 %v2811_v55, 16 }
 0x506   : > { %4626 = vmatpush3.bf16.msra.mxu0 %v5074_v16  ;;  %4655 = vmatprep.subr.bf16.mxu1 %v5075_v24  ;;  %v3105_v11 = vrot.slane %v3103_v34, 2  ;;  %v3108_v36 = vrot.slane %v3106_v43, 3  ;;  %v3093_v53 = vsel %vm1704_vm7, %v3084_v38, %v3092_v56  ;;  %v5090_v16 = vld [vmem:[#allocation9 + $0x428] sm:$0xff]   ;;  %v2833_v24 = vshrl.u32 %v2810_v25, 16 }
 0x507   : > { %4627 = vmatprep.subr.bf16.mxu0 %v5077_v42  ;;  %v3097_v58 = vrot.slane %v3095_v5, 2  ;;  %v3100_v12 = vrot.slane %v3098_v35, 3  ;;  %v5087_v42 = vld [vmem:[#allocation9 + $0x4e8] sm:$0xff]   ;;  %v2845_v31 = vshll.u32 %v2811_v55, 16  ;;  %v2881_v35 = vld [vmem:[#allocation2 + $0x20] sm:$0x7f] }
 0x508   : > { %v3109_v51 = vor.u32 %v3108_v36, %v3105_v11  ;;  %v2835_v33 = vrot.slane %v2833_v24, 4  ;;  %v2880_v5 = vld [vmem:[#allocation2 + $0x18] sm:$0x80]  ;;  %v2882_v36 = vld [vmem:[#allocation2 + $0x8] sm:$0xfe] }
 0x509   : > { %4656 = vmatpush3.bf16.msra.mxu1 %v5076_v6  ;;  %v3101_v10 = vor.u32 %v3100_v12, %v3097_v58  ;;  %v2827_v6 = vrot.slane %v2825_v18, 4  ;;  %v2907_v38 = vshrl.u32 %v2880_v5, 16  ;;  %v2910_v56 = vshll.u32 %v2880_v5, 16 }
 0x50a   : > { %4628 = vmatpush3.bf16.msra.mxu0 %v5078_v62  ;;  %4657 = vmatprep.subr.bf16.mxu1 %v5079_v44  ;;  %v5092_v62 = vld [vmem:[#allocation9 + $0x4b0] sm:$0xff]   ;;  %v2844_v44 = vrot.slane %v2842_v30, 6  ;;  %v2915_v58 = vshrl.u32 %v2881_v35, 16  ;;  %v2918_v12 = vshll.u32 %v2881_v35, 16 }
 0x50b   : > { %4629 = vmatprep.subr.bf16.mxu0 %v5081_v9  ;;  %v3110_v39 = vsel %vm1704_vm7, %v3101_v10, %v3109_v51  ;;  %v5957_v10 = vrot.slane %v2882_v36, 7 }
 0x50c   : > { %3692 = vmatprep.mubr.bf16.mxu1 %v3110_v39  ;;  %v2917_v39 = vrot.slane %v2915_v58, 4 }
 0x50d   : > { %4658 = vmatpush3.bf16.msra.mxu1 %v5080_v2 }
 0x50e   : > { %4630 = vmatpush3.bf16.msra.mxu0 %v5082_v19  ;;  %4659 = vmatprep.subr.bf16.mxu1 %v5083_v7  ;;  %v2828_v19 = vshll.u32 %v2809_v8, 16  ;;  %v2886_v7 = vld [vmem:[#allocation2 + $0x8] sm:$0xc0] }
 0x50f   : > { %4631 = vmatprep.subr.bf16.mxu0 %v5085_v17  ;;  %3693 = vmatmul.mubr.bf16.gmra.mrb[36].mxu1 %v3093_v53  ;;  %v2836_v17 = vshll.u32 %v2810_v25, 16  ;;  %v2909_v53 = vrot.slane %v2907_v38, 4 }
 0x511   : > { %4660 = vmatpush3.bf16.msra.mxu1 %v5084_v41  ;;  %v2838_v34 = vrot.slane %v2836_v17, 5 }
 0x512   : > { %4632 = vmatpush3.bf16.msra.mxu0 %v5086_v59  ;;  %4661 = vmatprep.subr.bf16.mxu1 %v5087_v42  ;;  %v2830_v59 = vrot.slane %v2828_v19, 5 }
 0x513   : > { %4633 = vmatprep.subr.bf16.mxu0 %v5089_v60  ;;  %v2839_v11 = vor.u32 %v2838_v34, %v2835_v33 }
 0x514   : > { %v2831_v60 = vor.u32 %v2830_v59, %v2827_v6  ;;  %v2813_v59 = vld [vmem:[#allocation2 + $0x8] sm:$0xf8] }
 0x515   : > { %4662 = vmatpush3.bf16.msra.mxu1 %v5088_v50 }
 0x516   : > { %4634 = vmatpush3.bf16.msra.mxu0 %v5090_v16  ;;  %4663 = vmatprep.subr.bf16.mxu1 %v5091_v14  ;;  %v2840_v51 = vsel %vm2823_vm0, %v2831_v60, %v2839_v11  ;;  %v2912_v16 = vrot.slane %v2910_v56, 5  ;;  %v2884_v60 = vld [vmem:[#allocation2 + $0x20] sm:$0xf8]  ;;  %v2860_v56 = vrot.slane %v2813_v59, 1 }
 0x517   : > { %4635 = vmatprep.subr.bf16.mxu0 %v5093_v40  ;;  %v2920_v40 = vrot.slane %v2918_v12, 5  ;;  %v2931_v12 = vrot.slane %v2884_v60, 1 }
 0x518   : > { %v2913_v25 = vor.u32 %v2912_v16, %v2909_v53 }
 0x519   : > { %4664 = vmatpush3.bf16.msra.mxu1 %v5092_v62  ;;  %v2935_v62 = vshrl.u32 %v2886_v7, 16 }
 0x51a   : > { %4636 = vmatpush3.bf16.msra.mxu0 %v5094_v3  ;;  %4665 = vmatprep.subr.bf16.mxu1 %v5095_v0  ;;  %v2938_v0 = vshll.u32 %v2886_v7, 16 }
 0x51b   : > { %4637 = vmatprep.subr.bf16.mxu0 %v5097_v49  ;;  %v3002_v49 = vshrl.u32 %v2839_v11, 16  ;;  %v5979_v6 = vrot.slane %v2935_v62, 3 }
 0x51d   : > { %4666 = vmatpush3.bf16.msra.mxu1 %v5096_v4 }
 0x51e   : > { %4638 = vmatpush3.bf16.msra.mxu0 %v5098_v46  ;;  %v3005_v46 = vshll.u32 %v2839_v11, 16 }
 0x51f   : > { %4779 = vmatprep.subr.bf16.mxu0 %v5932_v48 }
 0x520   : > { %v3007_v17 = vrot.slane %v3005_v46, 3 }
 0x5d4   : > { %v4777_v9 = vpop.f32.mrb[32].mxu0 }
 0x5d5   : > { %v2767_v21 = vadd.f32 %v4777_v9, %v4295_v37  ;;  %v2758_v15 = vpop.f32.mrb[33].mxu0  ;;  %v2994_v9 = vshrl.u32 %v2840_v51, 16 }
 0x5d6   : > { %v2759_v45 = vadd.f32 %v4295_v37, %v2758_v15  ;;  %v4778_v1 = vpop.f32.mrb[34].mxu0  ;;  %v3129_v15 = vshrl.u32 %v5957_v10, 16 }
 0x5d7   : > { %v5939_v26 = vadd.f32 %v2767_v21, %v5771_v54  ;;  %v2770_v27 = vadd.f32 %v4778_v1, %v4295_v37  ;;  %v2761_v23 = vpop.f32.mrb[35].mxu0  ;;  %v2997_v21 = vshll.u32 %v2840_v51, 16  ;;  %v3132_v1 = vshll.u32 %v5957_v10, 16 }
 0x5d8   : > { %v5942_v32 = vadd.f32 %v2759_v45, %v5774_v57  ;;  %v2762_v52 = vadd.f32 %v4295_v37, %v2761_v23  ;;  %v5983_v5 = vrot.slane %v3129_v15, 2 }
 0x5d9   : > { %v2782_v13 = vmin.f32 %v5939_v26, 0.0  ;;  %v5946_v22 = vadd.f32 %v2770_v27, %v5778_v61  ;;  %v2921_v27 = vor.u32 %v2920_v40, %v2917_v39  ;;  %vm2778_vm1 = vcmp.gt.f32.partialorder %v5939_v26, 0.0 }
 0x5da   : > { %v2781_v28 = vmin.f32 %v5942_v32, 0.0  ;;  %v5950_v54 = vadd.f32 %v2762_v52, %v5782_v63  ;;  %v2847_v63 = vrot.slane %v2845_v31, 7  ;;  %v3004_v52 = vrot.slane %v3002_v49, 2  ;;  %v2815_v31 = vld [vmem:[#allocation2 + $0x20] sm:$0xe0] }
 0x5db   : > { %v2787_v29 = vmul.f32 1.442695, %v2782_v13  ;;  %v2784_v57 = vmin.f32 %v5946_v22, 0.0  ;;  %vm2780_vm2 = vcmp.gt.f32.partialorder %v5946_v22, 0.0  ;;  %vm2777_vm3 = vcmp.gt.f32.partialorder %v5942_v32, 0.0 }
 0x5dc   : > { %v2785_v20 = vmul.f32 1.442695, %v2781_v28  ;;  %v2783_v47 = vmin.f32 %v5950_v54, 0.0  ;;  %v5954_v2 = vor.u32 %v2847_v63, %v2844_v44  ;;  %vm2779_vm4 = vcmp.gt.f32.partialorder %v5950_v54, 0.0 }
 0x5dd   : > { %5151 = vpow2.f32 %v2787_v29  ;;  %v2791_v61 = vmul.f32 1.442695, %v2784_v57  ;;  %v2996_v29 = vrot.slane %v2994_v9, 2  ;;  %v2999_v57 = vrot.slane %v2997_v21, 3 }
 0x5de   : > { %5153 = vpow2.f32 %v2785_v20  ;;  %v2789_v43 = vmul.f32 1.442695, %v2783_v47  ;;  %v3011_v42 = vshrl.u32 %v5954_v2, 16  ;;  %v3014_v3 = vshll.u32 %v5954_v2, 16 }
 0x5df   : > { %5155 = vpow2.f32 %v2791_v61  ;;  %v2922_v30 = vsel %vm2823_vm0, %v2913_v25, %v2921_v27  ;;  %v5981_v61 = vrot.slane %v2938_v0, 4  ;;  %v3120_v34 = vshrl.u32 %v2921_v27, 16 }
 0x5e0   : > { %5157 = vpow2.f32 %v2789_v43  ;;  %v5975_v20 = vrot.slane %v3011_v42, 2  ;;  %v5977_v47 = vrot.slane %v3014_v3, 3  ;;  %v3112_v33 = vshrl.u32 %v2922_v30, 16 }
 0x5e1   : > { %v3123_v43 = vshll.u32 %v2921_v27, 16  ;;  %v3000_v44 = vor.u32 %v2999_v57, %v2996_v29  ;;  %v3008_v63 = vor.u32 %v3007_v17, %v3004_v52  ;;  %v5985_v35 = vrot.slane %v3132_v1, 3 }
 0x5e2   : > { %v3115_v11 = vshll.u32 %v2922_v30, 16  ;;  %v2865_v38 = vrot.slane %v2815_v31, 3  ;;  %v5987_v51 = vrot.slane %v3112_v33, 2  ;;  %v5989_v7 = vrot.slane %v3120_v34, 2 }
 0x5e3   : > { %v5991_v53 = vrot.slane %v3123_v43, 3  ;;  %v3017_v40 = vor.u32 %v5977_v47, %v5975_v20  ;;  %v2941_v42 = vor.u32 %v5981_v61, %v5979_v6  ;;  %v3135_v3 = vor.u32 %v5985_v35, %v5983_v5 }
 0x5e4   : > { %v6002_v62 = vrot.slane %v3115_v11, 3 }
 0x5e7   : > { %v5152_v41 = vpop.eup %5151 }
 0x5e8   : > { %v5154_v50 = vpop.eup %5153  ;;  %v4305_v14 = vadd.f32 -1.0, %v5152_v41  ;;  %v5996_v41 = vsel %vm1704_vm7, %v3000_v44, %v3008_v63 }
 0x5e9   : > { %v5156_v4 = vpop.eup %5155  ;;  %v4304_v37 = vadd.f32 -1.0, %v5154_v50 }
 0x5ea   : > { %v5158_v8 = vpop.eup %5157  ;;  %v4307_v45 = vadd.f32 -1.0, %v5156_v4  ;;  %v2798_v55 = vsel %vm2778_vm1, %v5939_v26, %v4305_v14 }
 0x5eb   : > { %v4306_v23 = vadd.f32 -1.0, %v5158_v8  ;;  %v2797_v19 = vsel %vm2777_vm3, %v5942_v32, %v4304_v37 }
 0x5ec   : > { %v2800_v18 = vsel %vm2780_vm2, %v5946_v22, %v4307_v45 }
 0x5ed   : > { %v5970_v13 = vpack.c.bf16 %v2800_v18, %v2798_v55  ;;  %v2799_v24 = vsel %vm2779_vm4, %v5950_v54, %v4306_v23 }
 0x5ee   : > { %v2801_v28 = vpack.c.bf16 %v2799_v24, %v2797_v19 }
 0x5ef   : > { %2804 = vst [vmem:[#allocation2 + $0x28] sm:$0xff] %v5970_v13 }
 0x5f0   : > { %2803 = vst [vmem:[#allocation2 + $0x10] sm:$0xff] %v2801_v28  ;;  %v2869_v36 = vshrl.u32 %v2801_v28, 16  ;;  %v2872_v58 = vshll.u32 %v2801_v28, 16 }
 0x5f2   : > { %v2871_v0 = vrot.slane %v2869_v36, 5  ;;  %v2874_v21 = vrot.slane %v2872_v58, 6 }
 0x5f6   : > { %v2816_v16 = vld [vmem:[#allocation2 + $0x28] sm:$0x3f] }
 0x5f7   : > { %v2812_v39 = vld [vmem:[#allocation2 + $0x28] sm:$0x1]  ;;  %v2866_v50 = vrot.slane %v2816_v16, 3  ;;  %v2814_v14 = vld [vmem:[#allocation2 + $0x10] sm:$0xf] }
 0x5f8   : > { %v2885_v49 = vld [vmem:[#allocation2 + $0x28] sm:$0xf]  ;;  %v2850_v46 = vshrl.u32 %v2812_v39, 16  ;;  %v2861_v4 = vrot.slane %v2814_v14, 1  ;;  %v2853_v37 = vshll.u32 %v2812_v39, 16 }
 0x5f9   : > { %v6004_v9 = vrot.slane %v2885_v49, 1  ;;  %v2867_v15 = vsel %vm1645_vm11, %v2865_v38, %v2866_v50  ;;  %v3053_v8 = vshrl.u32 %v2866_v50, 16  ;;  %v3056_v45 = vshll.u32 %v2866_v50, 16  ;;  %v2887_v17 = vld [vmem:[#allocation2 + $0x10] sm:$0x3f] }
 0x5fa   : > { %v2852_v1 = vrot.slane %v2850_v46, 6  ;;  %v3045_v25 = vshrl.u32 %v2867_v15, 16  ;;  %v3048_v27 = vshll.u32 %v2867_v15, 16  ;;  %v2862_v23 = vsel %vm618_vm9, %v2860_v56, %v2861_v4  ;;  %v2883_v31 = vld [vmem:[#allocation2 + $0x10] sm:$0x3] }
 0x5fb   : > { %v3036_v52 = vshrl.u32 %v2861_v4, 16  ;;  %v3055_v55 = vrot.slane %v3053_v8, 2  ;;  %v3058_v18 = vrot.slane %v3056_v45, 3  ;;  %v3028_v19 = vshrl.u32 %v2862_v23, 16 }
 0x5fc   : > { %v3031_v24 = vshll.u32 %v2862_v23, 16  ;;  %v3047_v28 = vrot.slane %v3045_v25, 2  ;;  %v3050_v29 = vrot.slane %v3048_v27, 3  ;;  %v3039_v30 = vshll.u32 %v2861_v4, 16 }
 0x5fd   : > { %v3038_v57 = vrot.slane %v3036_v52, 2  ;;  %v3059_v59 = vor.u32 %v3058_v18, %v3055_v55  ;;  %v3030_v33 = vrot.slane %v3028_v19, 2  ;;  %v2855_v43 = vrot.slane %v2853_v37, 7 }
 0x5fe   : > { %v3033_v34 = vrot.slane %v3031_v24, 3  ;;  %v3051_v44 = vor.u32 %v3050_v29, %v3047_v28  ;;  %v3041_v63 = vrot.slane %v3039_v30, 3  ;;  %v2943_v60 = vshrl.u32 %v2887_v17, 16 }
 0x5ff   : > { %v2946_v11 = vshll.u32 %v2887_v17, 16  ;;  %v2856_v38 = vor.u32 %v2855_v43, %v2852_v1  ;;  %v2927_v56 = vrot.slane %v2883_v31, 7  ;;  %v2933_v58 = vsel %vm618_vm9, %v2931_v12, %v6004_v9 }
 0x600   : > { %v3034_v36 = vor.u32 %v3033_v34, %v3030_v33  ;;  %v3060_v16 = vsel %vm1704_vm7, %v3051_v44, %v3059_v59  ;;  %v3042_v39 = vor.u32 %v3041_v63, %v3038_v57  ;;  %v2945_v49 = vrot.slane %v2943_v60, 3 }
 0x601   : > { %v2948_v50 = vrot.slane %v2946_v11, 4  ;;  %3782 = vmatprep.mubr.bf16.mxu1 %v3060_v16  ;;  %v2857_v14 = vsel %vm643_vm10, %v5954_v2, %v2856_v38  ;;  %v2928_v46 = vsel %vm2925_vm6, %v5957_v10, %v2927_v56  ;;  %v3146_v4 = vshrl.u32 %v2933_v58, 16  ;;  %v5101_v38 = vld [vmem:[#allocation9 + $0x510] sm:$0xff]  }
 0x602   : > { %v3149_v37 = vshll.u32 %v2933_v58, 16  ;;  %v3043_v15 = vsel %vm1704_vm7, %v3034_v36, %v3042_v39  ;;  %v3019_v8 = vshrl.u32 %v2857_v14, 16  ;;  %v3022_v45 = vshll.u32 %v2857_v14, 16  ;;  %v5106_v14 = vld [vmem:[#allocation9 + $0x538] sm:$0xff]  }
 0x603   : > { %v2949_v1 = vor.u32 %v2948_v50, %v2945_v49  ;;  %3783 = vmatmul.mubr.bf16.vlgmr.msra.gmra.mrb[40].mxu1 %v3043_v15  ;;  %v3137_v12 = vshrl.u32 %v2928_v46, 16  ;;  %v3140_v25 = vshll.u32 %v2928_v46, 16  ;;  %v3148_v27 = vrot.slane %v3146_v4, 2  ;;  %v5105_v49 = vld [vmem:[#allocation9 + $0x530] sm:$0xff]  }
 0x604   : > { %v2875_v23 = vor.u32 %v2874_v21, %v2871_v0  ;;  %v3021_v52 = vrot.slane %v3019_v8, 2  ;;  %v3024_v55 = vrot.slane %v3022_v45, 3  ;;  %v3151_v30 = vrot.slane %v3149_v37, 3  ;;  %v4611_v8 = vpop.f32.mrb[32].mxu1 }
 0x605   : > { %v2950_v2 = vsel %vm1649_vm5, %v2941_v42, %v2949_v1  ;;  %v3171_v10 = vshrl.u32 %v2949_v1, 16  ;;  %v3174_v24 = vshll.u32 %v2949_v1, 16  ;;  %v3139_v17 = vrot.slane %v3137_v12, 2  ;;  %v5100_v42 = vld [vmem:[#allocation9 + $0x508] sm:$0xff]   ;;  %v4612_v45 = vpop.f32.mrb[33].mxu1 }
 0x606   : > { %v3163_v18 = vshrl.u32 %v2950_v2, 16  ;;  %v3166_v19 = vshll.u32 %v2950_v2, 16  ;;  %v3025_v28 = vor.u32 %v3024_v55, %v3021_v52  ;;  %v3142_v57 = vrot.slane %v3140_v25, 3  ;;  %v4614_v12 = vpop.f32.mrb[34].mxu1 }
 0x607   : > { %v3173_v29 = vrot.slane %v3171_v10, 2  ;;  %v3176_v33 = vrot.slane %v3174_v24, 3  ;;  %v3154_v0 = vshrl.u32 %v6004_v9, 16  ;;  %v3157_v21 = vshll.u32 %v6004_v9, 16  ;;  %v4615_v25 = vpop.f32.mrb[35].mxu1  ;;  %v5108_v24 = vld [vmem:[#allocation11 + $0x88] sm:$0xff]  }
 0x608   : > { %v3165_v31 = vrot.slane %v3163_v18, 2  ;;  %v3168_v59 = vrot.slane %v3166_v19, 3  ;;  %v3026_v6 = vsel %vm1704_vm7, %v3017_v40, %v3025_v28  ;;  %v3143_v61 = vor.u32 %v3142_v57, %v3139_v17  ;;  %v5107_v19 = vld [vmem:[#allocation11 + $0x80] sm:$0xff]   ;;  %v5109_v17 = vld [vmem:[#allocation11 + $0x90] sm:$0xff]   ;;  %v5110_v28 = vld [vmem:[#allocation11 + $0x98] sm:$0xff]  }
 0x609   : > { %v3062_v34 = vshrl.u32 %v2875_v23, 16  ;;  %3733 = vmatprep.mubr.bf16.mxu0 %v3026_v6  ;;  %v3177_v44 = vor.u32 %v3176_v33, %v3173_v29  ;;  %v3156_v63 = vrot.slane %v3154_v0, 2  ;;  %v3065_v60 = vshll.u32 %v2875_v23, 16  ;;  %v4617_v23 = vpop.f32.mrb[36].mxu1  ;;  %4799 = vmatprep.subr.bf16.mxu1 %v5107_v19  ;;  %v5111_v29 = vld [vmem:[#allocation11 + $0xa0] sm:$0xff]   ;;  %v5112_v57 = vld [vmem:[#allocation11 + $0xa8] sm:$0xff]  }
 0x60a   : > { %v3169_v43 = vor.u32 %v3168_v59, %v3165_v31  ;;  %3734 = vmatmul.mubr.bf16.vlgmr.msra.gmra.mrb[36].mxu0 %v5996_v41  ;;  %v3144_v11 = vsel %vm1704_vm7, %v3135_v3, %v3143_v61  ;;  %v3152_v20 = vor.u32 %v3151_v30, %v3148_v27  ;;  %v3159_v47 = vrot.slane %v3157_v21, 3  ;;  %v4618_v52 = vpop.f32.mrb[37].mxu1  ;;  %4800 = vmatpush3.bf16.msra.mxu1 %v5107_v19  ;;  %v5113_v30 = vld [vmem:[#allocation11 + $0xb0] sm:$0xff]   ;;  %v5114_v31 = vld [vmem:[#allocation11 + $0xb8] sm:$0xff]  }
 0x60b   : > { %4780 = vmatpush3.bf16.msra.mxu0 %v5932_v48  ;;  %3741 = vmatprep.mubr.bf16.mxu0 %v3144_v11  ;;  %v3118_v9 = vor.u32 %v6002_v62, %v5987_v51  ;;  %v3126_v36 = vor.u32 %v5991_v53, %v5989_v7  ;;  %v3064_v5 = vrot.slane %v3062_v34, 2  ;;  %v3067_v35 = vrot.slane %v3065_v60, 3  ;;  %v5102_v48 = vld [vmem:[#allocation9 + $0x518] sm:$0xff]   ;;  %v5103_v51 = vld [vmem:[#allocation9 + $0x520] sm:$0xff]   ;;  %v5104_v62 = vld [vmem:[#allocation9 + $0x528] sm:$0xff]   ;;  %v4620_v2 = vpop.f32.mrb[38].mxu1 }
 0x60c   : > { %v3178_v40 = vsel %vm1704_vm7, %v3169_v43, %v3177_v44  ;;  %4781 = vmatprep.subr.bf16.mxu0 %v5100_v42  ;;  %v3160_v41 = vor.u32 %v3159_v47, %v3156_v63  ;;  %v2952_v7 = vshrl.u32 %v5970_v13, 16  ;;  %v2955_v53 = vshll.u32 %v5970_v13, 16  ;;  %v4621_v10 = vpop.f32.mrb[39].mxu1  ;;  %4801 = vmatprep.subr.bf16.mxu1 %v5108_v24  ;;  %v4309_v21 = vld [vmem:[%s6107_s5 + $0x2] ss:$0 sm:$0xff] }
 0x60d   : > { %3790 = vmatprep.mubr.bf16.mxu1 %v3178_v40  ;;  %v3127_v56 = vsel %vm1704_vm7, %v3118_v9, %v3126_v36  ;;  %v3068_v58 = vor.u32 %v3067_v35, %v3064_v5  ;;  %v4613_v1 = vadd.f32 %v4612_v45, %v4611_v8  ;;  %v4616_v27 = vadd.f32 %v4615_v25, %v4614_v12 }
 0x60e   : > { %v3161_v3 = vsel %vm1704_vm7, %v3152_v20, %v3160_v41  ;;  %v2954_v16 = vrot.slane %v2952_v7, 5  ;;  %v2957_v39 = vrot.slane %v2955_v53, 6  ;;  %v4619_v55 = vadd.f32 %v4618_v52, %v4617_v23  ;;  %4802 = vmatpush3.bf16.msra.mxu1 %v5108_v24 }
 0x60f   : > { %3791 = vmatmul.mubr.bf16.gmra.mrb[44].mxu1 %v3161_v3  ;;  %4782 = vmatpush3.bf16.msra.mxu0 %v5100_v42  ;;  %v4622_v18 = vadd.f32 %v4621_v10, %v4620_v2  ;;  %v3687_v44 = vadd.f32 %v4613_v1, %v4309_v21  ;;  %v3690_v20 = vadd.f32 %v4616_v27, %v4309_v21 }
 0x610   : > { %4783 = vmatprep.subr.bf16.mxu0 %v5101_v38  ;;  %v2958_v50 = vor.u32 %v2957_v39, %v2954_v16  ;;  %4803 = vmatprep.subr.bf16.mxu1 %v5109_v17  ;;  %v3695_v3 = vadd.f32 %v4619_v55, %v4309_v21 }
 0x611   : > { %v3698_v53 = vadd.f32 %v4622_v18, %v4309_v21 }
 0x612   : > { %3742 = vmatmul.mubr.bf16.gmra.mrb[40].mxu0 %v3127_v56  ;;  %v3180_v46 = vshrl.u32 %v2958_v50, 16  ;;  %v3183_v4 = vshll.u32 %v2958_v50, 16  ;;  %4804 = vmatpush3.bf16.msra.mxu1 %v5109_v17 }
 0x613   : > { %4784 = vmatpush3.bf16.msra.mxu0 %v5101_v38  ;;  %4795 = vmatprep.mubr.bf16.mxu0 %v3068_v58 }
 0x614   : > { %4785 = vmatprep.subr.bf16.mxu0 %v5102_v48  ;;  %v3182_v37 = vrot.slane %v3180_v46, 2  ;;  %v3185_v15 = vrot.slane %v3183_v4, 3  ;;  %4805 = vmatprep.subr.bf16.mxu1 %v5110_v28 }
 0x616   : > { %v3186_v13 = vor.u32 %v3185_v15, %v3182_v37  ;;  %4806 = vmatpush3.bf16.msra.mxu1 %v5110_v28 }
 0x617   : > { %4786 = vmatpush3.bf16.msra.mxu0 %v5102_v48  ;;  %4807 = vmatprep.subr.bf16.mxu1 %v5111_v29 }
 0x618   : > { %4787 = vmatprep.subr.bf16.mxu0 %v5103_v51 }
 0x61a   : > { %4808 = vmatpush3.bf16.msra.mxu1 %v5111_v29 }
 0x61b   : > { %4788 = vmatpush3.bf16.msra.mxu0 %v5103_v51  ;;  %4809 = vmatprep.subr.bf16.mxu1 %v5112_v57 }
 0x61c   : > { %4789 = vmatprep.subr.bf16.mxu0 %v5104_v62 }
 0x61e   : > { %4810 = vmatpush3.bf16.msra.mxu1 %v5112_v57 }
 0x61f   : > { %4790 = vmatpush3.bf16.msra.mxu0 %v5104_v62  ;;  %4811 = vmatprep.subr.bf16.mxu1 %v5113_v30 }
 0x620   : > { %4791 = vmatprep.subr.bf16.mxu0 %v5105_v49 }
 0x622   : > { %4812 = vmatpush3.bf16.msra.mxu1 %v5113_v30 }
 0x623   : > { %4792 = vmatpush3.bf16.msra.mxu0 %v5105_v49  ;;  %4813 = vmatprep.subr.bf16.mxu1 %v5114_v31 }
 0x624   : > { %4793 = vmatprep.subr.bf16.mxu0 %v5106_v14 }
 0x626   : > { %4814 = vmatpush3.bf16.msra.mxu1 %v5114_v31 }
 0x627   : > { %4794 = vmatpush3.bf16.msra.mxu0 %v5106_v14 }
 0x62a   : > { %4796 = vmatmul.mubr.bf16.vlgmr.msra.gmra.mrb[44].mxu0 %v3186_v13 }
 0x6d6   : > { %v4667_v59 = vpop.f32.mrb[40].mxu1 }
 0x6d7   : > { %v4668_v33 = vpop.f32.mrb[41].mxu1 }
 0x6d8   : > { %v4669_v0 = vadd.f32 %v4668_v33, %v4667_v59  ;;  %v4670_v6 = vpop.f32.mrb[42].mxu1 }
 0x6d9   : > { %v4671_v61 = vpop.f32.mrb[43].mxu1 }
 0x6da   : > { %v4672_v42 = vadd.f32 %v4671_v61, %v4670_v6 }
 0x6dd   : > { %v4639_v34 = vpop.f32.mrb[36].mxu0 }
 0x6de   : > { %v4640_v43 = vpop.f32.mrb[37].mxu0 }
 0x6df   : > { %v4641_v63 = vadd.f32 %v4640_v43, %v4639_v34  ;;  %v4642_v60 = vpop.f32.mrb[38].mxu0  ;;  %v4371_v34 = vld [vmem:[%s6109_s7 + $0x2] ss:$0 sm:$0xff] }
 0x6e0   : > { %v4643_v11 = vpop.f32.mrb[39].mxu0 }
 0x6e1   : > { %v3736_v47 = vadd.f32 %v4641_v63, %v3687_v44  ;;  %v4644_v40 = vadd.f32 %v4643_v11, %v4642_v60 }
 0x6e2   : > { %v4673_v9 = vpop.f32.mrb[44].mxu1 }
 0x6e3   : > { %v3739_v36 = vadd.f32 %v4644_v40, %v3690_v20  ;;  %v4674_v41 = vpop.f32.mrb[45].mxu1  ;;  %v3785_v38 = vadd.f32 %v4669_v0, %v3736_v47 }
 0x6e4   : > { %v4675_v5 = vadd.f32 %v4674_v41, %v4673_v9  ;;  %v4676_v35 = vpop.f32.mrb[46].mxu1 }
 0x6e5   : > { %v4677_v56 = vpop.f32.mrb[47].mxu1  ;;  %v4645_v48 = vpop.f32.mrb[40].mxu0  ;;  %v3788_v58 = vadd.f32 %v4672_v42, %v3739_v36 }
 0x6e6   : > { %v4678_v51 = vadd.f32 %v4677_v56, %v4676_v35  ;;  %v4646_v7 = vpop.f32.mrb[41].mxu0 }
 0x6e7   : > { %v4647_v62 = vadd.f32 %v4646_v7, %v4645_v48  ;;  %v4648_v16 = vpop.f32.mrb[42].mxu0 }
 0x6e8   : > { %v4649_v39 = vpop.f32.mrb[43].mxu0 }
 0x6e9   : > { %v3744_v49 = vadd.f32 %v4647_v62, %v3695_v3  ;;  %v4650_v50 = vadd.f32 %v4649_v39, %v4648_v16 }
 0x6eb   : > { %v3747_v14 = vadd.f32 %v4650_v50, %v3698_v53  ;;  %v3793_v46 = vadd.f32 %v4675_v5, %v3744_v49 }
 0x6ed   : > { %v3796_v4 = vadd.f32 %v4678_v51, %v3747_v14 }
 0x6fd   : > { %v4797_v37 = vpop.f32.mrb[44].mxu0 }
 0x6fe   : > { %v3842_v15 = vadd.f32 %v4797_v37, %v3793_v46  ;;  %v3833_v13 = vpop.f32.mrb[45].mxu0 }
 0x6ff   : > { %v3834_v8 = vadd.f32 %v3833_v13, %v3785_v38  ;;  %v4798_v45 = vpop.f32.mrb[46].mxu0 }
 0x700   : > { %v3854_v1 = vmin.f32 %v3842_v15, 0.0  ;;  %v3845_v12 = vadd.f32 %v4798_v45, %v3796_v4  ;;  %v3836_v25 = vpop.f32.mrb[47].mxu0  ;;  %vm3850_vm9 = vcmp.gt.f32.partialorder %v3842_v15, 0.0 }
 0x701   : > { %v3852_v27 = vmin.f32 %v3834_v8, 0.0  ;;  %v3837_v23 = vadd.f32 %v3836_v25, %v3788_v58  ;;  %vm3848_vm5 = vcmp.gt.f32.partialorder %v3834_v8, 0.0 }
 0x702   : > { %v3860_v52 = vmul.f32 1.442695, %v3854_v1  ;;  %v3855_v55 = vmin.f32 %v3845_v12, 0.0  ;;  %vm3851_vm10 = vcmp.gt.f32.partialorder %v3845_v12, 0.0 }
 0x703   : > { %v3856_v2 = vmul.f32 1.442695, %v3852_v27  ;;  %v3853_v10 = vmin.f32 %v3837_v23, 0.0  ;;  %vm3849_vm7 = vcmp.gt.f32.partialorder %v3837_v23, 0.0 }
 0x704   : > { %5159 = vpow2.f32 %v3860_v52  ;;  %v3862_v18 = vmul.f32 1.442695, %v3855_v55 }
 0x705   : > { %5161 = vpow2.f32 %v3856_v2  ;;  %v3858_v19 = vmul.f32 1.442695, %v3853_v10 }
 0x706   : > { %5163 = vpow2.f32 %v3862_v18 }
 0x707   : > { %5165 = vpow2.f32 %v3858_v19 }
 0x70e   : > { %v5160_v24 = vpop.eup %5159 }
 0x70f   : > { %v5162_v17 = vpop.eup %5161  ;;  %v4368_v28 = vadd.f32 -1.0, %v5160_v24 }
 0x710   : > { %v5164_v29 = vpop.eup %5163  ;;  %v4366_v57 = vadd.f32 -1.0, %v5162_v17 }
 0x711   : > { %v5166_v30 = vpop.eup %5165  ;;  %v4369_v31 = vadd.f32 -1.0, %v5164_v29  ;;  %v3870_v33 = vsel %vm3850_vm9, %v3842_v15, %v4368_v28 }
 0x712   : > { %v4367_v59 = vadd.f32 -1.0, %v5166_v30  ;;  %v3868_v61 = vsel %vm3848_vm5, %v3834_v8, %v4366_v57 }
 0x713   : > { %v3871_v0 = vsel %vm3851_vm10, %v3845_v12, %v4369_v31 }
 0x714   : > { %v3873_v6 = vpack.c.bf16 %v3871_v0, %v3870_v33  ;;  %v3869_v42 = vsel %vm3849_vm7, %v3837_v23, %v4367_v59 }
 0x715   : > { %v3872_v21 = vpack.c.bf16 %v3869_v42, %v3868_v61 }
 0x717   : > { %4815 = vmatprep.mubr.bf16.mxu1 %v3872_v21 }
 0x718   : > { %4816 = vmatmul.mubr.bf16.vlgmr.msra.gmra.mrb[48].mxu1 %v3873_v6 }
 0x7eb   : > { %v4817_v43 = vpop.f32.mrb[48].mxu1 }
 0x7ec   : > { %v3990_v44 = vadd.f32 %v4817_v43, %v4371_v34  ;;  %v3981_v63 = vpop.f32.mrb[49].mxu1 }
 0x7ed   : > { %v3982_v60 = vadd.f32 %v4371_v34, %v3981_v63  ;;  %v4818_v11 = vpop.f32.mrb[50].mxu1 }
 0x7ee   : > { %v3997_v20 = vadd.f32 %v3990_v44, %v5939_v26  ;;  %v3993_v47 = vadd.f32 %v4818_v11, %v4371_v34  ;;  %v3984_v40 = vpop.f32.mrb[51].mxu1 }
 0x7ef   : > { %v3996_v9 = vadd.f32 %v3982_v60, %v5942_v32  ;;  %v3985_v36 = vadd.f32 %v4371_v34, %v3984_v40 }
 0x7f0   : > { %4001 = vst [vmem:[%s381_s13 + $0x8] sm:$0xff] %v3997_v20  ;;  %v3999_v41 = vadd.f32 %v3993_v47, %v5946_v22 }
 0x7f1   : > { %4000 = vst [vmem:[%s381_s13] sm:$0xff] %v3996_v9  ;;  %v3998_v26 = vadd.f32 %v3985_v36, %v5950_v54 }
 0x7f2   : > { %4003 = vst [vmem:[%s381_s13 + $0x18] sm:$0xff] %v3999_v41 }
 0x7f3   : > { %4002 = vst [vmem:[%s381_s13 + $0x10] sm:$0xff] %v3998_v26 }
 0x7f4   : > { %5322 = shalt.err (!%p5319_p13)
}
 0x7f5   : > { %s5323_s26 = scalar_lea.hbm %s6057_s9, 512  ;;  %s5327_s11 = scalar_lea.hbm %s6110_s8, 1024 }
 0x7f6   : > { %p5324_p9 = scmp.ne.s32.totalorder %s6057_s9, %s5323_s26  ;;  %p5328_p11 = scmp.lt.u32.totalorder %s6057_s9, %s6110_s8 }
 0x7f7   : > { %p5329_p4 = scmp.lt.u32.totalorder %s5327_s11, %s5323_s26  ;;  %p5331_p10 = scmp.lt.u32.totalorder %s5323_s26, %s6057_s9 }
 0x7f8   : > { %p5325_p0 = pnand %p5324_p9, %p5621_p3 }
 0x7f9   : > { %p5330_p8 = por %p5329_p4, %p5328_p11 }
 0x7fa   : > { %p5326_p6 = pneg %p5325_p0 }
 0x7fb   : > { %p5332_p5 = por %p5331_p10, %p5330_p8 }
 0x7fd   : > { %p5333_p7 = pnand %p5332_p5, %p5326_p6 }
 0x7ff   : > { %5336 = shalt.err (!%p5333_p7)
}
 0x800   : > { %s5396_s23 = smov 256   ;;  %s5397_s22 = smov 16  }
 0x801   : > { %4841 = dma.vmem_to_hbm [thread:$0]  (%p5621_p3), %s6050_s1, 512, %s6057_s9, %s4005_s14, %s5396_s23, %s5396_s23, %s5397_s22  }
 0x802 PF: > { %s6140_s24 = sld [smem:[#allocation17_spill]]  ;;  %s4033_s18 = sand.u32 1, %s5371_s27  }
 0x803   : > { %p6142_p1 = scmp.ge.s32.totalorder %s5383_s30, 2  ;;  %s4034_s12 = scalar_lea.sflag [#allocation5], %s4033_s18 }
 0x808   : > { %p6141_p12 = scmp.ne.s32.totalorder %s6140_s24, 0 }
 0x80a   : > { %p4861_p2 = pnand %p6142_p1, %p6141_p12 }
 0x80c   : > { %5366 = dma.done.wait (!%p4861_p2), %s4034_s12, 512  }
 0x80d   : > { %5368 = vsyncadd (!%p4861_p2), %s4034_s12, 4294966784  ;;  %p23_p13 = scmp.ge.s32.totalorder %s5608_s16, 4   ;;  %s6143_s27 = smov %s5375_s28 }
 0x80e   : > { %s6144_s28 = smov %s5379_s29  ;;  %s6145_s29 = smov %s5617_s10 }
 0x80f   : > { %s6146_s30 = smov %s5608_s16  ;;  %25 = sbr.rel (!%p23_p13) target bundleno = 9 (0x9), region = 122 }
 0x816   :  { %4039 = vsyncpa [#allocation4], 1 }
 0x817   :  { %4041 = vsyncpa [#allocation4 + $0x1], 1 }
 0x818   :  { %4042 = vsyncpa [#allocation7], 1 }
 0x819   :  { %4043 = vsyncpa [#allocation10], 1 }
 0x81a   :  { %4044 = vsyncpa [#allocation5], 1 }
 0x81b   :  { %4046 = vsyncpa [#allocation5 + $0x1], 1 }

</bundles_post_ra>
